<compile_context>
chip_gen: v5e
topology: v5e:2x2
jax: 0.10.0
libtpu: 0.0.40
codegen_flags: <defaults>
</compile_context>

<pallas_src>
import functools

import jax
import jax.numpy as jnp
from jax.experimental import pallas as pl
from jax.experimental.pallas import tpu as pltpu


def _round_up(x, m):
    return (x + m - 1) // m * m


# ---------------------------------------------------------------------------
# Fused kernel: conv1 -> ReLU -> conv2 -> ReLU -> conv3 -> L2 normalize
# ---------------------------------------------------------------------------
def _unit_cnn_kernel(x_ref, w1_ref, b1_ref, w2_ref, b2_ref, w3_ref, b3_ref,
                     o_ref, a1_ref, a2_ref, *,
                     bt, h1, w1, h2, w2, h3, w3):
    f32 = jnp.float32
    bf16 = jnp.bfloat16

    # ---- conv1: 8x8 / stride 4 on the space-to-depth input -----------------
    # x_ref: (H/4, W/4, bt, 64), lanes ordered (dh, dw, cin).  An 8x8/stride-4
    # window is a 2x2 window of 4x4 blocks, so the conv is 4 accumulated MXU
    # matmuls over contiguous block slices (no strided access).
    y1 = None
    for a in range(2):
        for b in range(2):
            lhs = x_ref[pl.ds(a, h1), pl.ds(b, w1), :, :]      # (h1, w1, bt, 64)
            lhs = lhs.reshape(h1 * w1 * bt, 64).astype(bf16)
            part = jnp.dot(lhs, w1_ref[a * 2 + b], preferred_element_type=f32)
            y1 = part if y1 is None else y1 + part
    y1 = jnp.maximum(y1 + b1_ref[...], 0.0)                    # bias + ReLU (f32)
    # Blocked store so conv2's stride-2 windows are contiguous leading slices:
    # layout (oh_hi, oh_lo, ow_hi, ow_lo, n, c1).
    a1_ref[...] = y1.reshape(h1 // 2, 2, w1 // 2, 2, bt, 32)

    # ---- conv2: 4x4 / stride 2 -- 16 accumulated matmuls --------------------
    y2 = None
    for kh in range(4):
        ab, r = divmod(kh, 2)
        for kw in range(4):
            bb, s = divmod(kw, 2)
            lhs = a1_ref[pl.ds(ab, h2), r, pl.ds(bb, w2), s, :, :]
            lhs = lhs.reshape(h2 * w2 * bt, 32).astype(bf16)
            part = jnp.dot(lhs, w2_ref[kh * 4 + kw], preferred_element_type=f32)
            y2 = part if y2 is None else y2 + part
    y2 = jnp.maximum(y2 + b2_ref[...], 0.0)
    a2_ref[...] = y2.reshape(h2, w2, bt, 64)

    # ---- conv3: 3x3 / stride 1 -- 9 accumulated matmuls (no ReLU) -----------
    y3 = None
    for i in range(3):
        for j in range(3):
            lhs = a2_ref[pl.ds(i, h3), pl.ds(j, w3), :, :]
            lhs = lhs.reshape(h3 * w3 * bt, 64).astype(bf16)
            part = jnp.dot(lhs, w3_ref[i * 3 + j], preferred_element_type=f32)
            y3 = part if y3 is None else y3 + part
    y3 = y3 + b3_ref[...]

    # ---- fused L2 normalization: f / sqrt(sum(f^2)) (rsqrt on the EUP) ------
    # (Matches the PyTorch reference: no eps.)
    feat = y3.reshape(h3 * w3, bt, 64)
    ssq = jnp.sum(feat * feat, axis=2, keepdims=True)          # lane reduce
    ssq = jnp.sum(ssq, axis=0, keepdims=True)                  # spatial reduce
    o_ref[...] = (feat * jax.lax.rsqrt(ssq)).astype(o_ref.dtype)


# ---------------------------------------------------------------------------
# Wrapper: layout prep (zero-expansion) + single pallas_call
# ---------------------------------------------------------------------------
def unit_cnn_forward(params, obs_nchw, *, block_batch=None):
    """Forward pass matching UnitCNN.forward; obs is NCHW float32."""
    n, c_in, hh, ww = obs_nchw.shape
    assert c_in == 4, "UnitCNN expects 4 input channels"
    assert hh % 4 == 0 and ww % 4 == 0, "H and W must be multiples of 4"
    h1, w1 = (hh - 8) // 4 + 1, (ww - 8) // 4 + 1
    assert h1 >= 4 and w1 >= 4 and h1 % 2 == 0 and w1 % 2 == 0
    h2, w2 = (h1 - 4) // 2 + 1, (w1 - 4) // 2 + 1
    assert h2 >= 3 and w2 >= 3
    h3, w3 = h2 - 2, w2 - 2

    bt = block_batch if block_batch is not None else min(64, _round_up(n, 8))
    assert bt % 8 == 0, "block_batch must be a multiple of 8"
    n_pad = _round_up(n, bt)

    # Input: NCHW -> (H/4, W/4, N, dh*dw*Cin).  Same byte count as a plain
    # NHWC transpose (no im2col expansion, no padded HBM blowup).
    hb, wb = hh // 4, ww // 4
    x = obs_nchw
    if n_pad != n:
        x = jnp.pad(x, ((0, n_pad - n), (0, 0), (0, 0), (0, 0)))
    x = x.reshape(n_pad, 4, hb, 4, wb, 4)        # (n, c, p, dh, q, dw)
    x = x.transpose(2, 4, 0, 3, 5, 1)            # (p, q, n, dh, dw, c)
    x = x.reshape(hb, wb, n_pad, 64).astype(jnp.float32)

    # Weights: reorder once to match the in-kernel patch/lane layouts (bf16
    # for the MXU), biases stay f32 for the epilogues.
    cw1, cb1 = params["conv1"]
    cw2, cb2 = params["conv2"]
    cw3, cb3 = params["conv3"]
    w1m = (cw1.reshape(32, 4, 2, 4, 2, 4)        # (o, c, a, dh, b, dw)
              .transpose(2, 4, 3, 5, 1, 0)       # (a, b, dh, dw, c, o)
              .reshape(4, 64, 32).astype(jnp.bfloat16))
    w2m = (cw2.transpose(2, 3, 1, 0)             # (kh, kw, c, o)
              .reshape(16, 32, 64).astype(jnp.bfloat16))
    w3m = (cw3.transpose(2, 3, 1, 0)
              .reshape(9, 64, 64).astype(jnp.bfloat16))
    b1m = cb1.reshape(1, 32).astype(jnp.float32)
    b2m = cb2.reshape(1, 64).astype(jnp.float32)
    b3m = cb3.reshape(1, 64).astype(jnp.float32)

    flops = n_pad * 2 * (h1 * w1 * 256 * 32 + h2 * w2 * 512 * 64
                         + h3 * w3 * 576 * 64)
    bytes_accessed = (x.size * 4
                      + (w1m.size + w2m.size + w3m.size) * 2
                      + (b1m.size + b2m.size + b3m.size) * 4
                      + h3 * w3 * n_pad * 64 * 4)

    kernel = functools.partial(_unit_cnn_kernel, bt=bt, h1=h1, w1=w1,
                               h2=h2, w2=w2, h3=h3, w3=w3)
    out = pl.pallas_call(
        kernel,
        out_shape=jax.ShapeDtypeStruct((h3 * w3, n_pad, 64), jnp.float32),
        grid=(n_pad // bt,),
        in_specs=[
            pl.BlockSpec((hb, wb, bt, 64), lambda g: (0, 0, g, 0)),
            pl.BlockSpec((4, 64, 32), lambda g: (0, 0, 0)),
            pl.BlockSpec((1, 32), lambda g: (0, 0)),
            pl.BlockSpec((16, 32, 64), lambda g: (0, 0, 0)),
            pl.BlockSpec((1, 64), lambda g: (0, 0)),
            pl.BlockSpec((9, 64, 64), lambda g: (0, 0, 0)),
            pl.BlockSpec((1, 64), lambda g: (0, 0)),
        ],
        out_specs=pl.BlockSpec((h3 * w3, bt, 64), lambda g: (0, g, 0)),
        scratch_shapes=[
            pltpu.VMEM((h1 // 2, 2, w1 // 2, 2, bt, 32), jnp.float32),  # conv1 act
            pltpu.VMEM((h2, w2, bt, 64), jnp.float32),                  # conv2 act
        ],
        compiler_params=pltpu.CompilerParams(
            dimension_semantics=("parallel",)),
        cost_estimate=pl.CostEstimate(flops=flops, transcendentals=n_pad,
                                      bytes_accessed=bytes_accessed),
    )(x, w1m, b1m, w2m, b2m, w3m, b3m)

    # (h3*w3, n_pad, 64) -> (n, 64*h3*w3) in PyTorch's NCHW-flatten order.
    feats = out[:, :n, :]
    feats = jnp.transpose(feats, (1, 2, 0)).reshape(n, 64 * h3 * w3)
    return feats


# ---------------------------------------------------------------------------
# Deterministic parameter init (PyTorch-style kaiming-uniform bounds)
# ---------------------------------------------------------------------------
def init_params(key):
    def conv_params(key, c_out, c_in, kh, kw):
        kw_key, kb_key = jax.random.split(key)
        fan_in = c_in * kh * kw
        bound = 1.0 / jnp.sqrt(fan_in)
        w = jax.random.uniform(kw_key, (c_out, c_in, kh, kw), jnp.float32,
                               -bound, bound)
        b = jax.random.uniform(kb_key, (c_out,), jnp.float32, -bound, bound)
        return w, b

    k1, k2, k3 = jax.random.split(key, 3)
    return {
        "conv1": conv_params(k1, 32, 4, 8, 8),
        "conv2": conv_params(k2, 64, 32, 4, 4),
        "conv3": conv_params(k3, 64, 64, 3, 3),
    }


if __name__ == "__main__":
    key = jax.random.PRNGKey(0)
    pkey, xkey = jax.random.split(key)
    params = init_params(pkey)
    # Smallest spatial size that survives the conv stack: 36 -> 8 -> 3 -> 1.
    obs = jax.random.normal(xkey, (2, 4, 36, 36), jnp.float32)  # NCHW
    fwd = jax.jit(unit_cnn_forward)
    out = fwd(params, obs)
    jax.block_until_ready(out)
    assert out.shape == (2, 64)
    assert bool(jnp.all(jnp.isfinite(out)))
    print("KERNEL_OK")
</pallas_src>

<mosaic_0001>
module attributes {stable_mosaic.version = 11 : i64} {
  func.func @_unit_cnn_kernel(%arg0: i32, %arg1: memref<9x9x8x64xf32, #tpu.memory_space<vmem>>, %arg2: memref<4x64x32xbf16, #tpu.memory_space<vmem>>, %arg3: memref<1x32xf32, #tpu.memory_space<vmem>>, %arg4: memref<16x32x64xbf16, #tpu.memory_space<vmem>>, %arg5: memref<1x64xf32, #tpu.memory_space<vmem>>, %arg6: memref<9x64x64xbf16, #tpu.memory_space<vmem>>, %arg7: memref<1x64xf32, #tpu.memory_space<vmem>>, %arg8: memref<1x8x64xf32, #tpu.memory_space<vmem>>, %arg9: memref<4x2x4x2x8x32xf32, #tpu.memory_space<vmem>>, %arg10: memref<3x3x8x64xf32, #tpu.memory_space<vmem>>) attributes {dimension_semantics = [#tpu.dimension_semantics<parallel>], iteration_bounds = array<i64: 1>, scalar_prefetch = 0 : i64, scratch_operands = 2 : i64, tpu.core_type = #tpu.core_type<tc>, window_params = [{transform_indices = @transform_0, window_bounds = array<i64: 9, 9, 8, 64>}, {pipeline_mode = #tpu.pipeline_mode<synchronous>, transform_indices = @transform_1, window_bounds = array<i64: 4, 64, 32>}, {pipeline_mode = #tpu.pipeline_mode<synchronous>, transform_indices = @transform_2, window_bounds = array<i64: 1, 32>}, {pipeline_mode = #tpu.pipeline_mode<synchronous>, transform_indices = @transform_3, window_bounds = array<i64: 16, 32, 64>}, {pipeline_mode = #tpu.pipeline_mode<synchronous>, transform_indices = @transform_4, window_bounds = array<i64: 1, 64>}, {pipeline_mode = #tpu.pipeline_mode<synchronous>, transform_indices = @transform_5, window_bounds = array<i64: 9, 64, 64>}, {pipeline_mode = #tpu.pipeline_mode<synchronous>, transform_indices = @transform_6, window_bounds = array<i64: 1, 64>}, {transform_indices = @transform_7, window_bounds = array<i64: 1, 8, 64>}]} {
    %c0 = arith.constant 0 : index
    %c0_0 = arith.constant 0 : index
    %c0_1 = arith.constant 0 : index
    %c0_2 = arith.constant 0 : index
    %0 = vector.load %arg1[%c0, %c0_0, %c0_1, %c0_2] : memref<9x9x8x64xf32, #tpu.memory_space<vmem>>, vector<8x8x8x64xf32>
    %1 = vector.shape_cast %0 : vector<8x8x8x64xf32> to vector<512x64xf32>
    %2 = arith.truncf %1 : vector<512x64xf32> to vector<512x64xbf16>
    %c0_3 = arith.constant 0 : index
    %c0_4 = arith.constant 0 : index
    %c0_5 = arith.constant 0 : index
    %3 = vector.load %arg2[%c0_3, %c0_4, %c0_5] : memref<4x64x32xbf16, #tpu.memory_space<vmem>>, vector<1x64x32xbf16>
    %4 = vector.shape_cast %3 : vector<1x64x32xbf16> to vector<64x32xbf16>
    %cst = arith.constant dense<0.000000e+00> : vector<512x32xf32>
    %5 = tpu.matmul %2, %4, %cst {dimension_numbers = #tpu.dot_dimension_numbers<[1], [0], [0], [1], [0, 0, 1, 1], [], []>} : vector<512x64xbf16>, vector<64x32xbf16>, vector<512x32xf32> -> vector<512x32xf32>
    %c0_6 = arith.constant 0 : index
    %c1 = arith.constant 1 : index
    %c0_7 = arith.constant 0 : index
    %c0_8 = arith.constant 0 : index
    %6 = vector.load %arg1[%c0_6, %c1, %c0_7, %c0_8] : memref<9x9x8x64xf32, #tpu.memory_space<vmem>>, vector<8x8x8x64xf32>
    %7 = vector.shape_cast %6 : vector<8x8x8x64xf32> to vector<512x64xf32>
    %8 = arith.truncf %7 : vector<512x64xf32> to vector<512x64xbf16>
    %c1_9 = arith.constant 1 : index
    %c0_10 = arith.constant 0 : index
    %c0_11 = arith.constant 0 : index
    %9 = vector.load %arg2[%c1_9, %c0_10, %c0_11] : memref<4x64x32xbf16, #tpu.memory_space<vmem>>, vector<1x64x32xbf16>
    %10 = vector.shape_cast %9 : vector<1x64x32xbf16> to vector<64x32xbf16>
    %cst_12 = arith.constant dense<0.000000e+00> : vector<512x32xf32>
    %11 = tpu.matmul %8, %10, %cst_12 {dimension_numbers = #tpu.dot_dimension_numbers<[1], [0], [0], [1], [0, 0, 1, 1], [], []>} : vector<512x64xbf16>, vector<64x32xbf16>, vector<512x32xf32> -> vector<512x32xf32>
    %12 = arith.addf %5, %11 : vector<512x32xf32>
    %c1_13 = arith.constant 1 : index
    %c0_14 = arith.constant 0 : index
    %c0_15 = arith.constant 0 : index
    %c0_16 = arith.constant 0 : index
    %13 = vector.load %arg1[%c1_13, %c0_14, %c0_15, %c0_16] : memref<9x9x8x64xf32, #tpu.memory_space<vmem>>, vector<8x8x8x64xf32>
    %14 = vector.shape_cast %13 : vector<8x8x8x64xf32> to vector<512x64xf32>
    %15 = arith.truncf %14 : vector<512x64xf32> to vector<512x64xbf16>
    %c2 = arith.constant 2 : index
    %c0_17 = arith.constant 0 : index
    %c0_18 = arith.constant 0 : index
    %16 = vector.load %arg2[%c2, %c0_17, %c0_18] : memref<4x64x32xbf16, #tpu.memory_space<vmem>>, vector<1x64x32xbf16>
    %17 = vector.shape_cast %16 : vector<1x64x32xbf16> to vector<64x32xbf16>
    %cst_19 = arith.constant dense<0.000000e+00> : vector<512x32xf32>
    %18 = tpu.matmul %15, %17, %cst_19 {dimension_numbers = #tpu.dot_dimension_numbers<[1], [0], [0], [1], [0, 0, 1, 1], [], []>} : vector<512x64xbf16>, vector<64x32xbf16>, vector<512x32xf32> -> vector<512x32xf32>
    %19 = arith.addf %12, %18 : vector<512x32xf32>
    %c1_20 = arith.constant 1 : index
    %c1_21 = arith.constant 1 : index
    %c0_22 = arith.constant 0 : index
    %c0_23 = arith.constant 0 : index
    %20 = vector.load %arg1[%c1_20, %c1_21, %c0_22, %c0_23] : memref<9x9x8x64xf32, #tpu.memory_space<vmem>>, vector<8x8x8x64xf32>
    %21 = vector.shape_cast %20 : vector<8x8x8x64xf32> to vector<512x64xf32>
    %22 = arith.truncf %21 : vector<512x64xf32> to vector<512x64xbf16>
    %c3 = arith.constant 3 : index
    %c0_24 = arith.constant 0 : index
    %c0_25 = arith.constant 0 : index
    %23 = vector.load %arg2[%c3, %c0_24, %c0_25] : memref<4x64x32xbf16, #tpu.memory_space<vmem>>, vector<1x64x32xbf16>
    %24 = vector.shape_cast %23 : vector<1x64x32xbf16> to vector<64x32xbf16>
    %cst_26 = arith.constant dense<0.000000e+00> : vector<512x32xf32>
    %25 = tpu.matmul %22, %24, %cst_26 {dimension_numbers = #tpu.dot_dimension_numbers<[1], [0], [0], [1], [0, 0, 1, 1], [], []>} : vector<512x64xbf16>, vector<64x32xbf16>, vector<512x32xf32> -> vector<512x32xf32>
    %26 = arith.addf %19, %25 : vector<512x32xf32>
    %c0_27 = arith.constant 0 : index
    %c0_28 = arith.constant 0 : index
    %27 = vector.load %arg3[%c0_27, %c0_28] : memref<1x32xf32, #tpu.memory_space<vmem>>, vector<1x32xf32>
    %28 = vector.broadcast %27 : vector<1x32xf32> to vector<512x32xf32>
    %29 = arith.addf %26, %28 : vector<512x32xf32>
    %cst_29 = arith.constant 0.000000e+00 : f32
    %30 = vector.broadcast %cst_29 : f32 to vector<512x32xf32>
    %31 = arith.maximumf %29, %30 : vector<512x32xf32>
    %32 = vector.shape_cast %31 : vector<512x32xf32> to vector<4x2x4x2x8x32xf32>
    %c0_30 = arith.constant 0 : index
    %c0_31 = arith.constant 0 : index
    %c0_32 = arith.constant 0 : index
    %c0_33 = arith.constant 0 : index
    %c0_34 = arith.constant 0 : index
    %c0_35 = arith.constant 0 : index
    %33 = vector.load %arg9[%c0_30, %c0_31, %c0_32, %c0_33, %c0_34, %c0_35] : memref<4x2x4x2x8x32xf32, #tpu.memory_space<vmem>>, vector<4x2x4x2x8x32xf32>
    tpu.vector_store %arg9[%c0_30, %c0_31, %c0_32, %c0_33, %c0_34, %c0_35], %32 {strides = array<i32>} : memref<4x2x4x2x8x32xf32, #tpu.memory_space<vmem>>, vector<4x2x4x2x8x32xf32>,
    %c0_36 = arith.constant 0 : index
    %c0_37 = arith.constant 0 : index
    %c0_38 = arith.constant 0 : index
    %c0_39 = arith.constant 0 : index
    %c0_40 = arith.constant 0 : index
    %c0_41 = arith.constant 0 : index
    %34 = vector.load %arg9[%c0_36, %c0_37, %c0_38, %c0_39, %c0_40, %c0_41] : memref<4x2x4x2x8x32xf32, #tpu.memory_space<vmem>>, vector<3x1x3x1x8x32xf32>
    %35 = vector.shape_cast %34 : vector<3x1x3x1x8x32xf32> to vector<3x3x8x32xf32>
    %36 = vector.shape_cast %35 : vector<3x3x8x32xf32> to vector<72x32xf32>
    %37 = arith.truncf %36 : vector<72x32xf32> to vector<72x32xbf16>
    %c0_42 = arith.constant 0 : index
    %c0_43 = arith.constant 0 : index
    %c0_44 = arith.constant 0 : index
    %38 = vector.load %arg4[%c0_42, %c0_43, %c0_44] : memref<16x32x64xbf16, #tpu.memory_space<vmem>>, vector<1x32x64xbf16>
    %39 = vector.shape_cast %38 : vector<1x32x64xbf16> to vector<32x64xbf16>
    %cst_45 = arith.constant dense<0.000000e+00> : vector<72x64xf32>
    %40 = tpu.matmul %37, %39, %cst_45 {dimension_numbers = #tpu.dot_dimension_numbers<[1], [0], [0], [1], [0, 0, 1, 1], [], []>} : vector<72x32xbf16>, vector<32x64xbf16>, vector<72x64xf32> -> vector<72x64xf32>
    %c0_46 = arith.constant 0 : index
    %c0_47 = arith.constant 0 : index
    %c0_48 = arith.constant 0 : index
    %c1_49 = arith.constant 1 : index
    %c0_50 = arith.constant 0 : index
    %c0_51 = arith.constant 0 : index
    %41 = vector.load %arg9[%c0_46, %c0_47, %c0_48, %c1_49, %c0_50, %c0_51] : memref<4x2x4x2x8x32xf32, #tpu.memory_space<vmem>>, vector<3x1x3x1x8x32xf32>
    %42 = vector.shape_cast %41 : vector<3x1x3x1x8x32xf32> to vector<3x3x8x32xf32>
    %43 = vector.shape_cast %42 : vector<3x3x8x32xf32> to vector<72x32xf32>
    %44 = arith.truncf %43 : vector<72x32xf32> to vector<72x32xbf16>
    %c1_52 = arith.constant 1 : index
    %c0_53 = arith.constant 0 : index
    %c0_54 = arith.constant 0 : index
    %45 = vector.load %arg4[%c1_52, %c0_53, %c0_54] : memref<16x32x64xbf16, #tpu.memory_space<vmem>>, vector<1x32x64xbf16>
    %46 = vector.shape_cast %45 : vector<1x32x64xbf16> to vector<32x64xbf16>
    %cst_55 = arith.constant dense<0.000000e+00> : vector<72x64xf32>
    %47 = tpu.matmul %44, %46, %cst_55 {dimension_numbers = #tpu.dot_dimension_numbers<[1], [0], [0], [1], [0, 0, 1, 1], [], []>} : vector<72x32xbf16>, vector<32x64xbf16>, vector<72x64xf32> -> vector<72x64xf32>
    %48 = arith.addf %40, %47 : vector<72x64xf32>
    %c0_56 = arith.constant 0 : index
    %c0_57 = arith.constant 0 : index
    %c1_58 = arith.constant 1 : index
    %c0_59 = arith.constant 0 : index
    %c0_60 = arith.constant 0 : index
    %c0_61 = arith.constant 0 : index
    %49 = vector.load %arg9[%c0_56, %c0_57, %c1_58, %c0_59, %c0_60, %c0_61] : memref<4x2x4x2x8x32xf32, #tpu.memory_space<vmem>>, vector<3x1x3x1x8x32xf32>
    %50 = vector.shape_cast %49 : vector<3x1x3x1x8x32xf32> to vector<3x3x8x32xf32>
    %51 = vector.shape_cast %50 : vector<3x3x8x32xf32> to vector<72x32xf32>
    %52 = arith.truncf %51 : vector<72x32xf32> to vector<72x32xbf16>
    %c2_62 = arith.constant 2 : index
    %c0_63 = arith.constant 0 : index
    %c0_64 = arith.constant 0 : index
    %53 = vector.load %arg4[%c2_62, %c0_63, %c0_64] : memref<16x32x64xbf16, #tpu.memory_space<vmem>>, vector<1x32x64xbf16>
    %54 = vector.shape_cast %53 : vector<1x32x64xbf16> to vector<32x64xbf16>
    %cst_65 = arith.constant dense<0.000000e+00> : vector<72x64xf32>
    %55 = tpu.matmul %52, %54, %cst_65 {dimension_numbers = #tpu.dot_dimension_numbers<[1], [0], [0], [1], [0, 0, 1, 1], [], []>} : vector<72x32xbf16>, vector<32x64xbf16>, vector<72x64xf32> -> vector<72x64xf32>
    %56 = arith.addf %48, %55 : vector<72x64xf32>
    %c0_66 = arith.constant 0 : index
    %c0_67 = arith.constant 0 : index
    %c1_68 = arith.constant 1 : index
    %c1_69 = arith.constant 1 : index
    %c0_70 = arith.constant 0 : index
    %c0_71 = arith.constant 0 : index
    %57 = vector.load %arg9[%c0_66, %c0_67, %c1_68, %c1_69, %c0_70, %c0_71] : memref<4x2x4x2x8x32xf32, #tpu.memory_space<vmem>>, vector<3x1x3x1x8x32xf32>
    %58 = vector.shape_cast %57 : vector<3x1x3x1x8x32xf32> to vector<3x3x8x32xf32>
    %59 = vector.shape_cast %58 : vector<3x3x8x32xf32> to vector<72x32xf32>
    %60 = arith.truncf %59 : vector<72x32xf32> to vector<72x32xbf16>
    %c3_72 = arith.constant 3 : index
    %c0_73 = arith.constant 0 : index
    %c0_74 = arith.constant 0 : index
    %61 = vector.load %arg4[%c3_72, %c0_73, %c0_74] : memref<16x32x64xbf16, #tpu.memory_space<vmem>>, vector<1x32x64xbf16>
    %62 = vector.shape_cast %61 : vector<1x32x64xbf16> to vector<32x64xbf16>
    %cst_75 = arith.constant dense<0.000000e+00> : vector<72x64xf32>
    %63 = tpu.matmul %60, %62, %cst_75 {dimension_numbers = #tpu.dot_dimension_numbers<[1], [0], [0], [1], [0, 0, 1, 1], [], []>} : vector<72x32xbf16>, vector<32x64xbf16>, vector<72x64xf32> -> vector<72x64xf32>
    %64 = arith.addf %56, %63 : vector<72x64xf32>
    %c0_76 = arith.constant 0 : index
    %c1_77 = arith.constant 1 : index
    %c0_78 = arith.constant 0 : index
    %c0_79 = arith.constant 0 : index
    %c0_80 = arith.constant 0 : index
    %c0_81 = arith.constant 0 : index
    %65 = vector.load %arg9[%c0_76, %c1_77, %c0_78, %c0_79, %c0_80, %c0_81] : memref<4x2x4x2x8x32xf32, #tpu.memory_space<vmem>>, vector<3x1x3x1x8x32xf32>
    %66 = vector.shape_cast %65 : vector<3x1x3x1x8x32xf32> to vector<3x3x8x32xf32>
    %67 = vector.shape_cast %66 : vector<3x3x8x32xf32> to vector<72x32xf32>
    %68 = arith.truncf %67 : vector<72x32xf32> to vector<72x32xbf16>
    %c4 = arith.constant 4 : index
    %c0_82 = arith.constant 0 : index
    %c0_83 = arith.constant 0 : index
    %69 = vector.load %arg4[%c4, %c0_82, %c0_83] : memref<16x32x64xbf16, #tpu.memory_space<vmem>>, vector<1x32x64xbf16>
    %70 = vector.shape_cast %69 : vector<1x32x64xbf16> to vector<32x64xbf16>
    %cst_84 = arith.constant dense<0.000000e+00> : vector<72x64xf32>
    %71 = tpu.matmul %68, %70, %cst_84 {dimension_numbers = #tpu.dot_dimension_numbers<[1], [0], [0], [1], [0, 0, 1, 1], [], []>} : vector<72x32xbf16>, vector<32x64xbf16>, vector<72x64xf32> -> vector<72x64xf32>
    %72 = arith.addf %64, %71 : vector<72x64xf32>
    %c0_85 = arith.constant 0 : index
    %c1_86 = arith.constant 1 : index
    %c0_87 = arith.constant 0 : index
    %c1_88 = arith.constant 1 : index
    %c0_89 = arith.constant 0 : index
    %c0_90 = arith.constant 0 : index
    %73 = vector.load %arg9[%c0_85, %c1_86, %c0_87, %c1_88, %c0_89, %c0_90] : memref<4x2x4x2x8x32xf32, #tpu.memory_space<vmem>>, vector<3x1x3x1x8x32xf32>
    %74 = vector.shape_cast %73 : vector<3x1x3x1x8x32xf32> to vector<3x3x8x32xf32>
    %75 = vector.shape_cast %74 : vector<3x3x8x32xf32> to vector<72x32xf32>
    %76 = arith.truncf %75 : vector<72x32xf32> to vector<72x32xbf16>
    %c5 = arith.constant 5 : index
    %c0_91 = arith.constant 0 : index
    %c0_92 = arith.constant 0 : index
    %77 = vector.load %arg4[%c5, %c0_91, %c0_92] : memref<16x32x64xbf16, #tpu.memory_space<vmem>>, vector<1x32x64xbf16>
    %78 = vector.shape_cast %77 : vector<1x32x64xbf16> to vector<32x64xbf16>
    %cst_93 = arith.constant dense<0.000000e+00> : vector<72x64xf32>
    %79 = tpu.matmul %76, %78, %cst_93 {dimension_numbers = #tpu.dot_dimension_numbers<[1], [0], [0], [1], [0, 0, 1, 1], [], []>} : vector<72x32xbf16>, vector<32x64xbf16>, vector<72x64xf32> -> vector<72x64xf32>
    %80 = arith.addf %72, %79 : vector<72x64xf32>
    %c0_94 = arith.constant 0 : index
    %c1_95 = arith.constant 1 : index
    %c1_96 = arith.constant 1 : index
    %c0_97 = arith.constant 0 : index
    %c0_98 = arith.constant 0 : index
    %c0_99 = arith.constant 0 : index
    %81 = vector.load %arg9[%c0_94, %c1_95, %c1_96, %c0_97, %c0_98, %c0_99] : memref<4x2x4x2x8x32xf32, #tpu.memory_space<vmem>>, vector<3x1x3x1x8x32xf32>
    %82 = vector.shape_cast %81 : vector<3x1x3x1x8x32xf32> to vector<3x3x8x32xf32>
    %83 = vector.shape_cast %82 : vector<3x3x8x32xf32> to vector<72x32xf32>
    %84 = arith.truncf %83 : vector<72x32xf32> to vector<72x32xbf16>
    %c6 = arith.constant 6 : index
    %c0_100 = arith.constant 0 : index
    %c0_101 = arith.constant 0 : index
    %85 = vector.load %arg4[%c6, %c0_100, %c0_101] : memref<16x32x64xbf16, #tpu.memory_space<vmem>>, vector<1x32x64xbf16>
    %86 = vector.shape_cast %85 : vector<1x32x64xbf16> to vector<32x64xbf16>
    %cst_102 = arith.constant dense<0.000000e+00> : vector<72x64xf32>
    %87 = tpu.matmul %84, %86, %cst_102 {dimension_numbers = #tpu.dot_dimension_numbers<[1], [0], [0], [1], [0, 0, 1, 1], [], []>} : vector<72x32xbf16>, vector<32x64xbf16>, vector<72x64xf32> -> vector<72x64xf32>
    %88 = arith.addf %80, %87 : vector<72x64xf32>
    %c0_103 = arith.constant 0 : index
    %c1_104 = arith.constant 1 : index
    %c1_105 = arith.constant 1 : index
    %c1_106 = arith.constant 1 : index
    %c0_107 = arith.constant 0 : index
    %c0_108 = arith.constant 0 : index
    %89 = vector.load %arg9[%c0_103, %c1_104, %c1_105, %c1_106, %c0_107, %c0_108] : memref<4x2x4x2x8x32xf32, #tpu.memory_space<vmem>>, vector<3x1x3x1x8x32xf32>
    %90 = vector.shape_cast %89 : vector<3x1x3x1x8x32xf32> to vector<3x3x8x32xf32>
    %91 = vector.shape_cast %90 : vector<3x3x8x32xf32> to vector<72x32xf32>
    %92 = arith.truncf %91 : vector<72x32xf32> to vector<72x32xbf16>
    %c7 = arith.constant 7 : index
    %c0_109 = arith.constant 0 : index
    %c0_110 = arith.constant 0 : index
    %93 = vector.load %arg4[%c7, %c0_109, %c0_110] : memref<16x32x64xbf16, #tpu.memory_space<vmem>>, vector<1x32x64xbf16>
    %94 = vector.shape_cast %93 : vector<1x32x64xbf16> to vector<32x64xbf16>
    %cst_111 = arith.constant dense<0.000000e+00> : vector<72x64xf32>
    %95 = tpu.matmul %92, %94, %cst_111 {dimension_numbers = #tpu.dot_dimension_numbers<[1], [0], [0], [1], [0, 0, 1, 1], [], []>} : vector<72x32xbf16>, vector<32x64xbf16>, vector<72x64xf32> -> vector<72x64xf32>
    %96 = arith.addf %88, %95 : vector<72x64xf32>
    %c1_112 = arith.constant 1 : index
    %c0_113 = arith.constant 0 : index
    %c0_114 = arith.constant 0 : index
    %c0_115 = arith.constant 0 : index
    %c0_116 = arith.constant 0 : index
    %c0_117 = arith.constant 0 : index
    %97 = vector.load %arg9[%c1_112, %c0_113, %c0_114, %c0_115, %c0_116, %c0_117] : memref<4x2x4x2x8x32xf32, #tpu.memory_space<vmem>>, vector<3x1x3x1x8x32xf32>
    %98 = vector.shape_cast %97 : vector<3x1x3x1x8x32xf32> to vector<3x3x8x32xf32>
    %99 = vector.shape_cast %98 : vector<3x3x8x32xf32> to vector<72x32xf32>
    %100 = arith.truncf %99 : vector<72x32xf32> to vector<72x32xbf16>
    %c8 = arith.constant 8 : index
    %c0_118 = arith.constant 0 : index
    %c0_119 = arith.constant 0 : index
    %101 = vector.load %arg4[%c8, %c0_118, %c0_119] : memref<16x32x64xbf16, #tpu.memory_space<vmem>>, vector<1x32x64xbf16>
    %102 = vector.shape_cast %101 : vector<1x32x64xbf16> to vector<32x64xbf16>
    %cst_120 = arith.constant dense<0.000000e+00> : vector<72x64xf32>
    %103 = tpu.matmul %100, %102, %cst_120 {dimension_numbers = #tpu.dot_dimension_numbers<[1], [0], [0], [1], [0, 0, 1, 1], [], []>} : vector<72x32xbf16>, vector<32x64xbf16>, vector<72x64xf32> -> vector<72x64xf32>
    %104 = arith.addf %96, %103 : vector<72x64xf32>
    %c1_121 = arith.constant 1 : index
    %c0_122 = arith.constant 0 : index
    %c0_123 = arith.constant 0 : index
    %c1_124 = arith.constant 1 : index
    %c0_125 = arith.constant 0 : index
    %c0_126 = arith.constant 0 : index
    %105 = vector.load %arg9[%c1_121, %c0_122, %c0_123, %c1_124, %c0_125, %c0_126] : memref<4x2x4x2x8x32xf32, #tpu.memory_space<vmem>>, vector<3x1x3x1x8x32xf32>
    %106 = vector.shape_cast %105 : vector<3x1x3x1x8x32xf32> to vector<3x3x8x32xf32>
    %107 = vector.shape_cast %106 : vector<3x3x8x32xf32> to vector<72x32xf32>
    %108 = arith.truncf %107 : vector<72x32xf32> to vector<72x32xbf16>
    %c9 = arith.constant 9 : index
    %c0_127 = arith.constant 0 : index
    %c0_128 = arith.constant 0 : index
    %109 = vector.load %arg4[%c9, %c0_127, %c0_128] : memref<16x32x64xbf16, #tpu.memory_space<vmem>>, vector<1x32x64xbf16>
    %110 = vector.shape_cast %109 : vector<1x32x64xbf16> to vector<32x64xbf16>
    %cst_129 = arith.constant dense<0.000000e+00> : vector<72x64xf32>
    %111 = tpu.matmul %108, %110, %cst_129 {dimension_numbers = #tpu.dot_dimension_numbers<[1], [0], [0], [1], [0, 0, 1, 1], [], []>} : vector<72x32xbf16>, vector<32x64xbf16>, vector<72x64xf32> -> vector<72x64xf32>
    %112 = arith.addf %104, %111 : vector<72x64xf32>
    %c1_130 = arith.constant 1 : index
    %c0_131 = arith.constant 0 : index
    %c1_132 = arith.constant 1 : index
    %c0_133 = arith.constant 0 : index
    %c0_134 = arith.constant 0 : index
    %c0_135 = arith.constant 0 : index
    %113 = vector.load %arg9[%c1_130, %c0_131, %c1_132, %c0_133, %c0_134, %c0_135] : memref<4x2x4x2x8x32xf32, #tpu.memory_space<vmem>>, vector<3x1x3x1x8x32xf32>
    %114 = vector.shape_cast %113 : vector<3x1x3x1x8x32xf32> to vector<3x3x8x32xf32>
    %115 = vector.shape_cast %114 : vector<3x3x8x32xf32> to vector<72x32xf32>
    %116 = arith.truncf %115 : vector<72x32xf32> to vector<72x32xbf16>
    %c10 = arith.constant 10 : index
    %c0_136 = arith.constant 0 : index
    %c0_137 = arith.constant 0 : index
    %117 = vector.load %arg4[%c10, %c0_136, %c0_137] : memref<16x32x64xbf16, #tpu.memory_space<vmem>>, vector<1x32x64xbf16>
    %118 = vector.shape_cast %117 : vector<1x32x64xbf16> to vector<32x64xbf16>
    %cst_138 = arith.constant dense<0.000000e+00> : vector<72x64xf32>
    %119 = tpu.matmul %116, %118, %cst_138 {dimension_numbers = #tpu.dot_dimension_numbers<[1], [0], [0], [1], [0, 0, 1, 1], [], []>} : vector<72x32xbf16>, vector<32x64xbf16>, vector<72x64xf32> -> vector<72x64xf32>
    %120 = arith.addf %112, %119 : vector<72x64xf32>
    %c1_139 = arith.constant 1 : index
    %c0_140 = arith.constant 0 : index
    %c1_141 = arith.constant 1 : index
    %c1_142 = arith.constant 1 : index
    %c0_143 = arith.constant 0 : index
    %c0_144 = arith.constant 0 : index
    %121 = vector.load %arg9[%c1_139, %c0_140, %c1_141, %c1_142, %c0_143, %c0_144] : memref<4x2x4x2x8x32xf32, #tpu.memory_space<vmem>>, vector<3x1x3x1x8x32xf32>
    %122 = vector.shape_cast %121 : vector<3x1x3x1x8x32xf32> to vector<3x3x8x32xf32>
    %123 = vector.shape_cast %122 : vector<3x3x8x32xf32> to vector<72x32xf32>
    %124 = arith.truncf %123 : vector<72x32xf32> to vector<72x32xbf16>
    %c11 = arith.constant 11 : index
    %c0_145 = arith.constant 0 : index
    %c0_146 = arith.constant 0 : index
    %125 = vector.load %arg4[%c11, %c0_145, %c0_146] : memref<16x32x64xbf16, #tpu.memory_space<vmem>>, vector<1x32x64xbf16>
    %126 = vector.shape_cast %125 : vector<1x32x64xbf16> to vector<32x64xbf16>
    %cst_147 = arith.constant dense<0.000000e+00> : vector<72x64xf32>
    %127 = tpu.matmul %124, %126, %cst_147 {dimension_numbers = #tpu.dot_dimension_numbers<[1], [0], [0], [1], [0, 0, 1, 1], [], []>} : vector<72x32xbf16>, vector<32x64xbf16>, vector<72x64xf32> -> vector<72x64xf32>
    %128 = arith.addf %120, %127 : vector<72x64xf32>
    %c1_148 = arith.constant 1 : index
    %c1_149 = arith.constant 1 : index
    %c0_150 = arith.constant 0 : index
    %c0_151 = arith.constant 0 : index
    %c0_152 = arith.constant 0 : index
    %c0_153 = arith.constant 0 : index
    %129 = vector.load %arg9[%c1_148, %c1_149, %c0_150, %c0_151, %c0_152, %c0_153] : memref<4x2x4x2x8x32xf32, #tpu.memory_space<vmem>>, vector<3x1x3x1x8x32xf32>
    %130 = vector.shape_cast %129 : vector<3x1x3x1x8x32xf32> to vector<3x3x8x32xf32>
    %131 = vector.shape_cast %130 : vector<3x3x8x32xf32> to vector<72x32xf32>
    %132 = arith.truncf %131 : vector<72x32xf32> to vector<72x32xbf16>
    %c12 = arith.constant 12 : index
    %c0_154 = arith.constant 0 : index
    %c0_155 = arith.constant 0 : index
    %133 = vector.load %arg4[%c12, %c0_154, %c0_155] : memref<16x32x64xbf16, #tpu.memory_space<vmem>>, vector<1x32x64xbf16>
    %134 = vector.shape_cast %133 : vector<1x32x64xbf16> to vector<32x64xbf16>
    %cst_156 = arith.constant dense<0.000000e+00> : vector<72x64xf32>
    %135 = tpu.matmul %132, %134, %cst_156 {dimension_numbers = #tpu.dot_dimension_numbers<[1], [0], [0], [1], [0, 0, 1, 1], [], []>} : vector<72x32xbf16>, vector<32x64xbf16>, vector<72x64xf32> -> vector<72x64xf32>
    %136 = arith.addf %128, %135 : vector<72x64xf32>
    %c1_157 = arith.constant 1 : index
    %c1_158 = arith.constant 1 : index
    %c0_159 = arith.constant 0 : index
    %c1_160 = arith.constant 1 : index
    %c0_161 = arith.constant 0 : index
    %c0_162 = arith.constant 0 : index
    %137 = vector.load %arg9[%c1_157, %c1_158, %c0_159, %c1_160, %c0_161, %c0_162] : memref<4x2x4x2x8x32xf32, #tpu.memory_space<vmem>>, vector<3x1x3x1x8x32xf32>
    %138 = vector.shape_cast %137 : vector<3x1x3x1x8x32xf32> to vector<3x3x8x32xf32>
    %139 = vector.shape_cast %138 : vector<3x3x8x32xf32> to vector<72x32xf32>
    %140 = arith.truncf %139 : vector<72x32xf32> to vector<72x32xbf16>
    %c13 = arith.constant 13 : index
    %c0_163 = arith.constant 0 : index
    %c0_164 = arith.constant 0 : index
    %141 = vector.load %arg4[%c13, %c0_163, %c0_164] : memref<16x32x64xbf16, #tpu.memory_space<vmem>>, vector<1x32x64xbf16>
    %142 = vector.shape_cast %141 : vector<1x32x64xbf16> to vector<32x64xbf16>
    %cst_165 = arith.constant dense<0.000000e+00> : vector<72x64xf32>
    %143 = tpu.matmul %140, %142, %cst_165 {dimension_numbers = #tpu.dot_dimension_numbers<[1], [0], [0], [1], [0, 0, 1, 1], [], []>} : vector<72x32xbf16>, vector<32x64xbf16>, vector<72x64xf32> -> vector<72x64xf32>
    %144 = arith.addf %136, %143 : vector<72x64xf32>
    %c1_166 = arith.constant 1 : index
    %c1_167 = arith.constant 1 : index
    %c1_168 = arith.constant 1 : index
    %c0_169 = arith.constant 0 : index
    %c0_170 = arith.constant 0 : index
    %c0_171 = arith.constant 0 : index
    %145 = vector.load %arg9[%c1_166, %c1_167, %c1_168, %c0_169, %c0_170, %c0_171] : memref<4x2x4x2x8x32xf32, #tpu.memory_space<vmem>>, vector<3x1x3x1x8x32xf32>
    %146 = vector.shape_cast %145 : vector<3x1x3x1x8x32xf32> to vector<3x3x8x32xf32>
    %147 = vector.shape_cast %146 : vector<3x3x8x32xf32> to vector<72x32xf32>
    %148 = arith.truncf %147 : vector<72x32xf32> to vector<72x32xbf16>
    %c14 = arith.constant 14 : index
    %c0_172 = arith.constant 0 : index
    %c0_173 = arith.constant 0 : index
    %149 = vector.load %arg4[%c14, %c0_172, %c0_173] : memref<16x32x64xbf16, #tpu.memory_space<vmem>>, vector<1x32x64xbf16>
    %150 = vector.shape_cast %149 : vector<1x32x64xbf16> to vector<32x64xbf16>
    %cst_174 = arith.constant dense<0.000000e+00> : vector<72x64xf32>
    %151 = tpu.matmul %148, %150, %cst_174 {dimension_numbers = #tpu.dot_dimension_numbers<[1], [0], [0], [1], [0, 0, 1, 1], [], []>} : vector<72x32xbf16>, vector<32x64xbf16>, vector<72x64xf32> -> vector<72x64xf32>
    %152 = arith.addf %144, %151 : vector<72x64xf32>
    %c1_175 = arith.constant 1 : index
    %c1_176 = arith.constant 1 : index
    %c1_177 = arith.constant 1 : index
    %c1_178 = arith.constant 1 : index
    %c0_179 = arith.constant 0 : index
    %c0_180 = arith.constant 0 : index
    %153 = vector.load %arg9[%c1_175, %c1_176, %c1_177, %c1_178, %c0_179, %c0_180] : memref<4x2x4x2x8x32xf32, #tpu.memory_space<vmem>>, vector<3x1x3x1x8x32xf32>
    %154 = vector.shape_cast %153 : vector<3x1x3x1x8x32xf32> to vector<3x3x8x32xf32>
    %155 = vector.shape_cast %154 : vector<3x3x8x32xf32> to vector<72x32xf32>
    %156 = arith.truncf %155 : vector<72x32xf32> to vector<72x32xbf16>
    %c15 = arith.constant 15 : index
    %c0_181 = arith.constant 0 : index
    %c0_182 = arith.constant 0 : index
    %157 = vector.load %arg4[%c15, %c0_181, %c0_182] : memref<16x32x64xbf16, #tpu.memory_space<vmem>>, vector<1x32x64xbf16>
    %158 = vector.shape_cast %157 : vector<1x32x64xbf16> to vector<32x64xbf16>
    %cst_183 = arith.constant dense<0.000000e+00> : vector<72x64xf32>
    %159 = tpu.matmul %156, %158, %cst_183 {dimension_numbers = #tpu.dot_dimension_numbers<[1], [0], [0], [1], [0, 0, 1, 1], [], []>} : vector<72x32xbf16>, vector<32x64xbf16>, vector<72x64xf32> -> vector<72x64xf32>
    %160 = arith.addf %152, %159 : vector<72x64xf32>
    %c0_184 = arith.constant 0 : index
    %c0_185 = arith.constant 0 : index
    %161 = vector.load %arg5[%c0_184, %c0_185] : memref<1x64xf32, #tpu.memory_space<vmem>>, vector<1x64xf32>
    %162 = vector.broadcast %161 : vector<1x64xf32> to vector<72x64xf32>
    %163 = arith.addf %160, %162 : vector<72x64xf32>
    %cst_186 = arith.constant 0.000000e+00 : f32
    %164 = vector.broadcast %cst_186 : f32 to vector<72x64xf32>
    %165 = arith.maximumf %163, %164 : vector<72x64xf32>
    %166 = vector.shape_cast %165 : vector<72x64xf32> to vector<3x3x8x64xf32>
    %c0_187 = arith.constant 0 : index
    %c0_188 = arith.constant 0 : index
    %c0_189 = arith.constant 0 : index
    %c0_190 = arith.constant 0 : index
    %167 = vector.load %arg10[%c0_187, %c0_188, %c0_189, %c0_190] : memref<3x3x8x64xf32, #tpu.memory_space<vmem>>, vector<3x3x8x64xf32>
    tpu.vector_store %arg10[%c0_187, %c0_188, %c0_189, %c0_190], %166 {strides = array<i32>} : memref<3x3x8x64xf32, #tpu.memory_space<vmem>>, vector<3x3x8x64xf32>,
    %c0_191 = arith.constant 0 : index
    %c0_192 = arith.constant 0 : index
    %c0_193 = arith.constant 0 : index
    %c0_194 = arith.constant 0 : index
    %168 = vector.load %arg10[%c0_191, %c0_192, %c0_193, %c0_194] : memref<3x3x8x64xf32, #tpu.memory_space<vmem>>, vector<1x1x8x64xf32>
    %169 = vector.shape_cast %168 : vector<1x1x8x64xf32> to vector<8x64xf32>
    %170 = arith.truncf %169 : vector<8x64xf32> to vector<8x64xbf16>
    %c0_195 = arith.constant 0 : index
    %c0_196 = arith.constant 0 : index
    %c0_197 = arith.constant 0 : index
    %171 = vector.load %arg6[%c0_195, %c0_196, %c0_197] : memref<9x64x64xbf16, #tpu.memory_space<vmem>>, vector<1x64x64xbf16>
    %172 = vector.shape_cast %171 : vector<1x64x64xbf16> to vector<64x64xbf16>
    %cst_198 = arith.constant dense<0.000000e+00> : vector<8x64xf32>
    %173 = tpu.matmul %170, %172, %cst_198 {dimension_numbers = #tpu.dot_dimension_numbers<[1], [0], [0], [1], [0, 0, 1, 1], [], []>} : vector<8x64xbf16>, vector<64x64xbf16>, vector<8x64xf32> -> vector<8x64xf32>
    %c0_199 = arith.constant 0 : index
    %c1_200 = arith.constant 1 : index
    %c0_201 = arith.constant 0 : index
    %c0_202 = arith.constant 0 : index
    %174 = vector.load %arg10[%c0_199, %c1_200, %c0_201, %c0_202] : memref<3x3x8x64xf32, #tpu.memory_space<vmem>>, vector<1x1x8x64xf32>
    %175 = vector.shape_cast %174 : vector<1x1x8x64xf32> to vector<8x64xf32>
    %176 = arith.truncf %175 : vector<8x64xf32> to vector<8x64xbf16>
    %c1_203 = arith.constant 1 : index
    %c0_204 = arith.constant 0 : index
    %c0_205 = arith.constant 0 : index
    %177 = vector.load %arg6[%c1_203, %c0_204, %c0_205] : memref<9x64x64xbf16, #tpu.memory_space<vmem>>, vector<1x64x64xbf16>
    %178 = vector.shape_cast %177 : vector<1x64x64xbf16> to vector<64x64xbf16>
    %cst_206 = arith.constant dense<0.000000e+00> : vector<8x64xf32>
    %179 = tpu.matmul %176, %178, %cst_206 {dimension_numbers = #tpu.dot_dimension_numbers<[1], [0], [0], [1], [0, 0, 1, 1], [], []>} : vector<8x64xbf16>, vector<64x64xbf16>, vector<8x64xf32> -> vector<8x64xf32>
    %180 = arith.addf %173, %179 : vector<8x64xf32>
    %c0_207 = arith.constant 0 : index
    %c2_208 = arith.constant 2 : index
    %c0_209 = arith.constant 0 : index
    %c0_210 = arith.constant 0 : index
    %181 = vector.load %arg10[%c0_207, %c2_208, %c0_209, %c0_210] : memref<3x3x8x64xf32, #tpu.memory_space<vmem>>, vector<1x1x8x64xf32>
    %182 = vector.shape_cast %181 : vector<1x1x8x64xf32> to vector<8x64xf32>
    %183 = arith.truncf %182 : vector<8x64xf32> to vector<8x64xbf16>
    %c2_211 = arith.constant 2 : index
    %c0_212 = arith.constant 0 : index
    %c0_213 = arith.constant 0 : index
    %184 = vector.load %arg6[%c2_211, %c0_212, %c0_213] : memref<9x64x64xbf16, #tpu.memory_space<vmem>>, vector<1x64x64xbf16>
    %185 = vector.shape_cast %184 : vector<1x64x64xbf16> to vector<64x64xbf16>
    %cst_214 = arith.constant dense<0.000000e+00> : vector<8x64xf32>
    %186 = tpu.matmul %183, %185, %cst_214 {dimension_numbers = #tpu.dot_dimension_numbers<[1], [0], [0], [1], [0, 0, 1, 1], [], []>} : vector<8x64xbf16>, vector<64x64xbf16>, vector<8x64xf32> -> vector<8x64xf32>
    %187 = arith.addf %180, %186 : vector<8x64xf32>
    %c1_215 = arith.constant 1 : index
    %c0_216 = arith.constant 0 : index
    %c0_217 = arith.constant 0 : index
    %c0_218 = arith.constant 0 : index
    %188 = vector.load %arg10[%c1_215, %c0_216, %c0_217, %c0_218] : memref<3x3x8x64xf32, #tpu.memory_space<vmem>>, vector<1x1x8x64xf32>
    %189 = vector.shape_cast %188 : vector<1x1x8x64xf32> to vector<8x64xf32>
    %190 = arith.truncf %189 : vector<8x64xf32> to vector<8x64xbf16>
    %c3_219 = arith.constant 3 : index
    %c0_220 = arith.constant 0 : index
    %c0_221 = arith.constant 0 : index
    %191 = vector.load %arg6[%c3_219, %c0_220, %c0_221] : memref<9x64x64xbf16, #tpu.memory_space<vmem>>, vector<1x64x64xbf16>
    %192 = vector.shape_cast %191 : vector<1x64x64xbf16> to vector<64x64xbf16>
    %cst_222 = arith.constant dense<0.000000e+00> : vector<8x64xf32>
    %193 = tpu.matmul %190, %192, %cst_222 {dimension_numbers = #tpu.dot_dimension_numbers<[1], [0], [0], [1], [0, 0, 1, 1], [], []>} : vector<8x64xbf16>, vector<64x64xbf16>, vector<8x64xf32> -> vector<8x64xf32>
    %194 = arith.addf %187, %193 : vector<8x64xf32>
    %c1_223 = arith.constant 1 : index
    %c1_224 = arith.constant 1 : index
    %c0_225 = arith.constant 0 : index
    %c0_226 = arith.constant 0 : index
    %195 = vector.load %arg10[%c1_223, %c1_224, %c0_225, %c0_226] : memref<3x3x8x64xf32, #tpu.memory_space<vmem>>, vector<1x1x8x64xf32>
    %196 = vector.shape_cast %195 : vector<1x1x8x64xf32> to vector<8x64xf32>
    %197 = arith.truncf %196 : vector<8x64xf32> to vector<8x64xbf16>
    %c4_227 = arith.constant 4 : index
    %c0_228 = arith.constant 0 : index
    %c0_229 = arith.constant 0 : index
    %198 = vector.load %arg6[%c4_227, %c0_228, %c0_229] : memref<9x64x64xbf16, #tpu.memory_space<vmem>>, vector<1x64x64xbf16>
    %199 = vector.shape_cast %198 : vector<1x64x64xbf16> to vector<64x64xbf16>
    %cst_230 = arith.constant dense<0.000000e+00> : vector<8x64xf32>
    %200 = tpu.matmul %197, %199, %cst_230 {dimension_numbers = #tpu.dot_dimension_numbers<[1], [0], [0], [1], [0, 0, 1, 1], [], []>} : vector<8x64xbf16>, vector<64x64xbf16>, vector<8x64xf32> -> vector<8x64xf32>
    %201 = arith.addf %194, %200 : vector<8x64xf32>
    %c1_231 = arith.constant 1 : index
    %c2_232 = arith.constant 2 : index
    %c0_233 = arith.constant 0 : index
    %c0_234 = arith.constant 0 : index
    %202 = vector.load %arg10[%c1_231, %c2_232, %c0_233, %c0_234] : memref<3x3x8x64xf32, #tpu.memory_space<vmem>>, vector<1x1x8x64xf32>
    %203 = vector.shape_cast %202 : vector<1x1x8x64xf32> to vector<8x64xf32>
    %204 = arith.truncf %203 : vector<8x64xf32> to vector<8x64xbf16>
    %c5_235 = arith.constant 5 : index
    %c0_236 = arith.constant 0 : index
    %c0_237 = arith.constant 0 : index
    %205 = vector.load %arg6[%c5_235, %c0_236, %c0_237] : memref<9x64x64xbf16, #tpu.memory_space<vmem>>, vector<1x64x64xbf16>
    %206 = vector.shape_cast %205 : vector<1x64x64xbf16> to vector<64x64xbf16>
    %cst_238 = arith.constant dense<0.000000e+00> : vector<8x64xf32>
    %207 = tpu.matmul %204, %206, %cst_238 {dimension_numbers = #tpu.dot_dimension_numbers<[1], [0], [0], [1], [0, 0, 1, 1], [], []>} : vector<8x64xbf16>, vector<64x64xbf16>, vector<8x64xf32> -> vector<8x64xf32>
    %208 = arith.addf %201, %207 : vector<8x64xf32>
    %c2_239 = arith.constant 2 : index
    %c0_240 = arith.constant 0 : index
    %c0_241 = arith.constant 0 : index
    %c0_242 = arith.constant 0 : index
    %209 = vector.load %arg10[%c2_239, %c0_240, %c0_241, %c0_242] : memref<3x3x8x64xf32, #tpu.memory_space<vmem>>, vector<1x1x8x64xf32>
    %210 = vector.shape_cast %209 : vector<1x1x8x64xf32> to vector<8x64xf32>
    %211 = arith.truncf %210 : vector<8x64xf32> to vector<8x64xbf16>
    %c6_243 = arith.constant 6 : index
    %c0_244 = arith.constant 0 : index
    %c0_245 = arith.constant 0 : index
    %212 = vector.load %arg6[%c6_243, %c0_244, %c0_245] : memref<9x64x64xbf16, #tpu.memory_space<vmem>>, vector<1x64x64xbf16>
    %213 = vector.shape_cast %212 : vector<1x64x64xbf16> to vector<64x64xbf16>
    %cst_246 = arith.constant dense<0.000000e+00> : vector<8x64xf32>
    %214 = tpu.matmul %211, %213, %cst_246 {dimension_numbers = #tpu.dot_dimension_numbers<[1], [0], [0], [1], [0, 0, 1, 1], [], []>} : vector<8x64xbf16>, vector<64x64xbf16>, vector<8x64xf32> -> vector<8x64xf32>
    %215 = arith.addf %208, %214 : vector<8x64xf32>
    %c2_247 = arith.constant 2 : index
    %c1_248 = arith.constant 1 : index
    %c0_249 = arith.constant 0 : index
    %c0_250 = arith.constant 0 : index
    %216 = vector.load %arg10[%c2_247, %c1_248, %c0_249, %c0_250] : memref<3x3x8x64xf32, #tpu.memory_space<vmem>>, vector<1x1x8x64xf32>
    %217 = vector.shape_cast %216 : vector<1x1x8x64xf32> to vector<8x64xf32>
    %218 = arith.truncf %217 : vector<8x64xf32> to vector<8x64xbf16>
    %c7_251 = arith.constant 7 : index
    %c0_252 = arith.constant 0 : index
    %c0_253 = arith.constant 0 : index
    %219 = vector.load %arg6[%c7_251, %c0_252, %c0_253] : memref<9x64x64xbf16, #tpu.memory_space<vmem>>, vector<1x64x64xbf16>
    %220 = vector.shape_cast %219 : vector<1x64x64xbf16> to vector<64x64xbf16>
    %cst_254 = arith.constant dense<0.000000e+00> : vector<8x64xf32>
    %221 = tpu.matmul %218, %220, %cst_254 {dimension_numbers = #tpu.dot_dimension_numbers<[1], [0], [0], [1], [0, 0, 1, 1], [], []>} : vector<8x64xbf16>, vector<64x64xbf16>, vector<8x64xf32> -> vector<8x64xf32>
    %222 = arith.addf %215, %221 : vector<8x64xf32>
    %c2_255 = arith.constant 2 : index
    %c2_256 = arith.constant 2 : index
    %c0_257 = arith.constant 0 : index
    %c0_258 = arith.constant 0 : index
    %223 = vector.load %arg10[%c2_255, %c2_256, %c0_257, %c0_258] : memref<3x3x8x64xf32, #tpu.memory_space<vmem>>, vector<1x1x8x64xf32>
    %224 = vector.shape_cast %223 : vector<1x1x8x64xf32> to vector<8x64xf32>
    %225 = arith.truncf %224 : vector<8x64xf32> to vector<8x64xbf16>
    %c8_259 = arith.constant 8 : index
    %c0_260 = arith.constant 0 : index
    %c0_261 = arith.constant 0 : index
    %226 = vector.load %arg6[%c8_259, %c0_260, %c0_261] : memref<9x64x64xbf16, #tpu.memory_space<vmem>>, vector<1x64x64xbf16>
    %227 = vector.shape_cast %226 : vector<1x64x64xbf16> to vector<64x64xbf16>
    %cst_262 = arith.constant dense<0.000000e+00> : vector<8x64xf32>
    %228 = tpu.matmul %225, %227, %cst_262 {dimension_numbers = #tpu.dot_dimension_numbers<[1], [0], [0], [1], [0, 0, 1, 1], [], []>} : vector<8x64xbf16>, vector<64x64xbf16>, vector<8x64xf32> -> vector<8x64xf32>
    %229 = arith.addf %222, %228 : vector<8x64xf32>
    %c0_263 = arith.constant 0 : index
    %c0_264 = arith.constant 0 : index
    %230 = vector.load %arg7[%c0_263, %c0_264] : memref<1x64xf32, #tpu.memory_space<vmem>>, vector<1x64xf32>
    %231 = vector.broadcast %230 : vector<1x64xf32> to vector<8x64xf32>
    %232 = arith.addf %229, %231 : vector<8x64xf32>
    %233 = vector.shape_cast %232 : vector<8x64xf32> to vector<1x8x64xf32>
    %234 = arith.mulf %233, %233 : vector<1x8x64xf32>
    %cst_265 = arith.constant dense<0.000000e+00> : vector<1x8xf32>
    %235 = vector.multi_reduction <add>, %234, %cst_265 [2] : vector<1x8x64xf32> to vector<1x8xf32>
    %236 = vector.shape_cast %235 : vector<1x8xf32> to vector<1x8x1xf32>
    %cst_266 = arith.constant dense<0.000000e+00> : vector<8x1xf32>
    %237 = vector.multi_reduction <add>, %236, %cst_266 [0] : vector<1x8x1xf32> to vector<8x1xf32>
    %238 = vector.shape_cast %237 : vector<8x1xf32> to vector<1x8x1xf32>
    %239 = math.rsqrt %238 : vector<1x8x1xf32>
    %240 = vector.broadcast %239 : vector<1x8x1xf32> to vector<1x8x64xf32>
    %241 = arith.mulf %233, %240 : vector<1x8x64xf32>
    %c0_267 = arith.constant 0 : index
    %c0_268 = arith.constant 0 : index
    %c0_269 = arith.constant 0 : index
    %242 = vector.load %arg8[%c0_267, %c0_268, %c0_269] : memref<1x8x64xf32, #tpu.memory_space<vmem>>, vector<1x8x64xf32>
    tpu.vector_store %arg8[%c0_267, %c0_268, %c0_269], %241 {strides = array<i32>} : memref<1x8x64xf32, #tpu.memory_space<vmem>>, vector<1x8x64xf32>,
    return
  }
  func.func @transform_0(%arg0: i32) -> (i32, i32, i32, i32) {
    %c0_i32 = arith.constant 0 : i32
    %c0_i32_0 = arith.constant 0 : i32
    %c0_i32_1 = arith.constant 0 : i32
    %c0_i32_2 = arith.constant 0 : i32
    return %c0_i32, %c0_i32_0, %arg0, %c0_i32_1 : i32, i32, i32, i32
  }
  func.func @transform_1(%arg0: i32) -> (i32, i32, i32) {
    %c0_i32 = arith.constant 0 : i32
    %c0_i32_0 = arith.constant 0 : i32
    %c0_i32_1 = arith.constant 0 : i32
    %c0_i32_2 = arith.constant 0 : i32
    return %c0_i32, %c0_i32_0, %c0_i32_1 : i32, i32, i32
  }
  func.func @transform_2(%arg0: i32) -> (i32, i32) {
    %c0_i32 = arith.constant 0 : i32
    %c0_i32_0 = arith.constant 0 : i32
    %c0_i32_1 = arith.constant 0 : i32
    return %c0_i32, %c0_i32_0 : i32, i32
  }
  func.func @transform_3(%arg0: i32) -> (i32, i32, i32) {
    %c0_i32 = arith.constant 0 : i32
    %c0_i32_0 = arith.constant 0 : i32
    %c0_i32_1 = arith.constant 0 : i32
    %c0_i32_2 = arith.constant 0 : i32
    return %c0_i32, %c0_i32_0, %c0_i32_1 : i32, i32, i32
  }
  func.func @transform_4(%arg0: i32) -> (i32, i32) {
    %c0_i32 = arith.constant 0 : i32
    %c0_i32_0 = arith.constant 0 : i32
    %c0_i32_1 = arith.constant 0 : i32
    return %c0_i32, %c0_i32_0 : i32, i32
  }
  func.func @transform_5(%arg0: i32) -> (i32, i32, i32) {
    %c0_i32 = arith.constant 0 : i32
    %c0_i32_0 = arith.constant 0 : i32
    %c0_i32_1 = arith.constant 0 : i32
    %c0_i32_2 = arith.constant 0 : i32
    return %c0_i32, %c0_i32_0, %c0_i32_1 : i32, i32, i32
  }
  func.func @transform_6(%arg0: i32) -> (i32, i32) {
    %c0_i32 = arith.constant 0 : i32
    %c0_i32_0 = arith.constant 0 : i32
    %c0_i32_1 = arith.constant 0 : i32
    return %c0_i32, %c0_i32_0 : i32, i32
  }
  func.func @transform_7(%arg0: i32) -> (i32, i32, i32) {
    %c0_i32 = arith.constant 0 : i32
    %c0_i32_0 = arith.constant 0 : i32
    %c0_i32_1 = arith.constant 0 : i32
    return %c0_i32, %arg0, %c0_i32_0 : i32, i32, i32
  }
}

</mosaic_0001>

<bundles_post_ra>
// kernel: unit_cnn_forward.1
= control target key start
LH: loop header
LB: loop body
LE: loop exit
PB: predicated region body
PF: predicated region fallthrough
CT: control target
= control target key end

     0   :  { %vm261_vm0 = vcmask 523264   ;;  %vm1866_vm1 = vcmask 261120   ;;  %s6243_s1 = inlined_call_operand.vmem [shape: bf16[4,64,32], index: 1, kind: input, shape index: {}]   ;;  %s6244_s0 = inlined_call_operand.vmem [shape: f32[9,9,8,64], index: 0, kind: input, shape index: {}]   ;;  %s6245_s3 = inlined_call_operand.vmem [shape: bf16[16,32,64], index: 3, kind: input, shape index: {}]   ;;  %s6246_s2 = inlined_call_operand.vmem [shape: f32[1,32], index: 2, kind: input, shape index: {}]   ;;  %s6247_s4 = inlined_call_operand.vmem [shape: f32[1,64], index: 4, kind: input, shape index: {}]   ;;  %s6248_s5 = inlined_call_operand.vmem [shape: bf16[9,64,64], index: 5, kind: input, shape index: {}]   ;;  %s6249_s6 = inlined_call_operand.vmem [shape: f32[1,64], index: 6, kind: input, shape index: {}]   ;;  %s6250_s7 = inlined_call_operand.vmem [shape: f32[1,8,64], index: 7, kind: output, shape index: {}]  }
   0x1   :  { %v4765_v0 = vld [vmem:[%s6243_s1 + $0x38] sm:$0xff]  ;;  %v4764_v4 = vld [vmem:[%s6243_s1 + $0x30] sm:$0xff]  ;;  %v4763_v8 = vld [vmem:[%s6243_s1 + $0x28] sm:$0xff] }
   0x2   :  { %v4761_v1 = vld [vmem:[%s6243_s1 + $0x18] sm:$0xff]  ;;  %362 = vmatpush.bf16.msra.mxu0 %v4765_v0  ;;  %v4760_v5 = vld [vmem:[%s6243_s1 + $0x10] sm:$0xff]  ;;  %v4759_v9 = vld [vmem:[%s6243_s1 + $0x8] sm:$0xff] }
   0x3   :  { %v4769_v2 = vld [vmem:[%s6243_s1 + $0x58] sm:$0xff]  ;;  %651 = vmatpush.bf16.msra.mxu1 %v4761_v1  ;;  %v4768_v6 = vld [vmem:[%s6243_s1 + $0x50] sm:$0xff]  ;;  %v4767_v10 = vld [vmem:[%s6243_s1 + $0x48] sm:$0xff] }
   0x4   :  { %v4773_v3 = vld [vmem:[%s6243_s1 + $0x78] sm:$0xff]  ;;  %1046 = vmatpush.bf16.msra.mxu2 %v4769_v2  ;;  %v4772_v7 = vld [vmem:[%s6243_s1 + $0x70] sm:$0xff]  ;;  %v4771_v11 = vld [vmem:[%s6243_s1 + $0x68] sm:$0xff] }
   0x5   :  { %1505 = vmatpush.bf16.msra.mxu3 %v4773_v3  ;;  %v4762_v12 = vld [vmem:[%s6243_s1 + $0x20] sm:$0xff]  ;;  %v3865_v16 = vld [vmem:[%s6244_s0 + $0x8] sm:$0xff]  ;;  %v3866_v17 = vld [vmem:[%s6244_s0 + $0x10] sm:$0xff] }
   0x6   :  { %363 = vmatpush.bf16.msra.mxu0 %v4764_v4  ;;  %v4758_v13 = vld [vmem:[%s6243_s1] sm:$0xff]  ;;  %v4033_v19 = vld [vmem:[%s6244_s0 + $0x48] sm:$0xff]  ;;  %v4034_v20 = vld [vmem:[%s6244_s0 + $0x50] sm:$0xff]  ;;  %v196_v24 = vpack.c.bf16 %v3866_v17, %v3865_v16 }
   0x7   :  { %652 = vmatpush.bf16.msra.mxu1 %v4760_v5  ;;  %v4766_v14 = vld [vmem:[%s6243_s1 + $0x40] sm:$0xff]  ;;  %v4154_v21 = vld [vmem:[%s6244_s0 + $0x58] sm:$0xff]  ;;  %v4779_v22 = vld [vmem:[%s6245_s3 + $0x28] sm:$0xff]  ;;  %v881_v26 = vpack.c.bf16 %v4034_v20, %v4033_v19 }
   0x8   :  { %1047 = vmatpush.bf16.msra.mxu2 %v4768_v6  ;;  %v4770_v15 = vld [vmem:[%s6243_s1 + $0x60] sm:$0xff]  ;;  %v4777_v23 = vld [vmem:[%s6245_s3 + $0x18] sm:$0xff]  ;;  %v1340_v27 = vpack.c.bf16 %v4154_v21, %v4034_v20  ;;  %v4775_v29 = vld [vmem:[%s6245_s3 + $0x8] sm:$0xff] }
   0x9   :  { %1506 = vmatpush.bf16.msra.mxu3 %v4772_v7  ;;  %v27_v18 = vld [vmem:[%s6244_s0] sm:$0xff]  ;;  %v4781_v28 = vld [vmem:[%s6245_s3 + $0x38] sm:$0xff]  ;;  %v4156_v33 = vld [vmem:[%s6244_s0 + $0x68] sm:$0xff] }
   0xa   :  { %364 = vmatpush.bf16.msra.mxu0 %v4763_v8  ;;  %v91_v25 = vpack.c.bf16 %v3865_v16, %v27_v18  ;;  %v3867_v30 = vld [vmem:[%s6244_s0 + $0x18] sm:$0xff]  ;;  %v3868_v31 = vld [vmem:[%s6244_s0 + $0x20] sm:$0xff]  ;;  %v3869_v38 = vld [vmem:[%s6244_s0 + $0x28] sm:$0xff] }
   0xb   :  { %653 = vmatpush.bf16.msra.mxu1 %v4759_v9  ;;  %v4036_v32 = vld [vmem:[%s6244_s0 + $0x60] sm:$0xff]  ;;  %v197_v34 = vpack.c.bf16 %v3868_v31, %v3867_v30  ;;  %v92_v35 = vpack.c.bf16 %v3867_v30, %v3866_v17  ;;  %v3870_v39 = vld [vmem:[%s6244_s0 + $0x30] sm:$0xff]  ;;  %v4158_v41 = vld [vmem:[%s6244_s0 + $0x78] sm:$0xff]  ;;  %v93_v43 = vpack.c.bf16 %v3869_v38, %v3868_v31 }
   0xc   :  { %1048 = vmatpush.bf16.msra.mxu2 %v4767_v10  ;;  %v882_v36 = vpack.c.bf16 %v4036_v32, %v4154_v21  ;;  %v1341_v37 = vpack.c.bf16 %v4156_v33, %v4036_v32  ;;  %v4038_v40 = vld [vmem:[%s6244_s0 + $0x70] sm:$0xff]  ;;  %v198_v42 = vpack.c.bf16 %v3870_v39, %v3869_v38  ;;  %v3871_v46 = vld [vmem:[%s6244_s0 + $0x38] sm:$0xff]  ;;  %v3872_v47 = vld [vmem:[%s6244_s0 + $0x40] sm:$0xff] }
   0xd   :  { %1507 = vmatpush.bf16.msra.mxu3 %v4771_v11  ;;  %v883_v44 = vpack.c.bf16 %v4038_v40, %v4156_v33  ;;  %v1342_v45 = vpack.c.bf16 %v4158_v41, %v4038_v40  ;;  %v4040_v48 = vld [vmem:[%s6244_s0 + $0x80] sm:$0xff]  ;;  %v4160_v49 = vld [vmem:[%s6244_s0 + $0x88] sm:$0xff]  ;;  %v199_v50 = vpack.c.bf16 %v3872_v47, %v3871_v46  ;;  %v94_v51 = vpack.c.bf16 %v3871_v46, %v3870_v39  ;;  %v4041_v54 = vld [vmem:[%s6244_s0 + $0x90] sm:$0xff] }
   0xe   :  { %365 = vmatpush.bf16.msra.mxu0 %v4762_v12  ;;  %v884_v52 = vpack.c.bf16 %v4040_v48, %v4158_v41  ;;  %v1343_v53 = vpack.c.bf16 %v4160_v49, %v4040_v48  ;;  %v4042_v55 = vld [vmem:[%s6244_s0 + $0x98] sm:$0xff]  ;;  %v4162_v56 = vld [vmem:[%s6244_s0 + $0xa0] sm:$0xff]  ;;  %v4044_v59 = vld [vmem:[%s6244_s0 + $0xa8] sm:$0xff] }
   0xf   :  { %654 = vmatpush.bf16.msra.mxu1 %v4758_v13  ;;  %v885_v57 = vpack.c.bf16 %v4042_v55, %v4041_v54  ;;  %v1344_v58 = vpack.c.bf16 %v4162_v56, %v4042_v55  ;;  %v4164_v60 = vld [vmem:[%s6244_s0 + $0xb0] sm:$0xff]  ;;  %v886_v61 = vpack.c.bf16 %v4044_v59, %v4162_v56  ;;  %v4046_v63 = vld [vmem:[%s6244_s0 + $0xb8] sm:$0xff]  ;;  %v4166_v0 = vld [vmem:[%s6244_s0 + $0xc0] sm:$0xff] }
  0x10   :  { %1049 = vmatpush.bf16.msra.mxu2 %v4766_v14  ;;  %v1345_v62 = vpack.c.bf16 %v4164_v60, %v4044_v59  ;;  %v5049_v1 = vpack.c.bf16 %v4046_v63, %v4164_v60  ;;  %v5051_v2 = vpack.c.bf16 %v4166_v0, %v4046_v63  ;;  %v4048_v3 = vld [vmem:[%s6244_s0 + $0xc8] sm:$0xff]  ;;  %v4168_v4 = vld [vmem:[%s6244_s0 + $0xd0] sm:$0xff]  ;;  %v4049_v7 = vld [vmem:[%s6244_s0 + $0xd8] sm:$0xff] }
  0x11   :  { %1508 = vmatpush.bf16.msra.mxu3 %v4770_v15  ;;  %3953 = vmatmul.msk.bf16.vlgmr.msra.gmra.mxu0 %vm261_vm0, %v196_v24  ;;  %v5065_v5 = vpack.c.bf16 %v4048_v3, %v4166_v0  ;;  %v5067_v6 = vpack.c.bf16 %v4168_v4, %v4048_v3  ;;  %v4050_v8 = vld [vmem:[%s6244_s0 + $0xe0] sm:$0xff]  ;;  %v4170_v9 = vld [vmem:[%s6244_s0 + $0xe8] sm:$0xff]  ;;  %v4172_v24 = vld [vmem:[%s6244_s0 + $0xf8] sm:$0xff] }
  0x12   :  { %2002 = vmatpush.bf16.msrb.mxu0 %v4777_v23  ;;  %4001 = vmatmul.msk.bf16.vlgmr.msra.gmra.mxu1 %vm261_vm0, %v91_v25  ;;  %v5084_v12 = vpack.c.bf16 %v4050_v8, %v4049_v7  ;;  %v5086_v13 = vpack.c.bf16 %v4170_v9, %v4050_v8  ;;  %v5097_v18 = vld [vmem:[%s6246_s2] ss:$0 sm:$0xff]  ;;  %v4052_v23 = vld [vmem:[%s6244_s0 + $0xf0] sm:$0xff]  ;;  %v4174_v46 = vld [vmem:[%s6244_s0 + $0x108] sm:$0xff] }
  0x13   :  { %4121 = vmatmul.msk.bf16.vlgmr.msra.gmra.mxu2 %vm261_vm0, %v881_v26  ;;  %2062 = vmatpush.bf16.msrb.mxu1 %v4775_v29  ;;  %v5107_v32 = vpack.c.bf16 %v4052_v23, %v4170_v9  ;;  %v5109_v33 = vpack.c.bf16 %v4172_v24, %v4052_v23  ;;  %v4056_v3 = vld [vmem:[%s6244_s0 + $0x110] sm:$0xff]  ;;  %v4176_v4 = vld [vmem:[%s6244_s0 + $0x118] sm:$0xff] }
  0x14   :  { %2142 = vmatpush.bf16.msrb.mxu2 %v4779_v22  ;;  %4241 = vmatmul.msk.bf16.vlgmr.msra.gmra.mxu3 %vm261_vm0, %v1340_v27 }
  0x15   :  { %2231 = vmatpush.bf16.msrb.mxu3 %v4781_v28 }
  0x21   :  { %3954 = vmatmul.msk.bf16.gmra.mxu0 %vm261_vm0, %v197_v34 }
  0x22   :  { %4002 = vmatmul.msk.bf16.gmra.mxu1 %vm261_vm0, %v92_v35 }
  0x23   :  { %4122 = vmatmul.msk.bf16.gmra.mxu2 %vm261_vm0, %v882_v36 }
  0x24   :  { %4242 = vmatmul.msk.bf16.gmra.mxu3 %vm261_vm0, %v1341_v37 }
  0x31   :  { %3955 = vmatmul.msk.bf16.gmra.mxu0 %vm261_vm0, %v198_v42 }
  0x32   :  { %4003 = vmatmul.msk.bf16.gmra.mxu1 %vm261_vm0, %v93_v43 }
  0x33   :  { %4123 = vmatmul.msk.bf16.gmra.mxu2 %vm261_vm0, %v883_v44 }
  0x34   :  { %4243 = vmatmul.msk.bf16.gmra.mxu3 %vm261_vm0, %v1342_v45 }
  0x41   :  { %3956 = vmatmul.msk.bf16.gmra.mxu0 %vm261_vm0, %v199_v50 }
  0x42   :  { %4004 = vmatmul.msk.bf16.gmra.mxu1 %vm261_vm0, %v94_v51 }
  0x43   :  { %4124 = vmatmul.msk.bf16.gmra.mxu2 %vm261_vm0, %v884_v52 }
  0x44   :  { %4244 = vmatmul.msk.bf16.gmra.mxu3 %vm261_vm0, %v1343_v53 }
  0x51   :  { %3957 = vmatmul.msk.bf16.gmra.mxu0 %vm261_vm0, %v1340_v27 }
  0x52   :  { %4005 = vmatmul.msk.bf16.gmra.mxu1 %vm261_vm0, %v881_v26 }
  0x53   :  { %4125 = vmatmul.msk.bf16.gmra.mxu2 %vm261_vm0, %v885_v57 }
  0x54   :  { %4245 = vmatmul.msk.bf16.gmra.mxu3 %vm261_vm0, %v1344_v58 }
  0x61   :  { %3958 = vmatmul.msk.bf16.gmra.mxu0 %vm261_vm0, %v1341_v37 }
  0x62   :  { %4006 = vmatmul.msk.bf16.gmra.mxu1 %vm261_vm0, %v882_v36 }
  0x63   :  { %4126 = vmatmul.msk.bf16.gmra.mxu2 %vm261_vm0, %v886_v61 }
  0x64   :  { %4246 = vmatmul.msk.bf16.gmra.mxu3 %vm261_vm0, %v1345_v62 }
  0x71   :  { %3959 = vmatmul.msk.bf16.gmra.mxu0 %vm261_vm0, %v1342_v45  ;;  %v4054_v45 = vld [vmem:[%s6244_s0 + $0x100] sm:$0xff] }
  0x72   :  { %4007 = vmatmul.msk.bf16.gmra.mxu1 %vm261_vm0, %v883_v44  ;;  %v5127_v54 = vpack.c.bf16 %v4054_v45, %v4172_v24  ;;  %v5129_v55 = vpack.c.bf16 %v4174_v46, %v4054_v45 }
  0x73   :  { %4127 = vmatmul.msk.bf16.gmra.mxu2 %vm261_vm0, %v5049_v1 }
  0x74   :  { %4247 = vmatmul.msk.bf16.gmra.mxu3 %vm261_vm0, %v5051_v2 }
  0x81   :  { %3960 = vmatmul.msk.bf16.gmra.mxu0 %vm261_vm0, %v1343_v53 }
  0x82   :  { %4008 = vmatmul.msk.bf16.gmra.mxu1 %vm261_vm0, %v884_v52 }
  0x83   :  { %4128 = vmatmul.msk.bf16.gmra.mxu2 %vm261_vm0, %v5065_v5 }
  0x84   :  { %4248 = vmatmul.msk.bf16.gmra.mxu3 %vm261_vm0, %v5067_v6 }
  0x8e   :  { %v367_v10 = vpop.f32.mrf.mxu0 }
  0x8f   :  { %v656_v11 = vpop.f32.mrf.mxu1 }
  0x90   :  { %v657_v14 = vadd.f32 %v656_v11, %v367_v10 }
  0x91   :  { %3961 = vmatmul.msk.bf16.gmra.mxu0 %vm261_vm0, %v1344_v58 }
  0x92   :  { %4009 = vmatmul.msk.bf16.gmra.mxu1 %vm261_vm0, %v885_v57 }
  0x93   :  { %4129 = vmatmul.msk.bf16.gmra.mxu2 %vm261_vm0, %v5084_v12 }
  0x94   :  { %4249 = vmatmul.msk.bf16.gmra.mxu3 %vm261_vm0, %v5086_v13 }
  0x96   :  { %v1051_v15 = vpop.f32.mrf.mxu2  ;;  %v369_v19 = vpop.f32.mrf.mxu0 }
  0x97   :  { %v1510_v16 = vpop.f32.mrf.mxu3  ;;  %v1211_v17 = vadd.f32 %v1051_v15, %v657_v14  ;;  %v658_v20 = vpop.f32.mrf.mxu1 }
  0x98   :  { %v659_v26 = vadd.f32 %v658_v20, %v369_v19 }
  0x99   :  { %v1670_v21 = vadd.f32 %v1510_v16, %v1211_v17  ;;  %v5149_v16 = vpack.c.bf16 %v4056_v3, %v4174_v46  ;;  %v5151_v17 = vpack.c.bf16 %v4176_v4, %v4056_v3 }
  0x9b   :  { %v1738_v22 = vadd.f32 %v5097_v18, %v1670_v21 }
  0x9d   :  { %v1802_v25 = vmax.f32 %v1738_v22, 0.0 }
  0x9e   :  { %v1053_v27 = vpop.f32.mrf.mxu2  ;;  %v372_v30 = vpop.f32.mrf.mxu0 }
  0x9f   :  { %v1512_v28 = vpop.f32.mrf.mxu3  ;;  %1867 = vst.msk [vmem:[#allocation2] sm:$0xff] %vm1866_vm1, %v1802_v25  ;;  %v1212_v29 = vadd.f32 %v1053_v27, %v659_v26  ;;  %v661_v31 = vpop.f32.mrf.mxu1 }
  0xa0   :  { %v662_v37 = vadd.f32 %v661_v31, %v372_v30  ;;  %v4178_v30 = vld [vmem:[%s6244_s0 + $0x130] sm:$0xff] }
  0xa1   :  { %v1671_v34 = vadd.f32 %v1512_v28, %v1212_v29  ;;  %3962 = vmatmul.msk.bf16.gmra.mxu0 %vm261_vm0, %v1345_v62  ;;  %v4057_v28 = vld [vmem:[%s6244_s0 + $0x120] sm:$0xff]  ;;  %v4058_v29 = vld [vmem:[%s6244_s0 + $0x128] sm:$0xff] }
  0xa2   :  { %4010 = vmatmul.msk.bf16.gmra.mxu1 %vm261_vm0, %v886_v61 }
  0xa3   :  { %v1739_v35 = vadd.f32 %v5097_v18, %v1671_v34  ;;  %4130 = vmatmul.msk.bf16.gmra.mxu2 %vm261_vm0, %v5107_v32 }
  0xa4   :  { %4250 = vmatmul.msk.bf16.gmra.mxu3 %vm261_vm0, %v5109_v33 }
  0xa5   :  { %v1803_v36 = vmax.f32 %v1739_v35, 0.0 }
  0xa6   :  { %v1056_v38 = vpop.f32.mrf.mxu2  ;;  %v374_v41 = vpop.f32.mrf.mxu0 }
  0xa7   :  { %v1515_v39 = vpop.f32.mrf.mxu3  ;;  %1868 = vst.msk [vmem:[#allocation2 + $0x8] sm:$0xff] %vm1866_vm1, %v1803_v36  ;;  %v1213_v40 = vadd.f32 %v1056_v38, %v662_v37  ;;  %v663_v42 = vpop.f32.mrf.mxu1 }
  0xa8   :  { %v664_v48 = vadd.f32 %v663_v42, %v374_v41  ;;  %v5176_v41 = vpack.c.bf16 %v4178_v30, %v4058_v29 }
  0xa9   :  { %v1672_v43 = vadd.f32 %v1515_v39, %v1213_v40  ;;  %v5174_v40 = vpack.c.bf16 %v4058_v29, %v4057_v28 }
  0xab   :  { %v1740_v44 = vadd.f32 %v5097_v18, %v1672_v43 }
  0xad   :  { %v1804_v47 = vmax.f32 %v1740_v44, 0.0 }
  0xae   :  { %v1058_v49 = vpop.f32.mrf.mxu2  ;;  %v377_v52 = vpop.f32.mrf.mxu0 }
  0xaf   :  { %v1517_v50 = vpop.f32.mrf.mxu3  ;;  %1869 = vst.msk [vmem:[#allocation2 + $0x10] sm:$0xff] %vm1866_vm1, %v1804_v47  ;;  %v1214_v51 = vadd.f32 %v1058_v49, %v664_v48  ;;  %v666_v53 = vpop.f32.mrf.mxu1 }
  0xb0   :  { %v667_v59 = vadd.f32 %v666_v53, %v377_v52  ;;  %v4180_v52 = vld [vmem:[%s6244_s0 + $0x140] sm:$0xff] }
  0xb1   :  { %v1673_v56 = vadd.f32 %v1517_v50, %v1214_v51  ;;  %3963 = vmatmul.msk.bf16.gmra.mxu0 %vm261_vm0, %v5051_v2  ;;  %v4060_v51 = vld [vmem:[%s6244_s0 + $0x138] sm:$0xff] }
  0xb2   :  { %4011 = vmatmul.msk.bf16.gmra.mxu1 %vm261_vm0, %v5049_v1 }
  0xb3   :  { %v1741_v57 = vadd.f32 %v5097_v18, %v1673_v56  ;;  %4131 = vmatmul.msk.bf16.gmra.mxu2 %vm261_vm0, %v5127_v54 }
  0xb4   :  { %4251 = vmatmul.msk.bf16.gmra.mxu3 %vm261_vm0, %v5129_v55 }
  0xb5   :  { %v1805_v58 = vmax.f32 %v1741_v57, 0.0 }
  0xb6   :  { %v1061_v60 = vpop.f32.mrf.mxu2  ;;  %v379_v63 = vpop.f32.mrf.mxu0 }
  0xb7   :  { %v1520_v61 = vpop.f32.mrf.mxu3  ;;  %1870 = vst.msk [vmem:[#allocation2 + $0x18] sm:$0xff] %vm1866_vm1, %v1805_v58  ;;  %v1215_v62 = vadd.f32 %v1061_v60, %v667_v59  ;;  %v668_v0 = vpop.f32.mrf.mxu1 }
  0xb8   :  { %v669_v8 = vadd.f32 %v668_v0, %v379_v63  ;;  %v5198_v63 = vpack.c.bf16 %v4180_v52, %v4060_v51 }
  0xb9   :  { %v1674_v2 = vadd.f32 %v1520_v61, %v1215_v62  ;;  %v5196_v62 = vpack.c.bf16 %v4060_v51, %v4178_v30 }
  0xbb   :  { %v1742_v1 = vadd.f32 %v5097_v18, %v1674_v2 }
  0xbd   :  { %v1806_v7 = vmax.f32 %v1742_v1, 0.0 }
  0xbe   :  { %v1063_v9 = vpop.f32.mrf.mxu2  ;;  %v382_v14 = vpop.f32.mrf.mxu0 }
  0xbf   :  { %v1522_v10 = vpop.f32.mrf.mxu3  ;;  %1871 = vst.msk [vmem:[#allocation2 + $0x20] sm:$0xff] %vm1866_vm1, %v1806_v7  ;;  %v1216_v11 = vadd.f32 %v1063_v9, %v669_v8  ;;  %v671_v15 = vpop.f32.mrf.mxu1 }
  0xc0   :  { %v672_v22 = vadd.f32 %v671_v15, %v382_v14  ;;  %v4182_v14 = vld [vmem:[%s6244_s0 + $0x150] sm:$0xff] }
  0xc1   :  { %v1675_v19 = vadd.f32 %v1522_v10, %v1216_v11  ;;  %3964 = vmatmul.msk.bf16.gmra.mxu0 %vm261_vm0, %v5067_v6  ;;  %v4062_v11 = vld [vmem:[%s6244_s0 + $0x148] sm:$0xff] }
  0xc2   :  { %4012 = vmatmul.msk.bf16.gmra.mxu1 %vm261_vm0, %v5065_v5 }
  0xc3   :  { %v1743_v20 = vadd.f32 %v5097_v18, %v1675_v19  ;;  %4132 = vmatmul.msk.bf16.gmra.mxu2 %vm261_vm0, %v5149_v16 }
  0xc4   :  { %4252 = vmatmul.msk.bf16.gmra.mxu3 %vm261_vm0, %v5151_v17 }
  0xc5   :  { %v1807_v21 = vmax.f32 %v1743_v20, 0.0 }
  0xc6   :  { %v1066_v23 = vpop.f32.mrf.mxu2  ;;  %v384_v26 = vpop.f32.mrf.mxu0 }
  0xc7   :  { %v1525_v24 = vpop.f32.mrf.mxu3  ;;  %1872 = vst.msk [vmem:[#allocation2 + $0x28] sm:$0xff] %vm1866_vm1, %v1807_v21  ;;  %v1217_v25 = vadd.f32 %v1066_v23, %v672_v22  ;;  %v673_v6 = vpop.f32.mrf.mxu1 }
  0xc8   :  { %v674_v34 = vadd.f32 %v673_v6, %v384_v26  ;;  %v5220_v26 = vpack.c.bf16 %v4182_v14, %v4062_v11 }
  0xc9   :  { %v1676_v27 = vadd.f32 %v1525_v24, %v1217_v25  ;;  %v5218_v25 = vpack.c.bf16 %v4062_v11, %v4180_v52 }
  0xcb   :  { %v1744_v5 = vadd.f32 %v5097_v18, %v1676_v27 }
  0xcd   :  { %v1808_v31 = vmax.f32 %v1744_v5, 0.0 }
  0xce   :  { %v1068_v35 = vpop.f32.mrf.mxu2  ;;  %v387_v38 = vpop.f32.mrf.mxu0 }
  0xcf   :  { %v1527_v36 = vpop.f32.mrf.mxu3  ;;  %1873 = vst.msk [vmem:[#allocation2 + $0x30] sm:$0xff] %vm1866_vm1, %v1808_v31  ;;  %v1218_v37 = vadd.f32 %v1068_v35, %v674_v34  ;;  %v676_v39 = vpop.f32.mrf.mxu1  ;;  %v4776_v35 = vld [vmem:[%s6245_s3 + $0x10] sm:$0xff] }
  0xd0   :  { %v677_v45 = vadd.f32 %v676_v39, %v387_v38  ;;  %2003 = vmatpush.bf16.msrb.mxu0 %v4776_v35  ;;  %v4064_v39 = vld [vmem:[%s6244_s0 + $0x158] sm:$0xff] }
  0xd1   :  { %v1677_v42 = vadd.f32 %v1527_v36, %v1218_v37  ;;  %3965 = vmatmul.msk.bf16.gmra.mxu0 %vm261_vm0, %v5086_v13  ;;  %v4780_v36 = vld [vmem:[%s6245_s3 + $0x30] sm:$0xff] }
  0xd2   :  { %4013 = vmatmul.msk.bf16.gmra.mxu1 %vm261_vm0, %v5084_v12  ;;  %2232 = vmatpush.bf16.msrb.mxu3 %v4780_v36 }
  0xd3   :  { %v1745_v43 = vadd.f32 %v5097_v18, %v1677_v42  ;;  %4133 = vmatmul.msk.bf16.gmra.mxu2 %vm261_vm0, %v5174_v40  ;;  %v4184_v42 = vld [vmem:[%s6244_s0 + $0x160] sm:$0xff] }
  0xd4   :  { %4253 = vmatmul.msk.bf16.gmra.mxu3 %vm261_vm0, %v5176_v41 }
  0xd5   :  { %v1809_v44 = vmax.f32 %v1745_v43, 0.0 }
  0xd6   :  { %v1071_v46 = vpop.f32.mrf.mxu2  ;;  %v389_v49 = vpop.f32.mrf.mxu0 }
  0xd7   :  { %v1530_v47 = vpop.f32.mrf.mxu3  ;;  %1874 = vst.msk [vmem:[#allocation2 + $0x38] sm:$0xff] %vm1866_vm1, %v1809_v44  ;;  %v1219_v48 = vadd.f32 %v1071_v46, %v677_v45  ;;  %v678_v13 = vpop.f32.mrf.mxu1 }
  0xd8   :  { %v679_v56 = vadd.f32 %v678_v13, %v389_v49  ;;  %v5249_v13 = vpack.c.bf16 %v4064_v39, %v4182_v14 }
  0xd9   :  { %v1678_v50 = vadd.f32 %v1530_v47, %v1219_v48 }
  0xdb   :  { %v1746_v12 = vadd.f32 %v5097_v18, %v1678_v50  ;;  %v5251_v50 = vpack.c.bf16 %v4184_v42, %v4064_v39 }
  0xdd   :  { %v1810_v53 = vmax.f32 %v1746_v12, 0.0  ;;  %v4774_v12 = vld [vmem:[%s6245_s3] sm:$0xff] }
  0xde   :  { %v1073_v57 = vpop.f32.mrf.mxu2  ;;  %v392_v60 = vpop.f32.mrf.mxu0  ;;  %2063 = vmatpush.bf16.msrb.mxu1 %v4774_v12 }
  0xdf   :  { %v1532_v58 = vpop.f32.mrf.mxu3  ;;  %1875 = vst.msk [vmem:[#allocation2 + $0x40] sm:$0xff] %vm1866_vm1, %v1810_v53  ;;  %v1220_v59 = vadd.f32 %v1073_v57, %v679_v56  ;;  %v681_v61 = vpop.f32.mrf.mxu1 }
  0xe0   :  { %v682_v3 = vadd.f32 %v681_v61, %v392_v60 }
  0xe1   :  { %v1679_v0 = vadd.f32 %v1532_v58, %v1220_v59  ;;  %3966 = vmatmul.msk.bf16.gmra.mxu0 %vm261_vm0, %v5109_v33 }
  0xe2   :  { %4014 = vmatmul.msk.bf16.gmra.mxu1 %vm261_vm0, %v5107_v32 }
  0xe3   :  { %v1747_v2 = vadd.f32 %v5097_v18, %v1679_v0  ;;  %4134 = vmatmul.msk.bf16.gmra.mxu2 %vm261_vm0, %v5196_v62  ;;  %v4065_v0 = vld [vmem:[%s6244_s0 + $0x168] sm:$0xff] }
  0xe4   :  { %4254 = vmatmul.msk.bf16.gmra.mxu3 %vm261_vm0, %v5198_v63 }
  0xe5   :  { %v1811_v1 = vmax.f32 %v1747_v2, 0.0  ;;  %v4066_v2 = vld [vmem:[%s6244_s0 + $0x170] sm:$0xff] }
  0xe6   :  { %v1076_v4 = vpop.f32.mrf.mxu2  ;;  %v394_v9 = vpop.f32.mrf.mxu0 }
  0xe7   :  { %v1535_v7 = vpop.f32.mrf.mxu3  ;;  %1876 = vst.msk [vmem:[#allocation2 + $0x48] sm:$0xff] %vm1866_vm1, %v1811_v1  ;;  %v1221_v8 = vadd.f32 %v1076_v4, %v682_v3  ;;  %v683_v33 = vpop.f32.mrf.mxu1  ;;  %v4186_v1 = vld [vmem:[%s6244_s0 + $0x178] sm:$0xff] }
  0xe8   :  { %v684_v19 = vadd.f32 %v683_v33, %v394_v9  ;;  %v5279_v11 = vpack.c.bf16 %v4186_v1, %v4066_v2 }
  0xe9   :  { %v1680_v10 = vadd.f32 %v1535_v7, %v1221_v8 }
  0xeb   :  { %v1748_v32 = vadd.f32 %v5097_v18, %v1680_v10 }
  0xed   :  { %v1812_v15 = vmax.f32 %v1748_v32, 0.0  ;;  %v5277_v32 = vpack.c.bf16 %v4066_v2, %v4065_v0 }
  0xee   :  { %v1078_v20 = vpop.f32.mrf.mxu2  ;;  %v397_v23 = vpop.f32.mrf.mxu0 }
  0xef   :  { %v1537_v21 = vpop.f32.mrf.mxu3  ;;  %1877 = vst.msk [vmem:[#allocation2 + $0x50] sm:$0xff] %vm1866_vm1, %v1812_v15  ;;  %v1222_v22 = vadd.f32 %v1078_v20, %v684_v19  ;;  %v686_v24 = vpop.f32.mrf.mxu1 }
  0xf0   :  { %v687_v28 = vadd.f32 %v686_v24, %v397_v23 }
  0xf1   :  { %v1681_v6 = vadd.f32 %v1537_v21, %v1222_v22  ;;  %3967 = vmatmul.msk.bf16.gmra.mxu0 %vm261_vm0, %v5129_v55 }
  0xf2   :  { %4015 = vmatmul.msk.bf16.gmra.mxu1 %vm261_vm0, %v5127_v54  ;;  %v4778_v54 = vld [vmem:[%s6245_s3 + $0x20] sm:$0xff] }
  0xf3   :  { %v1749_v27 = vadd.f32 %v5097_v18, %v1681_v6  ;;  %4135 = vmatmul.msk.bf16.gmra.mxu2 %vm261_vm0, %v5218_v25 }
  0xf4   :  { %4255 = vmatmul.msk.bf16.gmra.mxu3 %vm261_vm0, %v5220_v26  ;;  %2143 = vmatpush.bf16.msrb.mxu2 %v4778_v54 }
  0xf5   :  { %v1813_v5 = vmax.f32 %v1749_v27, 0.0  ;;  %v4068_v27 = vld [vmem:[%s6244_s0 + $0x180] sm:$0xff] }
  0xf6   :  { %v1081_v29 = vpop.f32.mrf.mxu2  ;;  %v399_v34 = vpop.f32.mrf.mxu0  ;;  %v5299_v35 = vpack.c.bf16 %v4068_v27, %v4186_v1 }
  0xf7   :  { %v1540_v30 = vpop.f32.mrf.mxu3  ;;  %1878 = vst.msk [vmem:[#allocation2 + $0x58] sm:$0xff] %vm1866_vm1, %v1813_v5  ;;  %v1223_v31 = vadd.f32 %v1081_v29, %v687_v28  ;;  %v688_v55 = vpop.f32.mrf.mxu1  ;;  %v4188_v5 = vld [vmem:[%s6244_s0 + $0x188] sm:$0xff] }
  0xf8   :  { %v689_v44 = vadd.f32 %v688_v55, %v399_v34  ;;  %v5301_v36 = vpack.c.bf16 %v4188_v5, %v4068_v27 }
  0xf9   :  { %v1682_v37 = vadd.f32 %v1540_v30, %v1223_v31 }
  0xfb   :  { %v1750_v38 = vadd.f32 %v5097_v18, %v1682_v37 }
  0xfd   :  { %v1814_v43 = vmax.f32 %v1750_v38, 0.0 }
  0xfe   :  { %v1083_v45 = vpop.f32.mrf.mxu2  ;;  %v402_v48 = vpop.f32.mrf.mxu0 }
  0xff   :  { %v1542_v46 = vpop.f32.mrf.mxu3  ;;  %1879 = vst.msk [vmem:[#allocation2 + $0x60] sm:$0xff] %vm1866_vm1, %v1814_v43  ;;  %v1224_v47 = vadd.f32 %v1083_v45, %v689_v44  ;;  %v691_v49 = vpop.f32.mrf.mxu1 }
 0x100   :  { %v692_v56 = vadd.f32 %v691_v49, %v402_v48  ;;  %v4070_v48 = vld [vmem:[%s6244_s0 + $0x190] sm:$0xff]  ;;  %v4190_v49 = vld [vmem:[%s6244_s0 + $0x198] sm:$0xff] }
 0x101   :  { %v1683_v51 = vadd.f32 %v1542_v46, %v1224_v47  ;;  %3968 = vmatmul.msk.bf16.gmra.mxu0 %vm261_vm0, %v5151_v17 }
 0x102   :  { %4016 = vmatmul.msk.bf16.gmra.mxu1 %vm261_vm0, %v5149_v16 }
 0x103   :  { %v1751_v52 = vadd.f32 %v5097_v18, %v1683_v51  ;;  %4136 = vmatmul.msk.bf16.gmra.mxu2 %vm261_vm0, %v5249_v13 }
 0x104   :  { %4256 = vmatmul.msk.bf16.gmra.mxu3 %vm261_vm0, %v5251_v50 }
 0x105   :  { %v1815_v53 = vmax.f32 %v1751_v52, 0.0 }
 0x106   :  { %v1086_v57 = vpop.f32.mrf.mxu2  ;;  %v404_v60 = vpop.f32.mrf.mxu0 }
 0x107   :  { %v1545_v58 = vpop.f32.mrf.mxu3  ;;  %1880 = vst.msk [vmem:[#allocation2 + $0x68] sm:$0xff] %vm1866_vm1, %v1815_v53  ;;  %v1225_v59 = vadd.f32 %v1086_v57, %v692_v56  ;;  %v693_v17 = vpop.f32.mrf.mxu1 }
 0x108   :  { %v694_v4 = vadd.f32 %v693_v17, %v404_v60  ;;  %v5323_v60 = vpack.c.bf16 %v4190_v49, %v4070_v48 }
 0x109   :  { %v1684_v61 = vadd.f32 %v1545_v58, %v1225_v59  ;;  %v5321_v59 = vpack.c.bf16 %v4070_v48, %v4188_v5 }
 0x10b   :  { %v1752_v16 = vadd.f32 %v5097_v18, %v1684_v61 }
 0x10d   :  { %v1816_v3 = vmax.f32 %v1752_v16, 0.0 }
 0x10e   :  { %v1088_v7 = vpop.f32.mrf.mxu2  ;;  %v407_v33 = vpop.f32.mrf.mxu0 }
 0x10f   :  { %v1547_v8 = vpop.f32.mrf.mxu3  ;;  %1881 = vst.msk [vmem:[#allocation2 + $0x70] sm:$0xff] %vm1866_vm1, %v1816_v3  ;;  %v1226_v9 = vadd.f32 %v1088_v7, %v694_v4  ;;  %v696_v10 = vpop.f32.mrf.mxu1 }
 0x110   :  { %v697_v20 = vadd.f32 %v696_v10, %v407_v33  ;;  %v4072_v10 = vld [vmem:[%s6244_s0 + $0x1a0] sm:$0xff] }
 0x111   :  { %v1685_v14 = vadd.f32 %v1547_v8, %v1226_v9  ;;  %3969 = vmatmul.msk.bf16.gmra.mxu0 %vm261_vm0, %v5176_v41 }
 0x112   :  { %4017 = vmatmul.msk.bf16.gmra.mxu1 %vm261_vm0, %v5174_v40 }
 0x113   :  { %v1753_v15 = vadd.f32 %v5097_v18, %v1685_v14  ;;  %4137 = vmatmul.msk.bf16.gmra.mxu2 %vm261_vm0, %v5277_v32  ;;  %v4192_v14 = vld [vmem:[%s6244_s0 + $0x1a8] sm:$0xff] }
 0x114   :  { %4257 = vmatmul.msk.bf16.gmra.mxu3 %vm261_vm0, %v5279_v11  ;;  %v5355_v27 = vpack.c.bf16 %v4192_v14, %v4072_v10 }
 0x115   :  { %v1817_v19 = vmax.f32 %v1753_v15, 0.0 }
 0x116   :  { %v1091_v21 = vpop.f32.mrf.mxu2  ;;  %v409_v24 = vpop.f32.mrf.mxu0 }
 0x117   :  { %v1550_v22 = vpop.f32.mrf.mxu3  ;;  %1882 = vst.msk [vmem:[#allocation2 + $0x78] sm:$0xff] %vm1866_vm1, %v1817_v19  ;;  %v1227_v23 = vadd.f32 %v1091_v21, %v697_v20  ;;  %v698_v41 = vpop.f32.mrf.mxu1 }
 0x118   :  { %v699_v29 = vadd.f32 %v698_v41, %v409_v24 }
 0x119   :  { %v1686_v6 = vadd.f32 %v1550_v22, %v1227_v23 }
 0x11b   :  { %v1754_v40 = vadd.f32 %v5097_v18, %v1686_v6 }
 0x11d   :  { %v1818_v28 = vmax.f32 %v1754_v40, 0.0  ;;  %v5353_v40 = vpack.c.bf16 %v4072_v10, %v4190_v49 }
 0x11e   :  { %v1093_v30 = vpop.f32.mrf.mxu2  ;;  %v412_v55 = vpop.f32.mrf.mxu0 }
 0x11f   :  { %v1552_v31 = vpop.f32.mrf.mxu3  ;;  %1883 = vst.msk [vmem:[#allocation2 + $0x80] sm:$0xff] %vm1866_vm1, %v1818_v28  ;;  %v1228_v34 = vadd.f32 %v1093_v30, %v699_v29  ;;  %v701_v54 = vpop.f32.mrf.mxu1 }
 0x120   :  { %v702_v42 = vadd.f32 %v701_v54, %v412_v55 }
 0x121   :  { %v1687_v37 = vadd.f32 %v1552_v31, %v1228_v34  ;;  %3970 = vmatmul.msk.bf16.gmra.mxu0 %vm261_vm0, %v5198_v63 }
 0x122   :  { %4018 = vmatmul.msk.bf16.gmra.mxu1 %vm261_vm0, %v5196_v62 }
 0x123   :  { %v1755_v38 = vadd.f32 %v5097_v18, %v1687_v37  ;;  %4138 = vmatmul.msk.bf16.gmra.mxu2 %vm261_vm0, %v5299_v35 }
 0x124   :  { %4258 = vmatmul.msk.bf16.gmra.mxu3 %vm261_vm0, %v5301_v36 }
 0x125   :  { %v1819_v39 = vmax.f32 %v1755_v38, 0.0 }
 0x126   :  { %v1096_v43 = vpop.f32.mrf.mxu2  ;;  %v414_v46 = vpop.f32.mrf.mxu0  ;;  %v5334_v3 = vld [vmem:[#allocation2 + $0x80] sm:$0xff] }
 0x127   :  { %v1555_v44 = vpop.f32.mrf.mxu3  ;;  %1884 = vst.msk [vmem:[#allocation2 + $0x88] sm:$0xff] %vm1866_vm1, %v1819_v39  ;;  %v1229_v45 = vadd.f32 %v1096_v43, %v702_v42  ;;  %v703_v63 = vpop.f32.mrf.mxu1  ;;  %v4073_v39 = vld [vmem:[%s6244_s0 + $0x1b0] sm:$0xff]  ;;  %v4074_v42 = vld [vmem:[%s6244_s0 + $0x1b8] sm:$0xff]  ;;  %v4194_v43 = vld [vmem:[%s6244_s0 + $0x1c0] sm:$0xff] }
 0x128   :  { %v704_v51 = vadd.f32 %v703_v63, %v414_v46  ;;  %v5380_v49 = vpack.c.bf16 %v4074_v42, %v4073_v39 }
 0x129   :  { %v1688_v47 = vadd.f32 %v1555_v44, %v1229_v45 }
 0x12b   :  { %v1756_v62 = vadd.f32 %v5097_v18, %v1688_v47 }
 0x12d   :  { %v1820_v12 = vmax.f32 %v1756_v62, 0.0 }
 0x12e   :  { %v1098_v52 = vpop.f32.mrf.mxu2  ;;  %v417_v57 = vpop.f32.mrf.mxu0  ;;  %v5348_v22 = vld [vmem:[#allocation2 + $0x88] sm:$0xff] }
 0x12f   :  { %v1557_v53 = vpop.f32.mrf.mxu3  ;;  %1885 = vst.msk [vmem:[#allocation2 + $0x90] sm:$0xff] %vm1866_vm1, %v1820_v12  ;;  %v1230_v56 = vadd.f32 %v1098_v52, %v704_v51  ;;  %v706_v58 = vpop.f32.mrf.mxu1  ;;  %v5382_v12 = vpack.c.bf16 %v4194_v43, %v4074_v42 }
 0x130   :  { %v707_v0 = vadd.f32 %v706_v58, %v417_v57 }
 0x131   :  { %v1689_v17 = vadd.f32 %v1557_v53, %v1230_v56  ;;  %3971 = vmatmul.msk.bf16.gmra.mxu0 %vm261_vm0, %v5220_v26 }
 0x132   :  { %4019 = vmatmul.msk.bf16.gmra.mxu1 %vm261_vm0, %v5218_v25 }
 0x133   :  { %v1757_v61 = vadd.f32 %v5097_v18, %v1689_v17  ;;  %4139 = vmatmul.msk.bf16.gmra.mxu2 %vm261_vm0, %v5321_v59 }
 0x134   :  { %4259 = vmatmul.msk.bf16.gmra.mxu3 %vm261_vm0, %v5323_v60 }
 0x135   :  { %v1821_v16 = vmax.f32 %v1757_v61, 0.0 }
 0x136   :  { %v1101_v2 = vpop.f32.mrf.mxu2  ;;  %v5336_v4 = vld [vmem:[#allocation2 + $0x90] sm:$0xff]  ;;  %v419_v25 = vpop.f32.mrf.mxu0 }
 0x137   :  { %v1560_v1 = vpop.f32.mrf.mxu3  ;;  %1886 = vst.msk [vmem:[#allocation2 + $0x98] sm:$0xff] %vm1866_vm1, %v1821_v16  ;;  %v1231_v26 = vadd.f32 %v1101_v2, %v707_v0  ;;  %v708_v7 = vpop.f32.mrf.mxu1  ;;  %v2633_v8 = vpack.c.bf16 %v5336_v4, %v5334_v3  ;;  %v4076_v0 = vld [vmem:[%s6244_s0 + $0x1c8] sm:$0xff]  ;;  %v4196_v2 = vld [vmem:[%s6244_s0 + $0x1d0] sm:$0xff] }
 0x138   :  { %v709_v19 = vadd.f32 %v708_v7, %v419_v25  ;;  %v5402_v14 = vpack.c.bf16 %v4076_v0, %v4194_v43 }
 0x139   :  { %v1690_v9 = vadd.f32 %v1560_v1, %v1231_v26 }
 0x13b   :  { %v1758_v33 = vadd.f32 %v5097_v18, %v1690_v9 }
 0x13d   :  { %v1822_v15 = vmax.f32 %v1758_v33, 0.0 }
 0x13e   :  { %v1103_v20 = vpop.f32.mrf.mxu2  ;;  %v5350_v23 = vld [vmem:[#allocation2 + $0x98] sm:$0xff]  ;;  %v422_v41 = vpop.f32.mrf.mxu0 }
 0x13f   :  { %v1562_v21 = vpop.f32.mrf.mxu3  ;;  %1887 = vst.msk [vmem:[#allocation2 + $0xa0] sm:$0xff] %vm1866_vm1, %v1822_v15  ;;  %v1232_v24 = vadd.f32 %v1103_v20, %v709_v19  ;;  %v711_v6 = vpop.f32.mrf.mxu1  ;;  %v2722_v5 = vpack.c.bf16 %v5350_v23, %v5348_v22  ;;  %v5404_v15 = vpack.c.bf16 %v4196_v2, %v4076_v0 }
 0x140   :  { %v712_v31 = vadd.f32 %v711_v6, %v422_v41 }
 0x141   :  { %v1691_v28 = vadd.f32 %v1562_v21, %v1232_v24  ;;  %3972 = vmatmul.msk.bf16.gmra.mxu0 %vm261_vm0, %v5251_v50 }
 0x142   :  { %4020 = vmatmul.msk.bf16.gmra.mxu1 %vm261_vm0, %v5249_v13 }
 0x143   :  { %v1759_v29 = vadd.f32 %v5097_v18, %v1691_v28  ;;  %4140 = vmatmul.msk.bf16.gmra.mxu2 %vm261_vm0, %v5353_v40 }
 0x144   :  { %4260 = vmatmul.msk.bf16.gmra.mxu3 %vm261_vm0, %v5355_v27 }
 0x145   :  { %v1823_v30 = vmax.f32 %v1759_v29, 0.0 }
 0x146   :  { %v1106_v34 = vpop.f32.mrf.mxu2  ;;  %v424_v37 = vpop.f32.mrf.mxu0 }
 0x147   :  { %v1565_v55 = vpop.f32.mrf.mxu3  ;;  %1888 = vst.msk [vmem:[#allocation2 + $0xa8] sm:$0xff] %vm1866_vm1, %v1823_v30  ;;  %v1233_v54 = vadd.f32 %v1106_v34, %v712_v31  ;;  %v713_v50 = vpop.f32.mrf.mxu1  ;;  %v4078_v31 = vld [vmem:[%s6244_s0 + $0x1d8] sm:$0xff]  ;;  %v4198_v34 = vld [vmem:[%s6244_s0 + $0x1e0] sm:$0xff] }
 0x148   :  { %v714_v45 = vadd.f32 %v713_v50, %v424_v37  ;;  %v5424_v42 = vpack.c.bf16 %v4078_v31, %v4196_v2  ;;  %v5426_v43 = vpack.c.bf16 %v4198_v34, %v4078_v31 }
 0x149   :  { %v1692_v38 = vadd.f32 %v1565_v55, %v1233_v54 }
 0x14b   :  { %v1760_v13 = vadd.f32 %v5097_v18, %v1692_v38 }
 0x14d   :  { %v1824_v44 = vmax.f32 %v1760_v13, 0.0 }
 0x14e   :  { %v1108_v46 = vpop.f32.mrf.mxu2  ;;  %v427_v62 = vpop.f32.mrf.mxu0 }
 0x14f   :  { %v1567_v63 = vpop.f32.mrf.mxu3  ;;  %1889 = vst.msk [vmem:[#allocation2 + $0xb0] sm:$0xff] %vm1866_vm1, %v1824_v44  ;;  %v1234_v47 = vadd.f32 %v1108_v46, %v714_v45  ;;  %v716_v48 = vpop.f32.mrf.mxu1 }
 0x150   :  { %v717_v56 = vadd.f32 %v716_v48, %v427_v62 }
 0x151   :  { %v1693_v51 = vadd.f32 %v1567_v63, %v1234_v47  ;;  %3973 = vmatmul.msk.bf16.gmra.mxu0 %vm261_vm0, %v5279_v11 }
 0x152   :  { %4021 = vmatmul.msk.bf16.gmra.mxu1 %vm261_vm0, %v5277_v32 }
 0x153   :  { %v1761_v52 = vadd.f32 %v5097_v18, %v1693_v51  ;;  %4141 = vmatmul.msk.bf16.gmra.mxu2 %vm261_vm0, %v5380_v49 }
 0x154   :  { %4261 = vmatmul.msk.bf16.gmra.mxu3 %vm261_vm0, %v5382_v12 }
 0x155   :  { %v1825_v53 = vmax.f32 %v1761_v52, 0.0 }
 0x156   :  { %v1111_v57 = vpop.f32.mrf.mxu2  ;;  %v429_v61 = vpop.f32.mrf.mxu0 }
 0x157   :  { %v1570_v58 = vpop.f32.mrf.mxu3  ;;  %1890 = vst.msk [vmem:[#allocation2 + $0xb8] sm:$0xff] %vm1866_vm1, %v1825_v53  ;;  %v1235_v17 = vadd.f32 %v1111_v57, %v717_v56  ;;  %v718_v11 = vpop.f32.mrf.mxu1 }
 0x158   :  { %v719_v26 = vadd.f32 %v718_v11, %v429_v61 }
 0x159   :  { %v1694_v16 = vadd.f32 %v1570_v58, %v1235_v17  ;;  %v4080_v58 = vld [vmem:[%s6244_s0 + $0x1e8] sm:$0xff]  ;;  %v4200_v17 = vld [vmem:[%s6244_s0 + $0x1f0] sm:$0xff] }
 0x15b   :  { %v1762_v32 = vadd.f32 %v5097_v18, %v1694_v16 }
 0x15d   :  { %v1826_v1 = vmax.f32 %v1762_v32, 0.0 }
 0x15e   :  { %v1113_v25 = vpop.f32.mrf.mxu2  ;;  %v432_v33 = vpop.f32.mrf.mxu0 }
 0x15f   :  { %v1572_v7 = vpop.f32.mrf.mxu3  ;;  %1891 = vst.msk [vmem:[#allocation2 + $0xc0] sm:$0xff] %vm1866_vm1, %v1826_v1  ;;  %v1236_v9 = vadd.f32 %v1113_v25, %v719_v26  ;;  %v721_v10 = vpop.f32.mrf.mxu1 }
 0x160   :  { %v722_v24 = vadd.f32 %v721_v10, %v432_v33 }
 0x161   :  { %v1695_v19 = vadd.f32 %v1572_v7, %v1236_v9  ;;  %3974 = vmatmul.msk.bf16.gmra.mxu0 %vm261_vm0, %v5301_v36  ;;  %v5456_v7 = vpack.c.bf16 %v4080_v58, %v4198_v34  ;;  %v5458_v9 = vpack.c.bf16 %v4200_v17, %v4080_v58 }
 0x162   :  { %4022 = vmatmul.msk.bf16.gmra.mxu1 %vm261_vm0, %v5299_v35 }
 0x163   :  { %v1763_v20 = vadd.f32 %v5097_v18, %v1695_v19  ;;  %4142 = vmatmul.msk.bf16.gmra.mxu2 %vm261_vm0, %v5402_v14 }
 0x164   :  { %4262 = vmatmul.msk.bf16.gmra.mxu3 %vm261_vm0, %v5404_v15 }
 0x165   :  { %v1827_v21 = vmax.f32 %v1763_v20, 0.0 }
 0x166   :  { %v1116_v41 = vpop.f32.mrf.mxu2  ;;  %v434_v29 = vpop.f32.mrf.mxu0  ;;  %v5437_v48 = vld [vmem:[#allocation2 + $0xc0] sm:$0xff] }
 0x167   :  { %v1575_v6 = vpop.f32.mrf.mxu3  ;;  %1892 = vst.msk [vmem:[#allocation2 + $0xc8] sm:$0xff] %vm1866_vm1, %v1827_v21  ;;  %v1237_v28 = vadd.f32 %v1116_v41, %v722_v24  ;;  %v723_v36 = vpop.f32.mrf.mxu1 }
 0x168   :  { %v724_v54 = vadd.f32 %v723_v36, %v434_v29  ;;  %v4081_v36 = vld [vmem:[%s6244_s0 + $0x1f8] sm:$0xff] }
 0x169   :  { %v1696_v30 = vadd.f32 %v1575_v6, %v1237_v28 }
 0x16b   :  { %v1764_v35 = vadd.f32 %v5097_v18, %v1696_v30  ;;  %v4082_v30 = vld [vmem:[%s6244_s0 + $0x200] sm:$0xff] }
 0x16d   :  { %v1828_v55 = vmax.f32 %v1764_v35, 0.0  ;;  %v4202_v35 = vld [vmem:[%s6244_s0 + $0x208] sm:$0xff] }
 0x16e   :  { %v1118_v37 = vpop.f32.mrf.mxu2  ;;  %v437_v13 = vpop.f32.mrf.mxu0  ;;  %v5451_v0 = vld [vmem:[#allocation2 + $0xc8] sm:$0xff] }
 0x16f   :  { %v1577_v50 = vpop.f32.mrf.mxu3  ;;  %1893 = vst.msk [vmem:[#allocation2 + $0xd0] sm:$0xff] %vm1866_vm1, %v1828_v55  ;;  %v1238_v38 = vadd.f32 %v1118_v37, %v724_v54  ;;  %v726_v39 = vpop.f32.mrf.mxu1 }
 0x170   :  { %v727_v63 = vadd.f32 %v726_v39, %v437_v13  ;;  %v5483_v13 = vpack.c.bf16 %v4082_v30, %v4081_v36  ;;  %v5485_v39 = vpack.c.bf16 %v4202_v35, %v4082_v30 }
 0x171   :  { %v1697_v44 = vadd.f32 %v1577_v50, %v1238_v38  ;;  %3975 = vmatmul.msk.bf16.gmra.mxu0 %vm261_vm0, %v5323_v60 }
 0x172   :  { %4023 = vmatmul.msk.bf16.gmra.mxu1 %vm261_vm0, %v5321_v59 }
 0x173   :  { %v1765_v45 = vadd.f32 %v5097_v18, %v1697_v44  ;;  %4143 = vmatmul.msk.bf16.gmra.mxu2 %vm261_vm0, %v5424_v42 }
 0x174   :  { %4263 = vmatmul.msk.bf16.gmra.mxu3 %vm261_vm0, %v5426_v43 }
 0x175   :  { %v1829_v46 = vmax.f32 %v1765_v45, 0.0 }
 0x176   :  { %v1121_v47 = vpop.f32.mrf.mxu2  ;;  %v5439_v51 = vld [vmem:[#allocation2 + $0xd0] sm:$0xff]  ;;  %v439_v59 = vpop.f32.mrf.mxu0 }
 0x177   :  { %v1580_v62 = vpop.f32.mrf.mxu3  ;;  %1894 = vst.msk [vmem:[#allocation2 + $0xd8] sm:$0xff] %vm1866_vm1, %v1829_v46  ;;  %v1239_v60 = vadd.f32 %v1121_v47, %v727_v63  ;;  %v728_v52 = vpop.f32.mrf.mxu1 }
 0x178   :  { %v729_v11 = vadd.f32 %v728_v52, %v439_v59 }
 0x179   :  { %v1698_v56 = vadd.f32 %v1580_v62, %v1239_v60 }
 0x17b   :  { %v1766_v57 = vadd.f32 %v5097_v18, %v1698_v56  ;;  %v4084_v56 = vld [vmem:[%s6244_s0 + $0x210] sm:$0xff] }
 0x17d   :  { %v1830_v61 = vmax.f32 %v1766_v57, 0.0  ;;  %v4204_v57 = vld [vmem:[%s6244_s0 + $0x218] sm:$0xff] }
 0x17e   :  { %v1123_v16 = vpop.f32.mrf.mxu2  ;;  %v5453_v2 = vld [vmem:[#allocation2 + $0xd8] sm:$0xff]  ;;  %v442_v26 = vpop.f32.mrf.mxu0 }
 0x17f   :  { %v1582_v32 = vpop.f32.mrf.mxu3  ;;  %1895 = vst.msk [vmem:[#allocation2 + $0xe0] sm:$0xff] %vm1866_vm1, %v1830_v61  ;;  %v1240_v1 = vadd.f32 %v1123_v16, %v729_v11  ;;  %v731_v25 = vpop.f32.mrf.mxu1 }
 0x180   :  { %v732_v21 = vadd.f32 %v731_v25, %v442_v26  ;;  %v5505_v26 = vpack.c.bf16 %v4084_v56, %v4202_v35  ;;  %v5507_v25 = vpack.c.bf16 %v4204_v57, %v4084_v56 }
 0x181   :  { %v1699_v10 = vadd.f32 %v1582_v32, %v1240_v1  ;;  %3976 = vmatmul.msk.bf16.gmra.mxu0 %vm261_vm0, %v5355_v27 }
 0x182   :  { %4024 = vmatmul.msk.bf16.gmra.mxu1 %vm261_vm0, %v5353_v40 }
 0x183   :  { %v1767_v19 = vadd.f32 %v5097_v18, %v1699_v10  ;;  %4144 = vmatmul.msk.bf16.gmra.mxu2 %vm261_vm0, %v5456_v7 }
 0x184   :  { %4264 = vmatmul.msk.bf16.gmra.mxu3 %vm261_vm0, %v5458_v9 }
 0x185   :  { %v1831_v20 = vmax.f32 %v1767_v19, 0.0 }
 0x186   :  { %v1126_v24 = vpop.f32.mrf.mxu2  ;;  %v444_v28 = vpop.f32.mrf.mxu0 }
 0x187   :  { %v1585_v41 = vpop.f32.mrf.mxu3  ;;  %1896 = vst.msk [vmem:[#allocation2 + $0xe8] sm:$0xff] %vm1866_vm1, %v1831_v20  ;;  %v1241_v6 = vadd.f32 %v1126_v24, %v732_v21  ;;  %v733_v27 = vpop.f32.mrf.mxu1 }
 0x188   :  { %v734_v34 = vadd.f32 %v733_v27, %v444_v28 }
 0x189   :  { %v1700_v29 = vadd.f32 %v1585_v41, %v1241_v6 }
 0x18b   :  { %v1768_v40 = vadd.f32 %v5097_v18, %v1700_v29  ;;  %v4086_v29 = vld [vmem:[%s6244_s0 + $0x220] sm:$0xff] }
 0x18d   :  { %v1832_v31 = vmax.f32 %v1768_v40, 0.0  ;;  %v4206_v40 = vld [vmem:[%s6244_s0 + $0x228] sm:$0xff] }
 0x18e   :  { %v1128_v55 = vpop.f32.mrf.mxu2  ;;  %v447_v50 = vpop.f32.mrf.mxu0 }
 0x18f   :  { %v1587_v54 = vpop.f32.mrf.mxu3  ;;  %1897 = vst.msk [vmem:[#allocation2 + $0xf0] sm:$0xff] %vm1866_vm1, %v1832_v31  ;;  %v1242_v37 = vadd.f32 %v1128_v55, %v734_v34  ;;  %v736_v38 = vpop.f32.mrf.mxu1 }
 0x190   :  { %v737_v63 = vadd.f32 %v736_v38, %v447_v50  ;;  %v5538_v38 = vld [vmem:[%s6246_s2] ss:$0 sm:$0xff] }
 0x191   :  { %v1701_v44 = vadd.f32 %v1587_v54, %v1242_v37  ;;  %3977 = vmatmul.msk.bf16.gmra.mxu0 %vm261_vm0, %v5382_v12  ;;  %v5527_v37 = vpack.c.bf16 %v4086_v29, %v4204_v57 }
 0x192   :  { %4025 = vmatmul.msk.bf16.gmra.mxu1 %vm261_vm0, %v5380_v49 }
 0x193   :  { %v1769_v45 = vadd.f32 %v5097_v18, %v1701_v44  ;;  %4145 = vmatmul.msk.bf16.gmra.mxu2 %vm261_vm0, %v5483_v13 }
 0x194   :  { %4265 = vmatmul.msk.bf16.gmra.mxu3 %vm261_vm0, %v5485_v39 }
 0x195   :  { %v1833_v46 = vmax.f32 %v1769_v45, 0.0 }
 0x196   :  { %v1131_v47 = vpop.f32.mrf.mxu2  ;;  %v449_v59 = vpop.f32.mrf.mxu0 }
 0x197   :  { %v1590_v62 = vpop.f32.mrf.mxu3  ;;  %1898 = vst.msk [vmem:[#allocation2 + $0xf8] sm:$0xff] %vm1866_vm1, %v1833_v46  ;;  %v1243_v60 = vadd.f32 %v1131_v47, %v737_v63  ;;  %v738_v12 = vpop.f32.mrf.mxu1 }
 0x198   :  { %v739_v17 = vadd.f32 %v738_v12, %v449_v59  ;;  %v4088_v12 = vld [vmem:[%s6244_s0 + $0x230] sm:$0xff] }
 0x199   :  { %v1702_v52 = vadd.f32 %v1590_v62, %v1243_v60 }
 0x19b   :  { %v1770_v49 = vadd.f32 %v5097_v18, %v1702_v52  ;;  %v4208_v52 = vld [vmem:[%s6244_s0 + $0x238] sm:$0xff] }
 0x19d   :  { %v1834_v58 = vmax.f32 %v1770_v49, 0.0 }
 0x19e   :  { %v1133_v61 = vpop.f32.mrf.mxu2  ;;  %v452_v32 = vpop.f32.mrf.mxu0 }
 0x19f   :  { %v1592_v11 = vpop.f32.mrf.mxu3  ;;  %1899 = vst.msk [vmem:[#allocation2 + $0x100] sm:$0xff] %vm1866_vm1, %v1834_v58  ;;  %v1244_v16 = vadd.f32 %v1133_v61, %v739_v17  ;;  %v741_v1 = vpop.f32.mrf.mxu1 }
 0x1a0   :  { %v742_v21 = vadd.f32 %v741_v1, %v452_v32  ;;  %v5556_v32 = vpack.c.bf16 %v4208_v52, %v4088_v12  ;;  %v4092_v52 = vld [vmem:[%s6244_s0 + $0x258] sm:$0xff] }
 0x1a1   :  { %v1703_v10 = vadd.f32 %v1592_v11, %v1244_v16  ;;  %3978 = vmatmul.msk.bf16.gmra.mxu0 %vm261_vm0, %v5404_v15  ;;  %v5554_v16 = vpack.c.bf16 %v4088_v12, %v4206_v40 }
 0x1a2   :  { %4026 = vmatmul.msk.bf16.gmra.mxu1 %vm261_vm0, %v5402_v14 }
 0x1a3   :  { %v1771_v19 = vadd.f32 %v5097_v18, %v1703_v10  ;;  %4146 = vmatmul.msk.bf16.gmra.mxu2 %vm261_vm0, %v5505_v26 }
 0x1a4   :  { %4266 = vmatmul.msk.bf16.gmra.mxu3 %vm261_vm0, %v5507_v25 }
 0x1a5   :  { %v1835_v20 = vmax.f32 %v1771_v19, 0.0 }
 0x1a6   :  { %v1136_v24 = vpop.f32.mrf.mxu2  ;;  %v454_v28 = vpop.f32.mrf.mxu0 }
 0x1a7   :  { %v1595_v41 = vpop.f32.mrf.mxu3  ;;  %1900 = vst.msk [vmem:[#allocation2 + $0x108] sm:$0xff] %vm1866_vm1, %v1835_v20  ;;  %v1245_v6 = vadd.f32 %v1136_v24, %v742_v21  ;;  %v743_v15 = vpop.f32.mrf.mxu1 }
 0x1a8   :  { %v744_v30 = vadd.f32 %v743_v15, %v454_v28  ;;  %v4089_v15 = vld [vmem:[%s6244_s0 + $0x240] sm:$0xff] }
 0x1a9   :  { %v1704_v27 = vadd.f32 %v1595_v41, %v1245_v6 }
 0x1ab   :  { %v1772_v14 = vadd.f32 %v5097_v18, %v1704_v27  ;;  %v5529_v18 = vpack.c.bf16 %v4206_v40, %v4086_v29  ;;  %v4090_v27 = vld [vmem:[%s6244_s0 + $0x248] sm:$0xff] }
 0x1ad   :  { %v1836_v36 = vmax.f32 %v1772_v14, 0.0  ;;  %v4210_v14 = vld [vmem:[%s6244_s0 + $0x250] sm:$0xff] }
 0x1ae   :  { %v1138_v35 = vpop.f32.mrf.mxu2  ;;  %v457_v55 = vpop.f32.mrf.mxu0 }
 0x1af   :  { %v1597_v31 = vpop.f32.mrf.mxu3  ;;  %1901 = vst.msk [vmem:[#allocation2 + $0x110] sm:$0xff] %vm1866_vm1, %v1836_v36  ;;  %v1246_v34 = vadd.f32 %v1138_v35, %v744_v30  ;;  %v746_v54 = vpop.f32.mrf.mxu1 }
 0x1b0   :  { %v747_v46 = vadd.f32 %v746_v54, %v457_v55  ;;  %v909_v55 = vpack.c.bf16 %v4090_v27, %v4089_v15  ;;  %v1368_v54 = vpack.c.bf16 %v4210_v14, %v4090_v27 }
 0x1b1   :  { %v1705_v50 = vadd.f32 %v1597_v31, %v1246_v34  ;;  %3979 = vmatmul.msk.bf16.gmra.mxu0 %vm261_vm0, %v5426_v43 }
 0x1b2   :  { %4027 = vmatmul.msk.bf16.gmra.mxu1 %vm261_vm0, %v5424_v42 }
 0x1b3   :  { %v1773_v44 = vadd.f32 %v5538_v38, %v1705_v50  ;;  %4147 = vmatmul.msk.bf16.gmra.mxu2 %vm261_vm0, %v5527_v37 }
 0x1b4   :  { %4267 = vmatmul.msk.bf16.gmra.mxu3 %vm261_vm0, %v5529_v18 }
 0x1b5   :  { %v1837_v45 = vmax.f32 %v1773_v44, 0.0 }
 0x1b6   :  { %v1141_v63 = vpop.f32.mrf.mxu2  ;;  %v459_v47 = vpop.f32.mrf.mxu0 }
 0x1b7   :  { %v1600_v43 = vpop.f32.mrf.mxu3  ;;  %1902 = vst.msk [vmem:[#allocation2 + $0x118] sm:$0xff] %vm1866_vm1, %v1837_v45  ;;  %v1247_v42 = vadd.f32 %v1141_v63, %v747_v46  ;;  %v748_v62 = vpop.f32.mrf.mxu1 }
 0x1b8   :  { %v749_v56 = vadd.f32 %v748_v62, %v459_v47 }
 0x1b9   :  { %v1706_v60 = vadd.f32 %v1600_v43, %v1247_v42 }
 0x1bb   :  { %v1774_v59 = vadd.f32 %v5538_v38, %v1706_v60 }
 0x1bd   :  { %v1838_v49 = vmax.f32 %v1774_v59, 0.0 }
 0x1be   :  { %v1143_v57 = vpop.f32.mrf.mxu2  ;;  %v462_v61 = vpop.f32.mrf.mxu0 }
 0x1bf   :  { %v1602_v58 = vpop.f32.mrf.mxu3  ;;  %1903 = vst.msk [vmem:[#allocation2 + $0x120] sm:$0xff] %vm1866_vm1, %v1838_v49  ;;  %v1248_v17 = vadd.f32 %v1143_v57, %v749_v56  ;;  %v751_v11 = vpop.f32.mrf.mxu1  ;;  %v4212_v49 = vld [vmem:[%s6244_s0 + $0x260] sm:$0xff] }
 0x1c0   :  { %v752_v20 = vadd.f32 %v751_v11, %v462_v61 }
 0x1c1   :  { %v1707_v1 = vadd.f32 %v1602_v58, %v1248_v17  ;;  %3980 = vmatmul.msk.bf16.gmra.mxu0 %vm261_vm0, %v5458_v9 }
 0x1c2   :  { %4028 = vmatmul.msk.bf16.gmra.mxu1 %vm261_vm0, %v5456_v7 }
 0x1c3   :  { %v1775_v10 = vadd.f32 %v5538_v38, %v1707_v1  ;;  %4148 = vmatmul.msk.bf16.gmra.mxu2 %vm261_vm0, %v5554_v16 }
 0x1c4   :  { %4268 = vmatmul.msk.bf16.gmra.mxu3 %vm261_vm0, %v5556_v32 }
 0x1c5   :  { %v1839_v19 = vmax.f32 %v1775_v10, 0.0 }
 0x1c6   :  { %v1146_v21 = vpop.f32.mrf.mxu2  ;;  %v464_v6 = vpop.f32.mrf.mxu0  ;;  %v5586_v42 = vld [vmem:[#allocation2 + $0x120] sm:$0xff] }
 0x1c7   :  { %v1605_v24 = vpop.f32.mrf.mxu3  ;;  %1904 = vst.msk [vmem:[#allocation2 + $0x128] sm:$0xff] %vm1866_vm1, %v1839_v19  ;;  %v1249_v41 = vadd.f32 %v1146_v21, %v752_v20  ;;  %v753_v9 = vpop.f32.mrf.mxu1  ;;  %v910_v20 = vpack.c.bf16 %v4092_v52, %v4210_v14  ;;  %v1369_v21 = vpack.c.bf16 %v4212_v49, %v4092_v52 }
 0x1c8   :  { %v754_v40 = vadd.f32 %v753_v9, %v464_v6 }
 0x1c9   :  { %v1708_v28 = vadd.f32 %v1605_v24, %v1249_v41 }
 0x1cb   :  { %v1776_v7 = vadd.f32 %v5538_v38, %v1708_v28 }
 0x1cd   :  { %v1840_v29 = vmax.f32 %v1776_v7, 0.0 }
 0x1ce   :  { %v1148_v36 = vpop.f32.mrf.mxu2  ;;  %v467_v31 = vpop.f32.mrf.mxu0  ;;  %v5600_v61 = vld [vmem:[#allocation2 + $0x128] sm:$0xff] }
 0x1cf   :  { %v1607_v30 = vpop.f32.mrf.mxu3  ;;  %1905 = vst.msk [vmem:[#allocation2 + $0x130] sm:$0xff] %vm1866_vm1, %v1840_v29  ;;  %v1250_v35 = vadd.f32 %v1148_v36, %v754_v40  ;;  %v756_v34 = vpop.f32.mrf.mxu1  ;;  %v4214_v36 = vld [vmem:[%s6244_s0 + $0x270] sm:$0xff] }
 0x1d0   :  { %v757_v46 = vadd.f32 %v756_v34, %v467_v31 }
 0x1d1   :  { %v1709_v50 = vadd.f32 %v1607_v30, %v1250_v35  ;;  %3981 = vmatmul.msk.bf16.gmra.mxu0 %vm261_vm0, %v5485_v39 }
 0x1d2   :  { %4029 = vmatmul.msk.bf16.gmra.mxu1 %vm261_vm0, %v5483_v13 }
 0x1d3   :  { %v1777_v44 = vadd.f32 %v5538_v38, %v1709_v50  ;;  %4149 = vmatmul.msk.bf16.gmra.mxu2 %vm261_vm0, %v909_v55 }
 0x1d4   :  { %4269 = vmatmul.msk.bf16.gmra.mxu3 %vm261_vm0, %v1368_v54 }
 0x1d5   :  { %v1841_v45 = vmax.f32 %v1777_v44, 0.0 }
 0x1d6   :  { %v1151_v63 = vpop.f32.mrf.mxu2  ;;  %v5588_v47 = vld [vmem:[#allocation2 + $0x130] sm:$0xff]  ;;  %v469_v62 = vpop.f32.mrf.mxu0 }
 0x1d7   :  { %v1610_v43 = vpop.f32.mrf.mxu3  ;;  %1906 = vst.msk [vmem:[#allocation2 + $0x138] sm:$0xff] %vm1866_vm1, %v1841_v45  ;;  %v1251_v39 = vadd.f32 %v1151_v63, %v757_v46  ;;  %v758_v60 = vpop.f32.mrf.mxu1  ;;  %v2813_v13 = vpack.c.bf16 %v5588_v47, %v5586_v42 }
 0x1d8   :  { %v759_v57 = vadd.f32 %v758_v60, %v469_v62 }
 0x1d9   :  { %v1710_v59 = vadd.f32 %v1610_v43, %v1251_v39 }
 0x1db   :  { %v1778_v12 = vadd.f32 %v5538_v38, %v1710_v59 }
 0x1dd   :  { %v1842_v56 = vmax.f32 %v1778_v12, 0.0 }
 0x1de   :  { %v1153_v58 = vpop.f32.mrf.mxu2  ;;  %v5602_v11 = vld [vmem:[#allocation2 + $0x138] sm:$0xff]  ;;  %v472_v10 = vpop.f32.mrf.mxu0 }
 0x1df   :  { %v1612_v17 = vpop.f32.mrf.mxu3  ;;  %1907 = vst.msk [vmem:[#allocation2 + $0x140] sm:$0xff] %vm1866_vm1, %v1842_v56  ;;  %v1252_v1 = vadd.f32 %v1153_v58, %v759_v57  ;;  %v761_v19 = vpop.f32.mrf.mxu1  ;;  %v2902_v24 = vpack.c.bf16 %v5602_v11, %v5600_v61  ;;  %v4096_v58 = vld [vmem:[%s6244_s0 + $0x278] sm:$0xff] }
 0x1e0   :  { %v762_v28 = vadd.f32 %v761_v19, %v472_v10 }
 0x1e1   :  { %v1711_v41 = vadd.f32 %v1612_v17, %v1252_v1  ;;  %3982 = vmatmul.msk.bf16.gmra.mxu0 %vm261_vm0, %v5507_v25  ;;  %v4216_v17 = vld [vmem:[%s6244_s0 + $0x280] sm:$0xff] }
 0x1e2   :  { %4030 = vmatmul.msk.bf16.gmra.mxu1 %vm261_vm0, %v5505_v26  ;;  %v4094_v26 = vld [vmem:[%s6244_s0 + $0x268] sm:$0xff] }
 0x1e3   :  { %v1779_v6 = vadd.f32 %v5538_v38, %v1711_v41  ;;  %4150 = vmatmul.msk.bf16.gmra.mxu2 %vm261_vm0, %v910_v20  ;;  %v911_v44 = vpack.c.bf16 %v4094_v26, %v4212_v49  ;;  %v1370_v45 = vpack.c.bf16 %v4214_v36, %v4094_v26  ;;  %v4789_v49 = vld [vmem:[%s6245_s3 + $0x78] sm:$0xff] }
 0x1e4   :  { %4270 = vmatmul.msk.bf16.gmra.mxu3 %vm261_vm0, %v1369_v21 }
 0x1e5   :  { %v1843_v9 = vmax.f32 %v1779_v6, 0.0  ;;  %2587 = vmatpush.bf16.msra.mxu3 %v4789_v49 }
 0x1e6   :  { %v1156_v7 = vpop.f32.mrf.mxu2  ;;  %v474_v14 = vpop.f32.mrf.mxu0 }
 0x1e7   :  { %v1615_v15 = vpop.f32.mrf.mxu3  ;;  %1908 = vst.msk [vmem:[#allocation2 + $0x148] sm:$0xff] %vm1866_vm1, %v1843_v9  ;;  %v1253_v27 = vadd.f32 %v1156_v7, %v762_v28  ;;  %v763_v29 = vpop.f32.mrf.mxu1  ;;  %v912_v9 = vpack.c.bf16 %v4096_v58, %v4214_v36  ;;  %v1371_v28 = vpack.c.bf16 %v4216_v17, %v4096_v58  ;;  %v4785_v7 = vld [vmem:[%s6245_s3 + $0x58] sm:$0xff] }
 0x1e8   :  { %v764_v35 = vadd.f32 %v763_v29, %v474_v14  ;;  %2409 = vmatpush.bf16.msra.mxu1 %v4785_v7 }
 0x1e9   :  { %v1712_v40 = vadd.f32 %v1615_v15, %v1253_v27 }
 0x1eb   :  { %v1780_v25 = vadd.f32 %v5538_v38, %v1712_v40 }
 0x1ed   :  { %v1844_v30 = vmax.f32 %v1780_v25, 0.0 }
 0x1ee   :  { %v1158_v31 = vpop.f32.mrf.mxu2  ;;  %v477_v54 = vpop.f32.mrf.mxu0 }
 0x1ef   :  { %v1617_v34 = vpop.f32.mrf.mxu3  ;;  %1909 = vst.msk [vmem:[#allocation2 + $0x150] sm:$0xff] %vm1866_vm1, %v1844_v30  ;;  %v1254_v55 = vadd.f32 %v1158_v31, %v764_v35  ;;  %v766_v50 = vpop.f32.mrf.mxu1 }
 0x1f0   :  { %v767_v39 = vadd.f32 %v766_v50, %v477_v54 }
 0x1f1   :  { %v1713_v46 = vadd.f32 %v1617_v34, %v1254_v55  ;;  %3983 = vmatmul.msk.bf16.gmra.mxu0 %vm261_vm0, %v5529_v18  ;;  %v4787_v18 = vld [vmem:[%s6245_s3 + $0x68] sm:$0xff]  ;;  %v1951_v34 = vld [vmem:[#allocation2 + $0x18] sm:$0xff]  ;;  %v1932_v55 = vld [vmem:[#allocation2 + $0x10] sm:$0xff] }
 0x1f2   :  { %4031 = vmatmul.msk.bf16.gmra.mxu1 %vm261_vm0, %v5527_v37  ;;  %v4783_v37 = vld [vmem:[%s6245_s3 + $0x48] sm:$0xff]  ;;  %2498 = vmatpush.bf16.msra.mxu2 %v4787_v18 }
 0x1f3   :  { %v1781_v63 = vadd.f32 %v5538_v38, %v1713_v46  ;;  %4151 = vmatmul.msk.bf16.gmra.mxu2 %vm261_vm0, %v911_v44  ;;  %2320 = vmatpush.bf16.msra.mxu0 %v4783_v37  ;;  %v2091_v44 = vld [vmem:[#allocation2 + $0x20] sm:$0xff] }
 0x1f4   :  { %4271 = vmatmul.msk.bf16.gmra.mxu3 %vm261_vm0, %v1370_v45  ;;  %v2180_v45 = vld [vmem:[#allocation2 + $0x28] sm:$0xff] }
 0x1f5   :  { %v1845_v43 = vmax.f32 %v1781_v63, 0.0  ;;  %v2188_v18 = vpack.c.bf16 %v2180_v45, %v1951_v34 }
 0x1f6   :  { %v1161_v62 = vpop.f32.mrf.mxu2  ;;  %v479_v12 = vpop.f32.mrf.mxu0 }
 0x1f7   :  { %v1620_v60 = vpop.f32.mrf.mxu3  ;;  %1910 = vst.msk [vmem:[#allocation2 + $0x158] sm:$0xff] %vm1866_vm1, %v1845_v43  ;;  %v1255_v59 = vadd.f32 %v1161_v62, %v767_v39  ;;  %v768_v52 = vpop.f32.mrf.mxu1  ;;  %v1950_v39 = vld [vmem:[#allocation2 + $0x8] sm:$0xff]  ;;  %v1931_v62 = vld [vmem:[#allocation2] sm:$0xff] }
 0x1f8   :  { %v769_v10 = vadd.f32 %v768_v52, %v479_v12  ;;  %v2099_v52 = vpack.c.bf16 %v2091_v44, %v1932_v55 }
 0x1f9   :  { %v1714_v56 = vadd.f32 %v1620_v60, %v1255_v59  ;;  %v1959_v60 = vpack.c.bf16 %v1951_v34, %v1950_v39  ;;  %v1940_v59 = vpack.c.bf16 %v1932_v55, %v1931_v62  ;;  %v4788_v34 = vld [vmem:[%s6245_s3 + $0x70] sm:$0xff] }
 0x1fa   :  { %2588 = vmatpush.bf16.msra.mxu3 %v4788_v34 }
 0x1fb   :  { %v1782_v57 = vadd.f32 %v5538_v38, %v1714_v56 }
 0x1fd   :  { %v1846_v1 = vmax.f32 %v1782_v57, 0.0 }
 0x1fe   :  { %v1163_v19 = vpop.f32.mrf.mxu2  ;;  %v482_v41 = vpop.f32.mrf.mxu0 }
 0x1ff   :  { %v1622_v20 = vpop.f32.mrf.mxu3  ;;  %1911 = vst.msk [vmem:[#allocation2 + $0x160] sm:$0xff] %vm1866_vm1, %v1846_v1  ;;  %v1256_v21 = vadd.f32 %v1163_v19, %v769_v10  ;;  %v771_v6 = vpop.f32.mrf.mxu1 }
 0x200   :  { %v772_v29 = vadd.f32 %v771_v6, %v482_v41 }
 0x201   :  { %v1715_v15 = vadd.f32 %v1622_v20, %v1256_v21  ;;  %3984 = vmatmul.msk.bf16.gmra.mxu0 %vm261_vm0, %v5556_v32 }
 0x202   :  { %4032 = vmatmul.msk.bf16.gmra.mxu1 %vm261_vm0, %v5554_v16 }
 0x203   :  { %v1783_v27 = vadd.f32 %v5538_v38, %v1715_v15  ;;  %4152 = vmatmul.msk.bf16.gmra.mxu2 %vm261_vm0, %v912_v9 }
 0x204   :  { %4272 = vmatmul.msk.bf16.gmra.mxu3 %vm261_vm0, %v1371_v28 }
 0x205   :  { %v1847_v14 = vmax.f32 %v1783_v27, 0.0 }
 0x206   :  { %v1166_v40 = vpop.f32.mrf.mxu2  ;;  %v484_v36 = vpop.f32.mrf.mxu0  ;;  %v5666_v17 = vld [vmem:[#allocation2 + $0x160] sm:$0xff] }
 0x207   :  { %v1625_v25 = vpop.f32.mrf.mxu3  ;;  %1912 = vst.msk [vmem:[#allocation2 + $0x168] sm:$0xff] %vm1866_vm1, %v1847_v14  ;;  %v1257_v26 = vadd.f32 %v1166_v40, %v772_v29  ;;  %v773_v30 = vpop.f32.mrf.mxu1 }
 0x208   :  { %v774_v16 = vadd.f32 %v773_v30, %v484_v36  ;;  %v4782_v36 = vld [vmem:[%s6245_s3 + $0x40] sm:$0xff] }
 0x209   :  { %v1716_v35 = vadd.f32 %v1625_v25, %v1257_v26  ;;  %v4786_v26 = vld [vmem:[%s6245_s3 + $0x60] sm:$0xff]  ;;  %2321 = vmatpush.bf16.msra.mxu0 %v4782_v36 }
 0x20a   :  { %2499 = vmatpush.bf16.msra.mxu2 %v4786_v26 }
 0x20b   :  { %v1784_v32 = vadd.f32 %v5538_v38, %v1716_v35  ;;  %v1960_v35 = vpack.c.bf16 %v5348_v22, %v2180_v45  ;;  %v4804_v22 = vld [vmem:[%s6245_s3 + $0xf0] sm:$0xff] }
 0x20d   :  { %v1848_v31 = vmax.f32 %v1784_v32, 0.0  ;;  %v1941_v32 = vpack.c.bf16 %v5334_v3, %v2091_v44 }
 0x20e   :  { %v1168_v54 = vpop.f32.mrf.mxu2  ;;  %v487_v63 = vpop.f32.mrf.mxu0  ;;  %v5674_v27 = vld [vmem:[#allocation2 + $0x168] sm:$0xff] }
 0x20f   :  { %v1627_v50 = vpop.f32.mrf.mxu3  ;;  %1913 = vst.msk [vmem:[#allocation2 + $0x170] sm:$0xff] %vm1866_vm1, %v1848_v31  ;;  %v1258_v46 = vadd.f32 %v1168_v54, %v774_v16  ;;  %v776_v43 = vpop.f32.mrf.mxu1  ;;  %v2092_v31 = vld [vmem:[#allocation2 + $0x30] sm:$0xff]  ;;  %v2181_v16 = vld [vmem:[#allocation2 + $0x38] sm:$0xff] }
 0x210   :  { %v777_v56 = vadd.f32 %v776_v43, %v487_v63  ;;  %v2100_v54 = vpack.c.bf16 %v5336_v4, %v2092_v31 }
 0x211   :  { %v1717_v12 = vadd.f32 %v1627_v50, %v1258_v46  ;;  %4285 = vmatmul.msk.bf16.vlgmr.msrb.gmra.mxu0 %vm1866_vm1, %v1959_v60  ;;  %v2189_v50 = vpack.c.bf16 %v5350_v23, %v2181_v16 }
 0x212   :  { %4298 = vmatmul.msk.bf16.vlgmr.msrb.gmra.mxu1 %vm1866_vm1, %v1940_v59  ;;  %v4784_v59 = vld [vmem:[%s6245_s3 + $0x50] sm:$0xff] }
 0x213   :  { %v1785_v37 = vadd.f32 %v5538_v38, %v1717_v12  ;;  %4315 = vmatmul.msk.bf16.vlgmr.msrb.gmra.mxu2 %vm1866_vm1, %v2099_v52  ;;  %2410 = vmatpush.bf16.msra.mxu1 %v4784_v59  ;;  %v5741_v59 = vld [vmem:[#allocation2 + $0x100] sm:$0xff] }
 0x214   :  { %4332 = vmatmul.msk.bf16.vlgmr.msrb.gmra.mxu3 %vm1866_vm1, %v2188_v18 }
 0x215   :  { %v1849_v49 = vmax.f32 %v1785_v37, 0.0 }
 0x216   :  { %v1171_v57 = vpop.f32.mrf.mxu2  ;;  %v5668_v1 = vld [vmem:[#allocation2 + $0x170] sm:$0xff]  ;;  %v489_v19 = vpop.f32.mrf.mxu0 }
 0x217   :  { %v1630_v58 = vpop.f32.mrf.mxu3  ;;  %1914 = vst.msk [vmem:[#allocation2 + $0x178] sm:$0xff] %vm1866_vm1, %v1849_v49  ;;  %v1259_v10 = vadd.f32 %v1171_v57, %v777_v56  ;;  %v778_v20 = vpop.f32.mrf.mxu1  ;;  %v5704_v49 = vld [vmem:[#allocation2 + $0xa8] sm:$0xff]  ;;  %v5706_v56 = vld [vmem:[#allocation2 + $0xa0] sm:$0xff] }
 0x218   :  { %v779_v28 = vadd.f32 %v778_v20, %v489_v19  ;;  %v5710_v19 = vld [vmem:[#allocation2 + $0xb8] sm:$0xff] }
 0x219   :  { %v1718_v41 = vadd.f32 %v1630_v58, %v1259_v10  ;;  %v5708_v10 = vld [vmem:[#allocation2 + $0xb0] sm:$0xff] }
 0x21b   :  { %v1786_v6 = vadd.f32 %v5538_v38, %v1718_v41 }
 0x21d   :  { %v1850_v9 = vmax.f32 %v1786_v6, 0.0 }
 0x21e   :  { %v1173_v7 = vpop.f32.mrf.mxu2  ;;  %v5676_v14 = vld [vmem:[#allocation2 + $0x178] sm:$0xff]  ;;  %v492_v40 = vpop.f32.mrf.mxu0 }
 0x21f   :  { %v1632_v15 = vpop.f32.mrf.mxu3  ;;  %1915 = vst.msk [vmem:[#allocation2 + $0x180] sm:$0xff] %vm1866_vm1, %v1850_v9  ;;  %v1260_v29 = vadd.f32 %v1173_v7, %v779_v28  ;;  %v781_v25 = vpop.f32.mrf.mxu1  ;;  %v5715_v9 = vpack.c.bf16 %v5704_v49, %v5350_v23  ;;  %v5719_v28 = vpack.c.bf16 %v5706_v56, %v5336_v4  ;;  %v4802_v4 = vld [vmem:[%s6245_s3 + $0xe0] sm:$0xff] }
 0x220   :  { %v782_v46 = vadd.f32 %v781_v25, %v492_v40 }
 0x221   :  { %v1719_v55 = vadd.f32 %v1632_v15, %v1260_v29  ;;  %4286 = vmatmul.msk.bf16.gmra.mxu0 %vm1866_vm1, %v1960_v35  ;;  %v2101_v15 = vpack.c.bf16 %v5708_v10, %v5706_v56  ;;  %v2190_v29 = vpack.c.bf16 %v5710_v19, %v5704_v49 }
 0x222   :  { %4299 = vmatmul.msk.bf16.gmra.mxu1 %vm1866_vm1, %v1941_v32 }
 0x223   :  { %v1787_v45 = vadd.f32 %v5538_v38, %v1719_v55  ;;  %4316 = vmatmul.msk.bf16.gmra.mxu2 %vm1866_vm1, %v2100_v54 }
 0x224   :  { %4333 = vmatmul.msk.bf16.gmra.mxu3 %vm1866_vm1, %v2189_v50 }
 0x225   :  { %v1851_v44 = vmax.f32 %v1787_v45, 0.0  ;;  %v5734_v45 = vld [vmem:[#allocation2 + $0x118] sm:$0xff] }
 0x226   :  { %v1176_v63 = vpop.f32.mrf.mxu2  ;;  %v494_v62 = vpop.f32.mrf.mxu0 }
 0x227   :  { %v1635_v43 = vpop.f32.mrf.mxu3  ;;  %1916 = vst.msk [vmem:[#allocation2 + $0x188] sm:$0xff] %vm1866_vm1, %v1851_v44  ;;  %v1261_v39 = vadd.f32 %v1176_v63, %v782_v46  ;;  %v783_v60 = vpop.f32.mrf.mxu1  ;;  %v5736_v44 = vld [vmem:[#allocation2 + $0x110] sm:$0xff] }
 0x228   :  { %v784_v37 = vadd.f32 %v783_v60, %v494_v62  ;;  %v5739_v60 = vld [vmem:[#allocation2 + $0x108] sm:$0xff] }
 0x229   :  { %v1720_v12 = vadd.f32 %v1635_v43, %v1261_v39 }
 0x22b   :  { %v1788_v52 = vadd.f32 %v5538_v38, %v1720_v12  ;;  %v1962_v12 = vpack.c.bf16 %v5734_v45, %v5739_v60 }
 0x22d   :  { %v1852_v18 = vmax.f32 %v1788_v52, 0.0  ;;  %v1943_v52 = vpack.c.bf16 %v5736_v44, %v5741_v59 }
 0x22e   :  { %v1178_v57 = vpop.f32.mrf.mxu2  ;;  %v497_v41 = vpop.f32.mrf.mxu0 }
 0x22f   :  { %v1637_v58 = vpop.f32.mrf.mxu3  ;;  %1917 = vst.msk [vmem:[#allocation2 + $0x190] sm:$0xff] %vm1866_vm1, %v1852_v18  ;;  %v1262_v20 = vadd.f32 %v1178_v57, %v784_v37  ;;  %v786_v6 = vpop.f32.mrf.mxu1  ;;  %v5749_v37 = vpack.c.bf16 %v5586_v42, %v5736_v44  ;;  %v5753_v57 = vpack.c.bf16 %v5600_v61, %v5734_v45 }
 0x230   :  { %v787_v26 = vadd.f32 %v786_v6, %v497_v41 }
 0x231   :  { %v1721_v7 = vadd.f32 %v1637_v58, %v1262_v20  ;;  %4287 = vmatmul.msk.bf16.gmra.mxu0 %vm1866_vm1, %v5715_v9 }
 0x232   :  { %4300 = vmatmul.msk.bf16.gmra.mxu1 %vm1866_vm1, %v5719_v28 }
 0x233   :  { %v1789_v40 = vadd.f32 %v5538_v38, %v1721_v7  ;;  %4317 = vmatmul.msk.bf16.gmra.mxu2 %vm1866_vm1, %v2101_v15 }
 0x234   :  { %4334 = vmatmul.msk.bf16.gmra.mxu3 %vm1866_vm1, %v2190_v29 }
 0x235   :  { %v1853_v25 = vmax.f32 %v1789_v40, 0.0 }
 0x236   :  { %v1181_v36 = vpop.f32.mrf.mxu2  ;;  %v499_v31 = vpop.f32.mrf.mxu0 }
 0x237   :  { %v1640_v35 = vpop.f32.mrf.mxu3  ;;  %1918 = vst.msk [vmem:[#allocation2 + $0x198] sm:$0xff] %vm1866_vm1, %v1853_v25  ;;  %v1263_v32 = vadd.f32 %v1181_v36, %v787_v26  ;;  %v788_v16 = vpop.f32.mrf.mxu1  ;;  %v4795_v25 = vld [vmem:[%s6245_s3 + $0xa8] sm:$0xff]  ;;  %v4797_v36 = vld [vmem:[%s6245_s3 + $0xb8] sm:$0xff] }
 0x238   :  { %v789_v50 = vadd.f32 %v788_v16, %v499_v31  ;;  %v4791_v26 = vld [vmem:[%s6245_s3 + $0x88] sm:$0xff]  ;;  %2854 = vmatpush.bf16.msrb.mxu2 %v4795_v25  ;;  %2943 = vmatpush.bf16.msrb.mxu3 %v4797_v36 }
 0x239   :  { %v1722_v34 = vadd.f32 %v1640_v35, %v1263_v32  ;;  %2676 = vmatpush.bf16.msrb.mxu0 %v4791_v26 }
 0x23b   :  { %v1790_v55 = vadd.f32 %v5538_v38, %v1722_v34 }
 0x23d   :  { %v1854_v54 = vmax.f32 %v1790_v55, 0.0 }
 0x23e   :  { %v1183_v46 = vpop.f32.mrf.mxu2  ;;  %v502_v39 = vpop.f32.mrf.mxu0 }
 0x23f   :  { %v1642_v63 = vpop.f32.mrf.mxu3  ;;  %1919 = vst.msk [vmem:[#allocation2 + $0x1a0] sm:$0xff] %vm1866_vm1, %v1854_v54  ;;  %v1264_v43 = vadd.f32 %v1183_v46, %v789_v50  ;;  %v791_v62 = vpop.f32.mrf.mxu1 }
 0x240   :  { %v792_v41 = vadd.f32 %v791_v62, %v502_v39  ;;  %v1944_v39 = vpack.c.bf16 %v5586_v42, %v5586_v42 }
 0x241   :  { %v1723_v18 = vadd.f32 %v1642_v63, %v1264_v43  ;;  %4288 = vmatmul.msk.bf16.gmra.mxu0 %vm1866_vm1, %v1962_v12  ;;  %v4793_v63 = vld [vmem:[%s6245_s3 + $0x98] sm:$0xff]  ;;  %v1963_v43 = vpack.c.bf16 %v5600_v61, %v5600_v61  ;;  %v2103_v12 = vpack.c.bf16 %v5588_v47, %v5588_v47 }
 0x242   :  { %4301 = vmatmul.msk.bf16.gmra.mxu1 %vm1866_vm1, %v1943_v52  ;;  %v2192_v52 = vpack.c.bf16 %v5602_v11, %v5602_v11 }
 0x243   :  { %v1791_v58 = vadd.f32 %v5538_v38, %v1723_v18  ;;  %4318 = vmatmul.msk.bf16.gmra.mxu2 %vm1866_vm1, %v5749_v37  ;;  %2765 = vmatpush.bf16.msrb.mxu1 %v4793_v63  ;;  %v2268_v63 = vld [vmem:[#allocation2 + $0x40] sm:$0xff] }
 0x244   :  { %4335 = vmatmul.msk.bf16.gmra.mxu3 %vm1866_vm1, %v5753_v57 }
 0x245   :  { %v1855_v20 = vmax.f32 %v1791_v58, 0.0 }
 0x246   :  { %v1186_v6 = vpop.f32.mrf.mxu2  ;;  %v504_v29 = vpop.f32.mrf.mxu0 }
 0x247   :  { %v1645_v7 = vpop.f32.mrf.mxu3  ;;  %1920 = vst.msk [vmem:[#allocation2 + $0x1a8] sm:$0xff] %vm1866_vm1, %v1855_v20  ;;  %v1265_v15 = vadd.f32 %v1186_v6, %v792_v41  ;;  %v793_v40 = vpop.f32.mrf.mxu1 }
 0x248   :  { %v794_v16 = vadd.f32 %v793_v40, %v504_v29 }
 0x249   :  { %v1724_v35 = vadd.f32 %v1645_v7, %v1265_v15 }
 0x24b   :  { %v1792_v32 = vadd.f32 %v5538_v38, %v1724_v35  ;;  %v2269_v35 = vld [vmem:[#allocation2 + $0x50] sm:$0xff] }
 0x24d   :  { %v1856_v31 = vmax.f32 %v1792_v32, 0.0  ;;  %v2358_v32 = vld [vmem:[#allocation2 + $0x58] sm:$0xff] }
 0x24e   :  { %v1188_v34 = vpop.f32.mrf.mxu2  ;;  %v507_v50 = vpop.f32.mrf.mxu0  ;;  %v2898_v42 = vld [vmem:[#allocation2 + $0x1a8] sm:$0xff] }
 0x24f   :  { %v1647_v55 = vpop.f32.mrf.mxu3  ;;  %1921 = vst.msk [vmem:[#allocation2 + $0x1b0] sm:$0xff] %vm1866_vm1, %v1856_v31  ;;  %v1266_v54 = vadd.f32 %v1188_v34, %v794_v16  ;;  %v796_v46 = vpop.f32.mrf.mxu1  ;;  %v2447_v34 = vld [vmem:[#allocation2 + $0x60] sm:$0xff] }
 0x250   :  { %v797_v20 = vadd.f32 %v796_v46, %v507_v50 }
 0x251   :  { %v1725_v62 = vadd.f32 %v1647_v55, %v1266_v54  ;;  %4289 = vmatmul.msk.bf16.gmra.mxu0 %vm1866_vm1, %v1963_v43  ;;  %v2536_v55 = vld [vmem:[#allocation2 + $0x68] sm:$0xff] }
 0x252   :  { %4302 = vmatmul.msk.bf16.gmra.mxu1 %vm1866_vm1, %v1944_v39  ;;  %v2357_v43 = vld [vmem:[#allocation2 + $0x48] sm:$0xff]  ;;  %v2277_v39 = vpack.c.bf16 %v2269_v35, %v2268_v63 }
 0x253   :  { %v1793_v18 = vadd.f32 %v5538_v38, %v1725_v62  ;;  %4319 = vmatmul.msk.bf16.gmra.mxu2 %vm1866_vm1, %v2103_v12  ;;  %v2366_v62 = vpack.c.bf16 %v2358_v32, %v2357_v43  ;;  %v2278_v43 = vpack.c.bf16 %v5437_v48, %v2447_v34 }
 0x254   :  { %4336 = vmatmul.msk.bf16.gmra.mxu3 %vm1866_vm1, %v2192_v52  ;;  %v2455_v52 = vpack.c.bf16 %v2447_v34, %v2269_v35 }
 0x255   :  { %v1857_v58 = vmax.f32 %v1793_v18, 0.0  ;;  %v2544_v18 = vpack.c.bf16 %v2536_v55, %v2358_v32 }
 0x256   :  { %v1191_v41 = vpop.f32.mrf.mxu2  ;;  %v509_v15 = vpop.f32.mrf.mxu0 }
 0x257   :  { %v1650_v6 = vpop.f32.mrf.mxu3  ;;  %1922 = vst.msk [vmem:[#allocation2 + $0x1b8] sm:$0xff] %vm1866_vm1, %v1857_v58  ;;  %v1267_v7 = vadd.f32 %v1191_v41, %v797_v20  ;;  %v798_v29 = vpop.f32.mrf.mxu1 }
 0x258   :  { %v799_v36 = vadd.f32 %v798_v29, %v509_v15 }
 0x259   :  { %v1726_v40 = vadd.f32 %v1650_v6, %v1267_v7 }
 0x25b   :  { %v1794_v25 = vadd.f32 %v5538_v38, %v1726_v40 }
 0x25d   :  { %v1858_v26 = vmax.f32 %v1794_v25, 0.0 }
 0x25e   :  { %v1193_v31 = vpop.f32.mrf.mxu2  ;;  %v512_v50 = vpop.f32.mrf.mxu0 }
 0x25f   :  { %v1652_v16 = vpop.f32.mrf.mxu3  ;;  %1923 = vst.msk [vmem:[#allocation2 + $0x1c0] sm:$0xff] %vm1866_vm1, %v1858_v26  ;;  %v1268_v54 = vadd.f32 %v1193_v31, %v799_v36  ;;  %v801_v46 = vpop.f32.mrf.mxu1 }
 0x260   :  { %v802_v41 = vadd.f32 %v801_v46, %v512_v50  ;;  %v4794_v50 = vld [vmem:[%s6245_s3 + $0xa0] sm:$0xff] }
 0x261   :  { %v1727_v12 = vadd.f32 %v1652_v16, %v1268_v54  ;;  %4349 = vmatmul.msk.bf16.vlgmr.msra.gmra.mxu0 %vm1866_vm1, %v2277_v39  ;;  %v4790_v46 = vld [vmem:[%s6245_s3 + $0x80] sm:$0xff]  ;;  %v2367_v39 = vpack.c.bf16 %v5451_v0, %v2536_v55  ;;  %2855 = vmatpush.bf16.msrb.mxu2 %v4794_v50  ;;  %v5828_v50 = vld [vmem:[#allocation2 + $0xf0] sm:$0xff] }
 0x262   :  { %4366 = vmatmul.msk.bf16.vlgmr.msra.gmra.mxu1 %vm1866_vm1, %v2366_v62  ;;  %v2448_v62 = vld [vmem:[#allocation2 + $0x70] sm:$0xff]  ;;  %2677 = vmatpush.bf16.msrb.mxu0 %v4790_v46  ;;  %v5830_v46 = vld [vmem:[#allocation2 + $0xf8] sm:$0xff] }
 0x263   :  { %v1795_v58 = vadd.f32 %v5538_v38, %v1727_v12  ;;  %4383 = vmatmul.msk.bf16.vlgmr.msra.gmra.mxu2 %vm1866_vm1, %v2455_v52  ;;  %v2537_v12 = vld [vmem:[#allocation2 + $0x78] sm:$0xff]  ;;  %v4796_v52 = vld [vmem:[%s6245_s3 + $0xb0] sm:$0xff] }
 0x264   :  { %4400 = vmatmul.msk.bf16.vlgmr.msra.gmra.mxu3 %vm1866_vm1, %v2544_v18 }
 0x265   :  { %v1859_v20 = vmax.f32 %v1795_v58, 0.0  ;;  %v2456_v58 = vpack.c.bf16 %v5439_v51, %v2448_v62  ;;  %2944 = vmatpush.bf16.msrb.mxu3 %v4796_v52 }
 0x266   :  { %v1196_v6 = vpop.f32.mrf.mxu2  ;;  %v514_v29 = vpop.f32.mrf.mxu0 }
 0x267   :  { %v1655_v7 = vpop.f32.mrf.mxu3  ;;  %1924 = vst.msk [vmem:[#allocation2 + $0x1c8] sm:$0xff] %vm1866_vm1, %v1859_v20  ;;  %v1269_v15 = vadd.f32 %v1196_v6, %v802_v41  ;;  %v803_v40 = vpop.f32.mrf.mxu1  ;;  %v2545_v20 = vpack.c.bf16 %v5453_v2, %v2537_v12  ;;  %v4848_v12 = vld [vmem:[#allocation2 + $0xd0] sm:$0xff] }
 0x268   :  { %v804_v35 = vadd.f32 %v803_v40, %v514_v29 }
 0x269   :  { %v1728_v25 = vadd.f32 %v1655_v7, %v1269_v15 }
 0x26b   :  { %v1796_v26 = vadd.f32 %v5538_v38, %v1728_v25  ;;  %v4792_v25 = vld [vmem:[%s6245_s3 + $0x90] sm:$0xff] }
 0x26c   :  { %2766 = vmatpush.bf16.msrb.mxu1 %v4792_v25 }
 0x26d   :  { %v1860_v36 = vmax.f32 %v1796_v26, 0.0 }
 0x26e   :  { %v1198_v32 = vpop.f32.mrf.mxu2  ;;  %v517_v54 = vpop.f32.mrf.mxu0 }
 0x26f   :  { %v1657_v31 = vpop.f32.mrf.mxu3  ;;  %1925 = vst.msk [vmem:[#allocation2 + $0x1d0] sm:$0xff] %vm1866_vm1, %v1860_v36  ;;  %v1270_v16 = vadd.f32 %v1198_v32, %v804_v35  ;;  %v806_v63 = vpop.f32.mrf.mxu1 }
 0x270   :  { %v807_v41 = vadd.f32 %v806_v63, %v517_v54 }
 0x271   :  { %v1729_v18 = vadd.f32 %v1657_v31, %v1270_v16  ;;  %4350 = vmatmul.msk.bf16.gmra.mxu0 %vm1866_vm1, %v2278_v43  ;;  %v5824_v31 = vld [vmem:[#allocation2 + $0xe0] sm:$0xff]  ;;  %v5826_v16 = vld [vmem:[#allocation2 + $0xe8] sm:$0xff] }
 0x272   :  { %4367 = vmatmul.msk.bf16.gmra.mxu1 %vm1866_vm1, %v2367_v39  ;;  %v5834_v52 = vpack.c.bf16 %v5824_v31, %v4848_v12 }
 0x273   :  { %v1797_v34 = vadd.f32 %v5538_v38, %v1729_v18  ;;  %4384 = vmatmul.msk.bf16.gmra.mxu2 %vm1866_vm1, %v2456_v58  ;;  %v4849_v18 = vld [vmem:[#allocation2 + $0xd8] sm:$0xff] }
 0x274   :  { %4401 = vmatmul.msk.bf16.gmra.mxu3 %vm1866_vm1, %v2545_v20  ;;  %v5837_v58 = vpack.c.bf16 %v5826_v16, %v4849_v18 }
 0x275   :  { %v1861_v55 = vmax.f32 %v1797_v34, 0.0  ;;  %v2457_v34 = vpack.c.bf16 %v5828_v50, %v5824_v31 }
 0x276   :  { %v1201_v6 = vpop.f32.mrf.mxu2  ;;  %v519_v29 = vpop.f32.mrf.mxu0 }
 0x277   :  { %v1660_v7 = vpop.f32.mrf.mxu3  ;;  %1926 = vst.msk [vmem:[#allocation2 + $0x1d8] sm:$0xff] %vm1866_vm1, %v1861_v55  ;;  %v1271_v15 = vadd.f32 %v1201_v6, %v807_v41  ;;  %v808_v40 = vpop.f32.mrf.mxu1  ;;  %v2546_v55 = vpack.c.bf16 %v5830_v46, %v5826_v16 }
 0x278   :  { %v809_v32 = vadd.f32 %v808_v40, %v519_v29 }
 0x279   :  { %v1730_v26 = vadd.f32 %v1660_v7, %v1271_v15 }
 0x27b   :  { %v1798_v36 = vadd.f32 %v5538_v38, %v1730_v26 }
 0x27d   :  { %v1862_v35 = vmax.f32 %v1798_v36, 0.0 }
 0x27e   :  { %v1203_v54 = vpop.f32.mrf.mxu2  ;;  %v522_v39 = vpop.f32.mrf.mxu0 }
 0x27f   :  { %v1662_v63 = vpop.f32.mrf.mxu3  ;;  %1927 = vst.msk [vmem:[#allocation2 + $0x1e0] sm:$0xff] %vm1866_vm1, %v1862_v35  ;;  %v1272_v43 = vadd.f32 %v1203_v54, %v809_v32  ;;  %v811_v62 = vpop.f32.mrf.mxu1 }
 0x280   :  { %v812_v7 = vadd.f32 %v811_v62, %v522_v39 }
 0x281   :  { %v1731_v20 = vadd.f32 %v1662_v63, %v1272_v43  ;;  %4351 = vmatmul.msk.bf16.gmra.mxu0 %vm1866_vm1, %v5834_v52  ;;  %v5852_v63 = vld [vmem:[#allocation2 + $0x150] sm:$0xff]  ;;  %v5854_v43 = vld [vmem:[#allocation2 + $0x158] sm:$0xff] }
 0x282   :  { %4368 = vmatmul.msk.bf16.gmra.mxu1 %vm1866_vm1, %v5837_v58 }
 0x283   :  { %v1799_v41 = vadd.f32 %v5538_v38, %v1731_v20  ;;  %4385 = vmatmul.msk.bf16.gmra.mxu2 %vm1866_vm1, %v2457_v34  ;;  %v5857_v34 = vld [vmem:[#allocation2 + $0x140] sm:$0xff] }
 0x284   :  { %4402 = vmatmul.msk.bf16.gmra.mxu3 %vm1866_vm1, %v2546_v55  ;;  %v5859_v55 = vld [vmem:[#allocation2 + $0x148] sm:$0xff] }
 0x285   :  { %v1863_v6 = vmax.f32 %v1799_v41, 0.0 }
 0x286   :  { %v1206_v15 = vpop.f32.mrf.mxu2  ;;  %v524_v25 = vpop.f32.mrf.mxu0 }
 0x287   :  { %v1665_v29 = vpop.f32.mrf.mxu3  ;;  %1928 = vst.msk [vmem:[#allocation2 + $0x1e8] sm:$0xff] %vm1866_vm1, %v1863_v6  ;;  %v1273_v40 = vadd.f32 %v1206_v15, %v812_v7  ;;  %v813_v26 = vpop.f32.mrf.mxu1  ;;  %v2280_v6 = vpack.c.bf16 %v5852_v63, %v5857_v34  ;;  %v2369_v7 = vpack.c.bf16 %v5854_v43, %v5859_v55 }
 0x288   :  { %v814_v54 = vadd.f32 %v813_v26, %v524_v25  ;;  %v4803_v26 = vld [vmem:[%s6245_s3 + $0xe8] sm:$0xff] }
 0x289   :  { %v1732_v36 = vadd.f32 %v1665_v29, %v1273_v40  ;;  %v5867_v29 = vpack.c.bf16 %v5666_v17, %v5852_v63  ;;  %v5871_v40 = vpack.c.bf16 %v5674_v27, %v5854_v43  ;;  %3210 = vmatpush.bf16.msra.mxu2 %v4803_v26 }
 0x28b   :  { %v1800_v35 = vadd.f32 %v5538_v38, %v1732_v36  ;;  %v4799_v36 = vld [vmem:[%s6245_s3 + $0xc8] sm:$0xff] }
 0x28c   :  { %3032 = vmatpush.bf16.msra.mxu0 %v4799_v36 }
 0x28d   :  { %v1864_v32 = vmax.f32 %v1800_v35, 0.0  ;;  %v4805_v35 = vld [vmem:[%s6245_s3 + $0xf8] sm:$0xff]  ;;  %3211 = vmatpush.bf16.msra.mxu2 %v4802_v4 }
 0x28e   :  { %v1208_v12 = vpop.f32.mrf.mxu2  ;;  %v2005_v62 = vpop.f32.mrf.mxu0  ;;  %3299 = vmatpush.bf16.msra.mxu3 %v4805_v35  ;;  %v2281_v35 = vpack.c.bf16 %v5666_v17, %v5666_v17 }
 0x28f   :  { %v1667_v18 = vpop.f32.mrf.mxu3  ;;  %1929 = vst.msk [vmem:[#allocation2 + $0x1f0] sm:$0xff] %vm1866_vm1, %v1864_v32  ;;  %v1274_v39 = vadd.f32 %v1208_v12, %v814_v54  ;;  %v2065_v20 = vpop.f32.mrf.mxu1 }
 0x290   :  { %v2066_v41 = vadd.f32 %v2065_v20, %v2005_v62 }
 0x291   :  { %v1733_v15 = vadd.f32 %v1667_v18, %v1274_v39  ;;  %4352 = vmatmul.msk.bf16.gmra.mxu0 %vm1866_vm1, %v2280_v6  ;;  %v4801_v6 = vld [vmem:[%s6245_s3 + $0xd8] sm:$0xff] }
 0x292   :  { %4369 = vmatmul.msk.bf16.gmra.mxu1 %vm1866_vm1, %v2369_v7  ;;  %3300 = vmatpush.bf16.msra.mxu3 %v4804_v22 }
 0x293   :  { %v1801_v25 = vadd.f32 %v5538_v38, %v1733_v15  ;;  %4386 = vmatmul.msk.bf16.gmra.mxu2 %vm1866_vm1, %v5867_v29  ;;  %3121 = vmatpush.bf16.msra.mxu1 %v4801_v6 }
 0x294   :  { %4403 = vmatmul.msk.bf16.gmra.mxu3 %vm1866_vm1, %v5871_v40 }
 0x295   :  { %v1865_v32 = vmax.f32 %v1801_v25, 0.0 }
 0x296   :  { %v2145_v38 = vpop.f32.mrf.mxu2  ;;  %v2007_v18 = vpop.f32.mrf.mxu0 }
 0x297   :  { %v2234_v54 = vpop.f32.mrf.mxu3  ;;  %1930 = vst.msk [vmem:[#allocation2 + $0x1f8] sm:$0xff] %vm1866_vm1, %v1865_v32  ;;  %v2169_v12 = vadd.f32 %v2145_v38, %v2066_v41  ;;  %v2067_v39 = vpop.f32.mrf.mxu1  ;;  %v2370_v41 = vpack.c.bf16 %v5674_v27, %v5674_v27  ;;  %v2459_v38 = vpack.c.bf16 %v5668_v1, %v5668_v1 }
 0x298   :  { %v2068_v62 = vadd.f32 %v2067_v39, %v2007_v18 }
 0x299   :  { %v5890_v20 = vadd.f32 %v2234_v54, %v2169_v12  ;;  %v2548_v54 = vpack.c.bf16 %v5676_v14, %v5676_v14 }
 0x29e   :  { %v2147_v7 = vpop.f32.mrf.mxu2  ;;  %v2010_v26 = vpop.f32.mrf.mxu0 }
 0x29f   :  { %v2236_v15 = vpop.f32.mrf.mxu3  ;;  %v2170_v25 = vadd.f32 %v2147_v7, %v2068_v62  ;;  %v2070_v36 = vpop.f32.mrf.mxu1 }
 0x2a0   :  { %v2071_v30 = vadd.f32 %v2070_v36, %v2010_v26 }
 0x2a1   :  { %v5899_v32 = vadd.f32 %v2236_v15, %v2170_v25  ;;  %4353 = vmatmul.msk.bf16.gmra.mxu0 %vm1866_vm1, %v2281_v35 }
 0x2a2   :  { %4370 = vmatmul.msk.bf16.gmra.mxu1 %vm1866_vm1, %v2370_v41 }
 0x2a3   :  { %4387 = vmatmul.msk.bf16.gmra.mxu2 %vm1866_vm1, %v2459_v38 }
 0x2a4   :  { %4404 = vmatmul.msk.bf16.gmra.mxu3 %vm1866_vm1, %v2548_v54 }
 0x2a6   :  { %v2150_v12 = vpop.f32.mrf.mxu2  ;;  %v2012_v62 = vpop.f32.mrf.mxu0 }
 0x2a7   :  { %v2239_v18 = vpop.f32.mrf.mxu3  ;;  %v2171_v39 = vadd.f32 %v2150_v12, %v2071_v30  ;;  %v2072_v6 = vpop.f32.mrf.mxu1 }
 0x2a8   :  { %v2073_v7 = vadd.f32 %v2072_v6, %v2012_v62  ;;  %v2634_v62 = vpack.c.bf16 %v5741_v59, %v5706_v56  ;;  %v2723_v6 = vpack.c.bf16 %v5739_v60, %v5704_v49 }
 0x2a9   :  { %v5909_v15 = vadd.f32 %v2239_v18, %v2171_v39 }
 0x2ae   :  { %v2152_v25 = vpop.f32.mrf.mxu2  ;;  %v2015_v21 = vpop.f32.mrf.mxu0 }
 0x2af   :  { %v2241_v26 = vpop.f32.mrf.mxu3  ;;  %v2172_v36 = vadd.f32 %v2152_v25, %v2073_v7  ;;  %v2075_v33 = vpop.f32.mrf.mxu1  ;;  %v2812_v25 = vpack.c.bf16 %v5736_v44, %v5708_v10 }
 0x2b0   :  { %v2076_v35 = vadd.f32 %v2075_v33, %v2015_v21 }
 0x2b1   :  { %v5911_v53 = vadd.f32 %v2241_v26, %v2172_v36  ;;  %4417 = vmatmul.msk.bf16.vlgmr.msrb.gmra.mxu0 %vm1866_vm1, %v2633_v8  ;;  %v4798_v8 = vld [vmem:[%s6245_s3 + $0xc0] sm:$0xff]  ;;  %v2901_v26 = vpack.c.bf16 %v5734_v45, %v5710_v19 }
 0x2b2   :  { %4434 = vmatmul.msk.bf16.vlgmr.msrb.gmra.mxu1 %vm1866_vm1, %v2722_v5  ;;  %3033 = vmatpush.bf16.msra.mxu0 %v4798_v8 }
 0x2b3   :  { %4451 = vmatmul.msk.bf16.vlgmr.msrb.gmra.mxu2 %vm1866_vm1, %v5719_v28 }
 0x2b4   :  { %4468 = vmatmul.msk.bf16.vlgmr.msrb.gmra.mxu3 %vm1866_vm1, %v5715_v9  ;;  %v4800_v9 = vld [vmem:[%s6245_s3 + $0xd0] sm:$0xff] }
 0x2b5   :  { %3122 = vmatpush.bf16.msra.mxu1 %v4800_v9 }
 0x2b6   :  { %v2155_v30 = vpop.f32.mrf.mxu2  ;;  %v2017_v41 = vpop.f32.mrf.mxu0 }
 0x2b7   :  { %v2244_v33 = vpop.f32.mrf.mxu3  ;;  %v2173_v21 = vadd.f32 %v2155_v30, %v2076_v35  ;;  %v2077_v38 = vpop.f32.mrf.mxu1 }
 0x2b8   :  { %v2078_v54 = vadd.f32 %v2077_v38, %v2017_v41 }
 0x2b9   :  { %v5925_v3 = vadd.f32 %v2244_v33, %v2173_v21 }
 0x2be   :  { %v2157_v23 = vpop.f32.mrf.mxu2  ;;  %v2020_v12 = vpop.f32.mrf.mxu0 }
 0x2bf   :  { %v2246_v5 = vpop.f32.mrf.mxu3  ;;  %v2174_v28 = vadd.f32 %v2157_v23, %v2078_v54  ;;  %v2080_v18 = vpop.f32.mrf.mxu1 }
 0x2c0   :  { %v2081_v39 = vadd.f32 %v2080_v18, %v2020_v12  ;;  %v2630_v12 = vld [vmem:[#allocation2 + $0x180] sm:$0xff]  ;;  %v2719_v18 = vld [vmem:[#allocation2 + $0x188] sm:$0xff] }
 0x2c1   :  { %v5943_v7 = vadd.f32 %v2246_v5, %v2174_v28  ;;  %4418 = vmatmul.msk.bf16.gmra.mxu0 %vm1866_vm1, %v2634_v62  ;;  %v2720_v5 = vld [vmem:[#allocation2 + $0x198] sm:$0xff]  ;;  %v2809_v28 = vld [vmem:[#allocation2 + $0x1a0] sm:$0xff] }
 0x2c2   :  { %4435 = vmatmul.msk.bf16.gmra.mxu1 %vm1866_vm1, %v2723_v6  ;;  %v2903_v62 = vpack.c.bf16 %v2898_v42, %v2720_v5 }
 0x2c3   :  { %4452 = vmatmul.msk.bf16.gmra.mxu2 %vm1866_vm1, %v2812_v25 }
 0x2c4   :  { %4469 = vmatmul.msk.bf16.gmra.mxu3 %vm1866_vm1, %v2901_v26 }
 0x2c6   :  { %v2160_v56 = vpop.f32.mrf.mxu2  ;;  %v2022_v60 = vpop.f32.mrf.mxu0 }
 0x2c7   :  { %v2249_v59 = vpop.f32.mrf.mxu3  ;;  %v2175_v49 = vadd.f32 %v2160_v56, %v2081_v39  ;;  %v2082_v36 = vpop.f32.mrf.mxu1 }
 0x2c8   :  { %v2083_v35 = vadd.f32 %v2082_v36, %v2022_v60 }
 0x2c9   :  { %v5953_v30 = vadd.f32 %v2249_v59, %v2175_v49 }
 0x2ce   :  { %v2162_v10 = vpop.f32.mrf.mxu2  ;;  %v2025_v19 = vpop.f32.mrf.mxu0 }
 0x2cf   :  { %v2251_v44 = vpop.f32.mrf.mxu3  ;;  %v2176_v33 = vadd.f32 %v2162_v10, %v2083_v35  ;;  %v2085_v45 = vpop.f32.mrf.mxu1 }
 0x2d0   :  { %v2086_v21 = vadd.f32 %v2085_v45, %v2025_v19 }
 0x2d1   :  { %v5955_v41 = vadd.f32 %v2251_v44, %v2176_v33  ;;  %4419 = vmatmul.msk.bf16.gmra.mxu0 %vm1866_vm1, %v5749_v37  ;;  %v2631_v37 = vld [vmem:[#allocation2 + $0x190] sm:$0xff]  ;;  %v2899_v33 = vld [vmem:[#allocation2 + $0x1b8] sm:$0xff] }
 0x2d2   :  { %4436 = vmatmul.msk.bf16.gmra.mxu1 %vm1866_vm1, %v5753_v57  ;;  %v2636_v11 = vpack.c.bf16 %v2631_v37, %v2630_v12  ;;  %v2814_v39 = vpack.c.bf16 %v2809_v28, %v2631_v37  ;;  %v2810_v44 = vld [vmem:[#allocation2 + $0x1b0] sm:$0xff]  ;;  %v2904_v37 = vpack.c.bf16 %v2899_v33, %v2899_v33 }
 0x2d3   :  { %4453 = vmatmul.msk.bf16.gmra.mxu2 %vm1866_vm1, %v2813_v13 }
 0x2d4   :  { %4470 = vmatmul.msk.bf16.gmra.mxu3 %vm1866_vm1, %v2902_v24  ;;  %v2725_v24 = vpack.c.bf16 %v2720_v5, %v2719_v18 }
 0x2d6   :  { %v2165_v38 = vpop.f32.mrf.mxu2  ;;  %v2027_v8 = vpop.f32.mrf.mxu0 }
 0x2d7   :  { %v2254_v54 = vpop.f32.mrf.mxu3  ;;  %v2177_v4 = vadd.f32 %v2165_v38, %v2086_v21  ;;  %v2087_v22 = vpop.f32.mrf.mxu1 }
 0x2d8   :  { %v2815_v22 = vpack.c.bf16 %v2810_v44, %v2810_v44  ;;  %v3079_v44 = vpack.c.bf16 %v5859_v55, %v5826_v16 }
 0x2d9   :  { %v5969_v23 = vadd.f32 %v2254_v54, %v2177_v4  ;;  %v2637_v54 = vpack.c.bf16 %v2809_v28, %v2809_v28  ;;  %v2726_v4 = vpack.c.bf16 %v2898_v42, %v2898_v42 }
 0x2de   :  { %v2167_v57 = vpop.f32.mrf.mxu2  ;;  %v2323_v47 = vpop.f32.mrf.mxu0 }
 0x2df   :  { %v2256_v9 = vpop.f32.mrf.mxu3  ;;  %v2412_v13 = vpop.f32.mrf.mxu1  ;;  %v2347_v61 = vadd.f32 %v2323_v47, %v5890_v20 }
 0x2e1   :  { %v2436_v6 = vadd.f32 %v2412_v13, %v2347_v61  ;;  %4420 = vmatmul.msk.bf16.gmra.mxu0 %vm1866_vm1, %v2636_v11 }
 0x2e2   :  { %4437 = vmatmul.msk.bf16.gmra.mxu1 %vm1866_vm1, %v2725_v24 }
 0x2e3   :  { %4454 = vmatmul.msk.bf16.gmra.mxu2 %vm1866_vm1, %v2814_v39 }
 0x2e4   :  { %4471 = vmatmul.msk.bf16.gmra.mxu3 %vm1866_vm1, %v2903_v62 }
 0x2e6   :  { %v2501_v25 = vpop.f32.mrf.mxu2  ;;  %v2325_v59 = vpop.f32.mrf.mxu0 }
 0x2e7   :  { %v2590_v26 = vpop.f32.mrf.mxu3  ;;  %v2525_v56 = vadd.f32 %v2501_v25, %v2436_v6  ;;  %v2414_v49 = vpop.f32.mrf.mxu1  ;;  %v2348_v20 = vadd.f32 %v2325_v59, %v5899_v32  ;;  %v6251_v25 = vpack.c.bf16 %v5439_v51, %v5437_v48 }
 0x2e9   :  { %v5977_v60 = vadd.f32 %v2590_v26, %v2525_v56  ;;  %v2437_v36 = vadd.f32 %v2414_v49, %v2348_v20 }
 0x2ee   :  { %v2503_v35 = vpop.f32.mrf.mxu2  ;;  %v2328_v45 = vpop.f32.mrf.mxu0 }
 0x2ef   :  { %v2592_v10 = vpop.f32.mrf.mxu3  ;;  %v2526_v19 = vadd.f32 %v2503_v35, %v2437_v36  ;;  %v2417_v21 = vpop.f32.mrf.mxu1  ;;  %v2349_v38 = vadd.f32 %v2328_v45, %v5909_v15 }
 0x2f1   :  { %v5980_v8 = vadd.f32 %v2592_v10, %v2526_v19  ;;  %v2438_v5 = vadd.f32 %v2417_v21, %v2349_v38  ;;  %4421 = vmatmul.msk.bf16.gmra.mxu0 %vm1866_vm1, %v2637_v54  ;;  %v3257_v19 = vpack.c.bf16 %v5854_v43, %v5830_v46 }
 0x2f2   :  { %4438 = vmatmul.msk.bf16.gmra.mxu1 %vm1866_vm1, %v2726_v4  ;;  %v6253_v4 = vpack.c.bf16 %v5668_v1, %v5666_v17  ;;  %v3254_v17 = vld [vmem:[#allocation2 + $0x1e8] sm:$0xff] }
 0x2f3   :  { %4455 = vmatmul.msk.bf16.gmra.mxu2 %vm1866_vm1, %v2815_v22  ;;  %v6254_v22 = vpack.c.bf16 %v5676_v14, %v5674_v27 }
 0x2f4   :  { %4472 = vmatmul.msk.bf16.gmra.mxu3 %vm1866_vm1, %v2904_v37 }
 0x2f6   :  { %v2506_v32 = vpop.f32.mrf.mxu2  ;;  %v2330_v47 = vpop.f32.mrf.mxu0 }
 0x2f7   :  { %v2595_v57 = vpop.f32.mrf.mxu3  ;;  %v2527_v9 = vadd.f32 %v2506_v32, %v2438_v5  ;;  %v2419_v15 = vpop.f32.mrf.mxu1  ;;  %v2350_v28 = vadd.f32 %v2330_v47, %v5911_v53  ;;  %v6252_v53 = vpack.c.bf16 %v5453_v2, %v5451_v0  ;;  %v3076_v47 = vld [vmem:[#allocation2 + $0x1d8] sm:$0xff] }
 0x2f9   :  { %v5987_v42 = vadd.f32 %v2595_v57, %v2527_v9  ;;  %v2439_v13 = vadd.f32 %v2419_v15, %v2350_v28  ;;  %v3165_v28 = vld [vmem:[#allocation2 + $0x1e0] sm:$0xff] }
 0x2fe   :  { %v2508_v12 = vpop.f32.mrf.mxu2  ;;  %v2333_v11 = vpop.f32.mrf.mxu0 }
 0x2ff   :  { %v2597_v18 = vpop.f32.mrf.mxu3  ;;  %v2528_v61 = vadd.f32 %v2508_v12, %v2439_v13  ;;  %v2422_v24 = vpop.f32.mrf.mxu1  ;;  %v2351_v39 = vadd.f32 %v2333_v11, %v5925_v3  ;;  %v2986_v12 = vld [vmem:[#allocation2 + $0x1c0] sm:$0xff] }
 0x301   :  { %v5990_v62 = vadd.f32 %v2597_v18, %v2528_v61  ;;  %v2440_v6 = vadd.f32 %v2422_v24, %v2351_v39  ;;  %4485 = vmatmul.msk.bf16.vlgmr.msra.gmra.mxu0 %vm1866_vm1, %v6251_v25  ;;  %v3075_v18 = vld [vmem:[#allocation2 + $0x1c8] sm:$0xff]  ;;  %v3259_v24 = vpack.c.bf16 %v3254_v17, %v3076_v47 }
 0x302   :  { %4502 = vmatmul.msk.bf16.vlgmr.msra.gmra.mxu1 %vm1866_vm1, %v6252_v53  ;;  %v3081_v61 = vpack.c.bf16 %v3076_v47, %v3075_v18  ;;  %v4821_v47 = vld [vmem:[%s6248_s5 + $0x78] sm:$0xff]  ;;  %v4812_v18 = vld [vmem:[%s6248_s5 + $0x30] sm:$0xff] }
 0x303   :  { %4519 = vmatmul.msk.bf16.vlgmr.msra.gmra.mxu2 %vm1866_vm1, %v5834_v52  ;;  %3564 = vmatpush.bf16.msrb.mxu3 %v4821_v47 }
 0x304   :  { %4536 = vmatmul.msk.bf16.vlgmr.msra.gmra.mxu3 %vm1866_vm1, %v5837_v58  ;;  %v2990_v58 = vpack.c.bf16 %v5857_v34, %v5824_v31 }
 0x306   :  { %v2511_v3 = vpop.f32.mrf.mxu2  ;;  %v2335_v59 = vpop.f32.mrf.mxu0 }
 0x307   :  { %v2600_v26 = vpop.f32.mrf.mxu3  ;;  %v2529_v56 = vadd.f32 %v2511_v3, %v2440_v6  ;;  %v2424_v49 = vpop.f32.mrf.mxu1  ;;  %v2352_v48 = vadd.f32 %v2335_v59, %v5943_v7  ;;  %v3168_v7 = vpack.c.bf16 %v5852_v63, %v5828_v50 }
 0x309   :  { %v6005_v51 = vadd.f32 %v2600_v26, %v2529_v56  ;;  %v2441_v20 = vadd.f32 %v2424_v49, %v2352_v48 }
 0x30e   :  { %v2513_v36 = vpop.f32.mrf.mxu2  ;;  %v2338_v35 = vpop.f32.mrf.mxu0 }
 0x30f   :  { %v2602_v0 = vpop.f32.mrf.mxu3  ;;  %v2530_v2 = vadd.f32 %v2513_v36, %v2441_v20  ;;  %v2427_v10 = vpop.f32.mrf.mxu1  ;;  %v2353_v52 = vadd.f32 %v2338_v35, %v5953_v30  ;;  %v3166_v20 = vld [vmem:[#allocation2 + $0x1f0] sm:$0xff]  ;;  %v3255_v36 = vld [vmem:[#allocation2 + $0x1f8] sm:$0xff] }
 0x311   :  { %v6012_v33 = vadd.f32 %v2602_v0, %v2530_v2  ;;  %v2442_v45 = vadd.f32 %v2427_v10, %v2353_v52  ;;  %4486 = vmatmul.msk.bf16.gmra.mxu0 %vm1866_vm1, %v2990_v58  ;;  %v2993_v52 = vpack.c.bf16 %v3165_v28, %v3165_v28  ;;  %v3082_v58 = vpack.c.bf16 %v3254_v17, %v3254_v17 }
 0x312   :  { %4503 = vmatmul.msk.bf16.gmra.mxu1 %vm1866_vm1, %v3079_v44 }
 0x313   :  { %4520 = vmatmul.msk.bf16.gmra.mxu2 %vm1866_vm1, %v3168_v7  ;;  %v3171_v7 = vpack.c.bf16 %v3166_v20, %v3166_v20 }
 0x314   :  { %4537 = vmatmul.msk.bf16.gmra.mxu3 %vm1866_vm1, %v3257_v19  ;;  %v3260_v19 = vpack.c.bf16 %v3255_v36, %v3255_v36 }
 0x316   :  { %v2516_v31 = vpop.f32.mrf.mxu2  ;;  %v6022_v55 = vpop.f32.mrf.mxu0 }
 0x317   :  { %v2605_v34 = vpop.f32.mrf.mxu3  ;;  %v2531_v16 = vadd.f32 %v2516_v31, %v2442_v45  ;;  %v6024_v30 = vpop.f32.mrf.mxu1 }
 0x319   :  { %v6026_v50 = vadd.f32 %v2605_v34, %v2531_v16 }
 0x31e   :  { %v6028_v63 = vpop.f32.mrf.mxu2  ;;  %v2343_v43 = vpop.f32.mrf.mxu0 }
 0x31f   :  { %v6030_v46 = vpop.f32.mrf.mxu3  ;;  %v2432_v21 = vpop.f32.mrf.mxu1  ;;  %v2355_v38 = vadd.f32 %v2343_v43, %v5969_v23 }
 0x321   :  { %v2444_v54 = vadd.f32 %v2432_v21, %v2355_v38  ;;  %4487 = vmatmul.msk.bf16.gmra.mxu0 %vm1866_vm1, %v5867_v29  ;;  %v2987_v29 = vld [vmem:[#allocation2 + $0x1d0] sm:$0xff] }
 0x322   :  { %4504 = vmatmul.msk.bf16.gmra.mxu1 %vm1866_vm1, %v5871_v40  ;;  %v2992_v14 = vpack.c.bf16 %v2987_v29, %v2986_v12  ;;  %v3170_v11 = vpack.c.bf16 %v3165_v28, %v2987_v29 }
 0x323   :  { %4521 = vmatmul.msk.bf16.gmra.mxu2 %vm1866_vm1, %v6253_v4 }
 0x324   :  { %4538 = vmatmul.msk.bf16.gmra.mxu3 %vm1866_vm1, %v6254_v22 }
 0x326   :  { %v2521_v37 = vpop.f32.mrf.mxu2  ;;  %v2345_v32 = vpop.f32.mrf.mxu0 }
 0x327   :  { %v2610_v5 = vpop.f32.mrf.mxu3  ;;  %v2533_v23 = vadd.f32 %v2521_v37, %v2444_v54  ;;  %v2434_v57 = vpop.f32.mrf.mxu1  ;;  %v4813_v54 = vld [vmem:[%s6248_s5 + $0x38] sm:$0xff] }
 0x328   :  { %3419 = vmatpush.bf16.msrb.mxu0 %v4813_v54  ;;  %v4810_v54 = vld [vmem:[%s6248_s5 + $0x20] sm:$0xff] }
 0x329   :  { %v6045_v9 = vadd.f32 %v2610_v5, %v2533_v23 }
 0x32c   :  { %3420 = vmatpush.bf16.msrb.mxu0 %v4812_v18 }
 0x32e   :  { %v2523_v40 = vpop.f32.mrf.mxu2  ;;  %v2679_v1 = vpop.f32.mrf.mxu0 }
 0x32f   :  { %v2612_v15 = vpop.f32.mrf.mxu3  ;;  %v2768_v13 = vpop.f32.mrf.mxu1  ;;  %v2703_v27 = vadd.f32 %v2679_v1, %v5977_v60  ;;  %v4809_v40 = vld [vmem:[%s6248_s5 + $0x18] sm:$0xff] }
 0x330   :  { %3459 = vmatpush.bf16.msrb.mxu1 %v4809_v40 }
 0x331   :  { %v2792_v39 = vadd.f32 %v2768_v13, %v2703_v27  ;;  %4488 = vmatmul.msk.bf16.gmra.mxu0 %vm1866_vm1, %v2992_v14  ;;  %v2354_v14 = vadd.f32 %v6022_v55, %v5955_v41  ;;  %v4820_v41 = vld [vmem:[%s6248_s5 + $0x70] sm:$0xff] }
 0x332   :  { %4505 = vmatmul.msk.bf16.gmra.mxu1 %vm1866_vm1, %v3081_v61  ;;  %3565 = vmatpush.bf16.msrb.mxu3 %v4820_v41 }
 0x333   :  { %4522 = vmatmul.msk.bf16.gmra.mxu2 %vm1866_vm1, %v3170_v11 }
 0x334   :  { %4539 = vmatmul.msk.bf16.gmra.mxu3 %vm1866_vm1, %v3259_v24 }
 0x336   :  { %v2857_v6 = vpop.f32.mrf.mxu2  ;;  %v2681_v3 = vpop.f32.mrf.mxu0 }
 0x337   :  { %v2946_v25 = vpop.f32.mrf.mxu3  ;;  %v2881_v53 = vadd.f32 %v2857_v6, %v2792_v39  ;;  %v2770_v26 = vpop.f32.mrf.mxu1  ;;  %v2704_v60 = vadd.f32 %v2681_v3, %v5980_v8 }
 0x339   :  { %v6053_v56 = vadd.f32 %v2946_v25, %v2881_v53  ;;  %v2793_v59 = vadd.f32 %v2770_v26, %v2704_v60  ;;  %v2443_v25 = vadd.f32 %v6024_v30, %v2354_v14  ;;  %v4816_v60 = vld [vmem:[%s6248_s5 + $0x50] sm:$0xff]  ;;  %v4818_v14 = vld [vmem:[%s6248_s5 + $0x60] sm:$0xff] }
 0x33b   :  { %v2532_v3 = vadd.f32 %v6028_v63, %v2443_v25 }
 0x33d   :  { %v2621_v55 = vadd.f32 %v6030_v46, %v2532_v3  ;;  %v4823_v3 = vld [vmem:[%s6248_s5 + $0x88] sm:$0xff] }
 0x33e   :  { %v2859_v49 = vpop.f32.mrf.mxu2  ;;  %v2684_v2 = vpop.f32.mrf.mxu0 }
 0x33f   :  { %v2948_v48 = vpop.f32.mrf.mxu3  ;;  %v2882_v0 = vadd.f32 %v2859_v49, %v2793_v59  ;;  %v2773_v35 = vpop.f32.mrf.mxu1  ;;  %v2705_v10 = vadd.f32 %v2684_v2, %v5987_v42 }
 0x341   :  { %v6056_v44 = vadd.f32 %v2948_v48, %v2882_v0  ;;  %v2794_v45 = vadd.f32 %v2773_v35, %v2705_v10  ;;  %4489 = vmatmul.msk.bf16.gmra.mxu0 %vm1866_vm1, %v2993_v52  ;;  %v4808_v0 = vld [vmem:[%s6248_s5 + $0x10] sm:$0xff] }
 0x342   :  { %4506 = vmatmul.msk.bf16.gmra.mxu1 %vm1866_vm1, %v3082_v58 }
 0x343   :  { %4523 = vmatmul.msk.bf16.gmra.mxu2 %vm1866_vm1, %v3171_v7  ;;  %3460 = vmatpush.bf16.msrb.mxu1 %v4808_v0  ;;  %v4807_v7 = vld [vmem:[%s6248_s5 + $0x8] sm:$0xff] }
 0x344   :  { %4540 = vmatmul.msk.bf16.gmra.mxu3 %vm1866_vm1, %v3260_v19 }
 0x346   :  { %v2862_v8 = vpop.f32.mrf.mxu2  ;;  %v2686_v16 = vpop.f32.mrf.mxu0 }
 0x347   :  { %v2951_v31 = vpop.f32.mrf.mxu3  ;;  %v2883_v34 = vadd.f32 %v2862_v8, %v2794_v45  ;;  %v2775_v42 = vpop.f32.mrf.mxu1  ;;  %v2706_v43 = vadd.f32 %v2686_v16, %v5990_v62  ;;  %v4817_v62 = vld [vmem:[%s6248_s5 + $0x58] sm:$0xff]  ;;  %3461 = vmatpush.bf16.msrb.mxu1 %v4807_v7  ;;  %v4806_v8 = vld [vmem:[%s6248_s5] sm:$0xff] }
 0x348   :  { %3511 = vmatpush.bf16.msrb.mxu2 %v4817_v62 }
 0x349   :  { %v6063_v21 = vadd.f32 %v2951_v31, %v2883_v34  ;;  %v2795_v38 = vadd.f32 %v2775_v42, %v2706_v43 }
 0x34b   :  { %3462 = vmatpush.bf16.msrb.mxu1 %v4806_v8  ;;  %v4832_v8 = vld [vmem:[%s6248_s5 + $0xd0] sm:$0xff] }
 0x34c   :  { %3512 = vmatpush.bf16.msrb.mxu2 %v4816_v60 }
 0x34e   :  { %v2864_v4 = vpop.f32.mrf.mxu2  ;;  %v2689_v5 = vpop.f32.mrf.mxu0 }
 0x34f   :  { %v2953_v22 = vpop.f32.mrf.mxu3  ;;  %v2884_v37 = vadd.f32 %v2864_v4, %v2795_v38  ;;  %v2778_v23 = vpop.f32.mrf.mxu1  ;;  %v2707_v32 = vadd.f32 %v2689_v5, %v6005_v51 }
 0x351   :  { %v6069_v57 = vadd.f32 %v2953_v22, %v2884_v37  ;;  %v2796_v29 = vadd.f32 %v2778_v23, %v2707_v32  ;;  %v4815_v23 = vld [vmem:[%s6248_s5 + $0x48] sm:$0xff] }
 0x352   :  { %v4819_v32 = vld [vmem:[%s6248_s5 + $0x68] sm:$0xff]  ;;  %3513 = vmatpush.bf16.msrb.mxu2 %v4815_v23 }
 0x353   :  { %3566 = vmatpush.bf16.msrb.mxu3 %v4819_v32 }
 0x356   :  { %v2867_v15 = vpop.f32.mrf.mxu2  ;;  %v2691_v17 = vpop.f32.mrf.mxu0 }
 0x357   :  { %v2956_v51 = vpop.f32.mrf.mxu3  ;;  %v2885_v28 = vadd.f32 %v2867_v15, %v2796_v29  ;;  %v2780_v1 = vpop.f32.mrf.mxu1  ;;  %v2708_v13 = vadd.f32 %v2691_v17, %v6012_v33  ;;  %v4814_v29 = vld [vmem:[%s6248_s5 + $0x40] sm:$0xff]  ;;  %3567 = vmatpush.bf16.msrb.mxu3 %v4818_v14 }
 0x358   :  { %3514 = vmatpush.bf16.msrb.mxu2 %v4814_v29  ;;  %v4830_v29 = vld [vmem:[%s6248_s5 + $0xc0] sm:$0xff] }
 0x359   :  { %v6081_v12 = vadd.f32 %v2956_v51, %v2885_v28  ;;  %v2797_v27 = vadd.f32 %v2780_v1, %v2708_v13  ;;  %v6135_v28 = vld [vmem:[%s6247_s4] ss:$0 sm:$0xff] }
 0x35e   :  { %v2869_v61 = vpop.f32.mrf.mxu2  ;;  %v2694_v39 = vpop.f32.mrf.mxu0 }
 0x35f   :  { %v2958_v11 = vpop.f32.mrf.mxu3  ;;  %v2886_v24 = vadd.f32 %v2869_v61, %v2797_v27  ;;  %v2783_v6 = vpop.f32.mrf.mxu1  ;;  %v2709_v33 = vadd.f32 %v2694_v39, %v6026_v50  ;;  %v4824_v61 = vld [vmem:[%s6248_s5 + $0x90] sm:$0xff] }
 0x361   :  { %v6090_v53 = vadd.f32 %v2958_v11, %v2886_v24  ;;  %v2798_v26 = vadd.f32 %v2783_v6, %v2709_v33 }
 0x366   :  { %v2872_v30 = vpop.f32.mrf.mxu2  ;;  %v2696_v49 = vpop.f32.mrf.mxu0 }
 0x367   :  { %v2961_v59 = vpop.f32.mrf.mxu3  ;;  %v2887_v50 = vadd.f32 %v2872_v30, %v2798_v26  ;;  %v2785_v48 = vpop.f32.mrf.mxu1  ;;  %v2710_v20 = vadd.f32 %v2696_v49, %v2621_v55  ;;  %v4829_v26 = vld [vmem:[%s6248_s5 + $0xb8] sm:$0xff]  ;;  %v4822_v30 = vld [vmem:[%s6248_s5 + $0x80] sm:$0xff] }
 0x368   :  { %3670 = vmatpush.bf16.msra.mxu1 %v4829_v26 }
 0x369   :  { %v6100_v63 = vadd.f32 %v2961_v59, %v2887_v50  ;;  %v2799_v36 = vadd.f32 %v2785_v48, %v2710_v20  ;;  %v4828_v59 = vld [vmem:[%s6248_s5 + $0xb0] sm:$0xff] }
 0x36c   :  { %3671 = vmatpush.bf16.msra.mxu1 %v4828_v59 }
 0x36e   :  { %v2874_v2 = vpop.f32.mrf.mxu2  ;;  %v2699_v52 = vpop.f32.mrf.mxu0 }
 0x36f   :  { %v2963_v35 = vpop.f32.mrf.mxu3  ;;  %v2888_v10 = vadd.f32 %v2874_v2, %v2799_v36  ;;  %v2788_v58 = vpop.f32.mrf.mxu1  ;;  %v2711_v46 = vadd.f32 %v2699_v52, %v6045_v9  ;;  %v4811_v9 = vld [vmem:[%s6248_s5 + $0x28] sm:$0xff]  ;;  %v4833_v52 = vld [vmem:[%s6248_s5 + $0xd8] sm:$0xff] }
 0x370   :  { %3421 = vmatpush.bf16.msrb.mxu0 %v4811_v9  ;;  %3723 = vmatpush.bf16.msra.mxu2 %v4833_v52 }
 0x371   :  { %v6109_v19 = vadd.f32 %v2963_v35, %v2888_v10  ;;  %v2800_v45 = vadd.f32 %v2788_v58, %v2711_v46  ;;  %v4827_v10 = vld [vmem:[%s6248_s5 + $0xa8] sm:$0xff] }
 0x372   :  { %3672 = vmatpush.bf16.msra.mxu1 %v4827_v10 }
 0x374   :  { %3422 = vmatpush.bf16.msrb.mxu0 %v4810_v54  ;;  %3724 = vmatpush.bf16.msra.mxu2 %v4832_v8 }
 0x376   :  { %v2877_v31 = vpop.f32.mrf.mxu2  ;;  %v2701_v42 = vpop.f32.mrf.mxu0 }
 0x377   :  { %v2966_v34 = vpop.f32.mrf.mxu3  ;;  %v2889_v16 = vadd.f32 %v2877_v31, %v2800_v45  ;;  %v2790_v43 = vpop.f32.mrf.mxu1  ;;  %v4826_v45 = vld [vmem:[%s6248_s5 + $0xa0] sm:$0xff] }
 0x378   :  { %3673 = vmatpush.bf16.msra.mxu1 %v4826_v45 }
 0x379   :  { %v6117_v38 = vadd.f32 %v2966_v34, %v2889_v16 }
 0x37e   :  { %v2879_v4 = vpop.f32.mrf.mxu2  ;;  %v3035_v37 = vpop.f32.mrf.mxu0 }
 0x37f   :  { %v2968_v22 = vpop.f32.mrf.mxu3  ;;  %v3124_v5 = vpop.f32.mrf.mxu1  ;;  %v3059_v62 = vadd.f32 %v3035_v37, %v6053_v56  ;;  %v4825_v56 = vld [vmem:[%s6248_s5 + $0x98] sm:$0xff]  ;;  %v4831_v37 = vld [vmem:[%s6248_s5 + $0xc8] sm:$0xff] }
 0x380   :  { %3617 = vmatpush.bf16.msra.mxu0 %v4825_v56  ;;  %v4837_v22 = vld [vmem:[%s6248_s5 + $0xf8] sm:$0xff]  ;;  %3725 = vmatpush.bf16.msra.mxu2 %v4831_v37 }
 0x381   :  { %v3148_v47 = vadd.f32 %v3124_v5, %v3059_v62  ;;  %3776 = vmatpush.bf16.msra.mxu3 %v4837_v22  ;;  %v4836_v62 = vld [vmem:[%s6248_s5 + $0xf0] sm:$0xff] }
 0x384   :  { %3618 = vmatpush.bf16.msra.mxu0 %v4824_v61  ;;  %3726 = vmatpush.bf16.msra.mxu2 %v4830_v29 }
 0x385   :  { %3777 = vmatpush.bf16.msra.mxu3 %v4836_v62 }
 0x386   :  { %v3213_v40 = vpop.f32.mrf.mxu2  ;;  %v3037_v17 = vpop.f32.mrf.mxu0 }
 0x387   :  { %v3302_v15 = vpop.f32.mrf.mxu3  ;;  %v3237_v51 = vadd.f32 %v3213_v40, %v3148_v47  ;;  %v3126_v1 = vpop.f32.mrf.mxu1  ;;  %v3060_v18 = vadd.f32 %v3037_v17, %v6056_v44 }
 0x388   :  { %3619 = vmatpush.bf16.msra.mxu0 %v4823_v3 }
 0x389   :  { %v3326_v13 = vadd.f32 %v3302_v15, %v3237_v51  ;;  %v3149_v24 = vadd.f32 %v3126_v1, %v3060_v18  ;;  %v4835_v18 = vld [vmem:[%s6248_s5 + $0xe8] sm:$0xff] }
 0x38a   :  { %3778 = vmatpush.bf16.msra.mxu3 %v4835_v18 }
 0x38b   :  { %v3339_v27 = vadd.f32 %v6135_v28, %v3326_v13 }
 0x38c   :  { %3620 = vmatpush.bf16.msra.mxu0 %v4822_v30 }
 0x38d   :  { %v3348_v11 = vmax.f32 %v3339_v27, 0.0  ;;  %v4841_v27 = vld [vmem:[%s6248_s5 + $0x118] sm:$0xff] }
 0x38e   :  { %v3215_v39 = vpop.f32.mrf.mxu2  ;;  %v3040_v25 = vpop.f32.mrf.mxu0 }
 0x38f   :  { %v3304_v6 = vpop.f32.mrf.mxu3  ;;  %3357 = vst.msk [vmem:[#allocation3] sm:$0xff] %vm261_vm0, %v3348_v11  ;;  %v3238_v44 = vadd.f32 %v3215_v39, %v3149_v24  ;;  %v3129_v33 = vpop.f32.mrf.mxu1  ;;  %v3061_v41 = vadd.f32 %v3040_v25, %v6063_v21  ;;  %v4834_v24 = vld [vmem:[%s6248_s5 + $0xe0] sm:$0xff]  ;;  %v4840_v39 = vld [vmem:[%s6248_s5 + $0x110] sm:$0xff] }
 0x390   :  { %3779 = vmatpush.bf16.msra.mxu3 %v4834_v24 }
 0x391   :  { %v3327_v60 = vadd.f32 %v3304_v6, %v3238_v44  ;;  %v3150_v49 = vadd.f32 %v3129_v33, %v3061_v41 }
 0x393   :  { %v3340_v55 = vadd.f32 %v6135_v28, %v3327_v60 }
 0x395   :  { %v3349_v50 = vmax.f32 %v3340_v55, 0.0  ;;  %v4839_v55 = vld [vmem:[%s6248_s5 + $0x108] sm:$0xff] }
 0x396   :  { %v3218_v48 = vpop.f32.mrf.mxu2  ;;  %v3366_v36 = vld [vmem:[#allocation3] sm:$0xff]  ;;  %v3042_v0 = vpop.f32.mrf.mxu0 }
 0x397   :  { %v3307_v20 = vpop.f32.mrf.mxu3  ;;  %3358 = vst.msk [vmem:[#allocation3 + $0x8] sm:$0xff] %vm261_vm0, %v3349_v50  ;;  %v3239_v21 = vadd.f32 %v3218_v48, %v3150_v49  ;;  %v3131_v2 = vpop.f32.mrf.mxu1  ;;  %v3367_v35 = vpack.c.bf16 %v3366_v36, %v3366_v36  ;;  %v3062_v46 = vadd.f32 %v3042_v0, %v6069_v57  ;;  %v4838_v50 = vld [vmem:[%s6248_s5 + $0x100] sm:$0xff] }
 0x399   :  { %v3328_v58 = vadd.f32 %v3307_v20, %v3239_v21  ;;  %4582 = vmatmul.msk.bf16.vlgmr.msrb.gmra.mxu1 %vm261_vm0, %v3367_v35  ;;  %v3151_v34 = vadd.f32 %v3131_v2, %v3062_v46 }
 0x39b   :  { %v3341_v7 = vadd.f32 %v6135_v28, %v3328_v58 }
 0x39d   :  { %v3350_v31 = vmax.f32 %v3341_v7, 0.0 }
 0x39e   :  { %v3220_v16 = vpop.f32.mrf.mxu2  ;;  %v3377_v43 = vld [vmem:[#allocation3 + $0x8] sm:$0xff]  ;;  %v3045_v9 = vpop.f32.mrf.mxu0 }
 0x39f   :  { %v3309_v42 = vpop.f32.mrf.mxu3  ;;  %3359 = vst.msk [vmem:[#allocation3 + $0x10] sm:$0xff] %vm261_vm0, %v3350_v31  ;;  %v3240_v57 = vadd.f32 %v3220_v16, %v3151_v34  ;;  %v3134_v54 = vpop.f32.mrf.mxu1  ;;  %v3378_v4 = vpack.c.bf16 %v3377_v43, %v3377_v43  ;;  %v3063_v23 = vadd.f32 %v3045_v9, %v6081_v12 }
 0x3a1   :  { %v3329_v5 = vadd.f32 %v3309_v42, %v3240_v57  ;;  %4565 = vmatmul.msk.bf16.vlgmr.msrb.gmra.mxu0 %vm261_vm0, %v3378_v4  ;;  %v3152_v40 = vadd.f32 %v3134_v54, %v3063_v23 }
 0x3a2   :  { %3829 = vmatpush.bf16.msrb.mxu0 %v4841_v27 }
 0x3a3   :  { %v3342_v32 = vadd.f32 %v6135_v28, %v3329_v5 }
 0x3a5   :  { %v3351_v47 = vmax.f32 %v3342_v32, 0.0 }
 0x3a6   :  { %v3223_v15 = vpop.f32.mrf.mxu2  ;;  %v3469_v17 = vld [vmem:[#allocation3 + $0x10] sm:$0xff]  ;;  %v3047_v1 = vpop.f32.mrf.mxu0  ;;  %3830 = vmatpush.bf16.msrb.mxu0 %v4840_v39 }
 0x3a7   :  { %v3312_v51 = vpop.f32.mrf.mxu3  ;;  %3360 = vst.msk [vmem:[#allocation3 + $0x18] sm:$0xff] %vm261_vm0, %v3351_v47  ;;  %v3241_v12 = vadd.f32 %v3223_v15, %v3152_v40  ;;  %v3136_v56 = vpop.f32.mrf.mxu1  ;;  %v3470_v13 = vpack.c.bf16 %v3469_v17, %v3469_v17  ;;  %v3064_v61 = vadd.f32 %v3047_v1, %v6090_v53 }
 0x3a9   :  { %v3330_v14 = vadd.f32 %v3312_v51, %v3241_v12  ;;  %4607 = vmatmul.msk.bf16.vlgmr.msrb.gmra.mxu2 %vm261_vm0, %v3470_v13  ;;  %v3153_v44 = vadd.f32 %v3136_v56, %v3064_v61 }
 0x3aa   :  { %3831 = vmatpush.bf16.msrb.mxu0 %v4839_v55 }
 0x3ab   :  { %v3343_v11 = vadd.f32 %v6135_v28, %v3330_v14 }
 0x3ad   :  { %v3352_v6 = vmax.f32 %v3343_v11, 0.0 }
 0x3ae   :  { %v3225_v25 = vpop.f32.mrf.mxu2  ;;  %v3522_v3 = vld [vmem:[#allocation3 + $0x18] sm:$0xff]  ;;  %v3050_v26 = vpop.f32.mrf.mxu0  ;;  %3832 = vmatpush.bf16.msrb.mxu0 %v4838_v50 }
 0x3af   :  { %v3314_v33 = vpop.f32.mrf.mxu3  ;;  %3361 = vst.msk [vmem:[#allocation3 + $0x20] sm:$0xff] %vm261_vm0, %v3352_v6  ;;  %v3242_v53 = vadd.f32 %v3225_v25, %v3153_v44  ;;  %v3139_v60 = vpop.f32.mrf.mxu1  ;;  %v3523_v41 = vpack.c.bf16 %v3522_v3, %v3522_v3  ;;  %v3065_v59 = vadd.f32 %v3050_v26, %v6100_v63 }
 0x3b1   :  { %v3331_v30 = vadd.f32 %v3314_v33, %v3242_v53  ;;  %4632 = vmatmul.msk.bf16.vlgmr.msrb.gmra.mxu3 %vm261_vm0, %v3523_v41  ;;  %v3154_v20 = vadd.f32 %v3139_v60, %v3065_v59 }
 0x3b3   :  { %v3344_v49 = vadd.f32 %v6135_v28, %v3331_v30 }
 0x3b5   :  { %v3353_v48 = vmax.f32 %v3344_v49, 0.0 }
 0x3b6   :  { %v3228_v36 = vpop.f32.mrf.mxu2  ;;  %v3575_v0 = vld [vmem:[#allocation3 + $0x20] sm:$0xff]  ;;  %v3052_v35 = vpop.f32.mrf.mxu0 }
 0x3b7   :  { %v3317_v21 = vpop.f32.mrf.mxu3  ;;  %3362 = vst.msk [vmem:[#allocation3 + $0x28] sm:$0xff] %vm261_vm0, %v3353_v48  ;;  %v3243_v2 = vadd.f32 %v3228_v36, %v3154_v20  ;;  %v3141_v63 = vpop.f32.mrf.mxu1  ;;  %v3576_v10 = vpack.c.bf16 %v3575_v0, %v3575_v0  ;;  %v3066_v58 = vadd.f32 %v3052_v35, %v6109_v19  ;;  %v4844_v48 = vld [vmem:[%s6249_s6] ss:$0 sm:$0xff] }
 0x3b9   :  { %v3332_v52 = vadd.f32 %v3317_v21, %v3243_v2  ;;  %4657 = vmatmul.msk.bf16.vlgmr.msra.gmra.mxu0 %vm261_vm0, %v3576_v10  ;;  %v3155_v45 = vadd.f32 %v3141_v63, %v3066_v58 }
 0x3bb   :  { %v3345_v46 = vadd.f32 %v6135_v28, %v3332_v52 }
 0x3bd   :  { %v3354_v7 = vmax.f32 %v3345_v46, 0.0 }
 0x3be   :  { %v3230_v8 = vpop.f32.mrf.mxu2  ;;  %v3628_v34 = vld [vmem:[#allocation3 + $0x28] sm:$0xff]  ;;  %v3055_v42 = vpop.f32.mrf.mxu0 }
 0x3bf   :  { %v3319_v31 = vpop.f32.mrf.mxu3  ;;  %3363 = vst.msk [vmem:[#allocation3 + $0x30] sm:$0xff] %vm261_vm0, %v3354_v7  ;;  %v3244_v16 = vadd.f32 %v3230_v8, %v3155_v45  ;;  %v3144_v43 = vpop.f32.mrf.mxu1  ;;  %v3629_v57 = vpack.c.bf16 %v3628_v34, %v3628_v34  ;;  %v3067_v54 = vadd.f32 %v3055_v42, %v6117_v38 }
 0x3c1   :  { %v3333_v9 = vadd.f32 %v3319_v31, %v3244_v16  ;;  %4682 = vmatmul.msk.bf16.vlgmr.msra.gmra.mxu1 %vm261_vm0, %v3629_v57  ;;  %v3156_v22 = vadd.f32 %v3144_v43, %v3067_v54 }
 0x3c3   :  { %v3346_v19 = vadd.f32 %v6135_v28, %v3333_v9 }
 0x3c5   :  { %v3355_v4 = vmax.f32 %v3346_v19, 0.0 }
 0x3c6   :  { %v3233_v37 = vpop.f32.mrf.mxu2  ;;  %v3681_v23 = vld [vmem:[#allocation3 + $0x30] sm:$0xff]  ;;  %v3057_v62 = vpop.f32.mrf.mxu0 }
 0x3c7   :  { %v3322_v5 = vpop.f32.mrf.mxu3  ;;  %3364 = vst.msk [vmem:[#allocation3 + $0x38] sm:$0xff] %vm261_vm0, %v3355_v4  ;;  %v3245_v32 = vadd.f32 %v3233_v37, %v3156_v22  ;;  %v3146_v29 = vpop.f32.mrf.mxu1  ;;  %v3682_v47 = vpack.c.bf16 %v3681_v23, %v3681_v23 }
 0x3c9   :  { %v3334_v40 = vadd.f32 %v3322_v5, %v3245_v32  ;;  %4707 = vmatmul.msk.bf16.vlgmr.msra.gmra.mxu2 %vm261_vm0, %v3682_v47 }
 0x3cb   :  { %v3347_v38 = vadd.f32 %v6135_v28, %v3334_v40 }
 0x3cd   :  { %v3356_v15 = vmax.f32 %v3347_v38, 0.0 }
 0x3ce   :  { %v3235_v51 = vpop.f32.mrf.mxu2  ;;  %v3734_v12 = vld [vmem:[#allocation3 + $0x38] sm:$0xff] }
 0x3cf   :  { %v3324_v17 = vpop.f32.mrf.mxu3  ;;  %3365 = vst.msk [vmem:[#allocation3 + $0x40] sm:$0xff] %vm261_vm0, %v3356_v15  ;;  %v3735_v1 = vpack.c.bf16 %v3734_v12, %v3734_v12 }
 0x3d1   :  { %4732 = vmatmul.msk.bf16.vlgmr.msra.gmra.mxu3 %vm261_vm0, %v3735_v1 }
 0x3d6   :  { %v3787_v56 = vld [vmem:[#allocation3 + $0x40] sm:$0xff] }
 0x3d7   :  { %v3788_v13 = vpack.c.bf16 %v3787_v56, %v3787_v56 }
 0x3d9   :  { %4757 = vmatmul.msk.bf16.vlgmr.msrb.gmra.mxu0 %vm261_vm0, %v3788_v13 }
 0x416   :  { %v3464_v18 = vpop.f32.mrf.mxu1 }
 0x41e   :  { %v3424_v27 = vpop.f32.mrf.mxu0  ;;  %v3466_v14 = vpop.f32.mrf.mxu1 }
 0x41f   :  { %v3465_v3 = vadd.f32 %v3464_v18, %v3424_v27 }
 0x426   :  { %v3426_v61 = vpop.f32.mrf.mxu0 }
 0x42c   :  { %v3516_v11 = vpop.f32.mrf.mxu2 }
 0x42d   :  { %v3520_v53 = vadd.f32 %v3516_v11, %v3465_v3 }
 0x434   :  { %v3518_v24 = vpop.f32.mrf.mxu2  ;;  %v3569_v28 = vpop.f32.mrf.mxu3 }
 0x435   :  { %v3573_v26 = vadd.f32 %v3569_v28, %v3520_v53 }
 0x436   :  { %v3622_v39 = vpop.f32.mrf.mxu0 }
 0x437   :  { %v3626_v41 = vadd.f32 %v3622_v39, %v3573_v26 }
 0x43c   :  { %v3571_v6 = vpop.f32.mrf.mxu3 }
 0x43e   :  { %v3624_v44 = vpop.f32.mrf.mxu0  ;;  %v3675_v25 = vpop.f32.mrf.mxu1 }
 0x43f   :  { %v3679_v55 = vadd.f32 %v3675_v25, %v3626_v41 }
 0x446   :  { %v3677_v33 = vpop.f32.mrf.mxu1 }
 0x44c   :  { %v3728_v60 = vpop.f32.mrf.mxu2 }
 0x44d   :  { %v3732_v30 = vadd.f32 %v3728_v60, %v3679_v55 }
 0x454   :  { %v3730_v59 = vpop.f32.mrf.mxu2  ;;  %v3781_v50 = vpop.f32.mrf.mxu3 }
 0x455   :  { %v3785_v49 = vadd.f32 %v3781_v50, %v3732_v30 }
 0x456   :  { %v3834_v20 = vpop.f32.mrf.mxu0 }
 0x457   :  { %v3838_v36 = vadd.f32 %v3834_v20, %v3785_v49 }
 0x459   :  { %v3843_v21 = vadd.f32 %v4844_v48, %v3838_v36 }
 0x45b   :  { %v3844_v0 = vmul.f32 %v3843_v21, %v3843_v21 }
 0x45c   :  { %v3783_v2 = vpop.f32.mrf.mxu3 }
 0x45d   :  { %v3845_v35 = vsel %vm261_vm0, %v3844_v0, 0.0 }
 0x45e   :  { %v3836_v63 = vpop.f32.mrf.mxu0  ;;  %3846 = vadd.xlane.f32.xlu0 %v3845_v35 }
 0x4d1   :  { %v3847_v10 = vpop.xlane.xlu0 %3846 }
 0x4d2   :  { %4845 = vrsqrt.f32 %v3847_v10  ;;  %vm3855_vm3 = vweird.f32 %v3847_v10 }
 0x4d8   :  { %v4846_v52 = vpop.eup %4845 }
 0x4d9   :  { %v3850_v58 = vmul.f32 %v4846_v52, %v3847_v10  ;;  %vm3856_vm2 = vweird.f32 %v4846_v52 }
 0x4da   :  { %vm3857_vm4 = vmor %vm3855_vm3, %vm3856_vm2 }
 0x4db   :  { %v3851_v46 = vmul.f32 %v4846_v52, %v3850_v58 }
 0x4dd   :  { %v3852_v7 = vmul.f32 0.5, %v3851_v46 }
 0x4df   :  { %v3853_v45 = vsub.f32 1.5, %v3852_v7 }
 0x4e1   :  { %v3854_v8 = vmul.f32 %v4846_v52, %v3853_v45 }
 0x4e3   :  { %v3858_v31 = vsel %vm3857_vm4, %v4846_v52, %v3854_v8 }
 0x4e4   :  { %v3859_v34 = vmul.f32 %v3858_v31, %v3843_v21 }
 0x4e6   :  { %3860 = vst.msk [vmem:[%s6250_s7] sm:$0xff] %vm261_vm0, %v3859_v34 }

</bundles_post_ra>
